<compile_context>
chip_gen: v6e
topology: v6e:2x2x1
jax: 0.10.0
libtpu: 0.0.40
codegen_flags: <defaults>
</compile_context>

<pallas_src>
import functools
import math

import jax
import jax.numpy as jnp
from jax.experimental import pallas as pl
from jax.experimental.pallas import tpu as pltpu


# ------------------------- Fused grid-attention + FFN kernel -------------------------

def _fused_grid_attn_ffn_kernel(x_ref, wqkv_ref, bqkv_ref, wo_ref, bo_ref,
                                w1_ref, b1_ref, w2_ref, b2_ref,
                                o_ref, y_scr, f_acc, *, num_heads):
    """grid = (window block i [parallel], FFN hidden block k [arbitrary]).

    x_ref    : (BW, T, C)  bf16 window tokens (T = grid_size**2)
    wqkv_ref : (C, 3C)     bf16  (Q columns pre-scaled by 1/sqrt(dh))
    bqkv_ref : (1, 3C)     f32   (Q bias pre-scaled)
    wo_ref   : (C, C)      bf16,  bo_ref: (1, C) f32
    w1_ref   : (C, Hblk)   bf16,  b1_ref: (1, Hblk) f32
    w2_ref   : (Hblk, C)   bf16,  b2_ref: (1, C) f32
    o_ref    : (BW, T, C)  bf16
    y_scr    : (BW*T, C)   f32 VMEM scratch — attention residual, reused across k
    f_acc    : (BW*T, C)   f32 VMEM scratch — FFN output accumulator over hidden blocks
    """
    bw, t, c = x_ref.shape
    n = bw * t
    dh = c // num_heads
    k_id = pl.program_id(1)

    # ---- Attention + residual: computed once per window block (k == 0). ----
    @pl.when(k_id == 0)
    def _attention():
        x = x_ref[...]                                   # (BW, T, C) bf16
        xf = x.reshape(n, c)                             # free leading-dim collapse

        # Fused QKV: one lane-dense (N,C)x(C,3C) MXU matmul, f32 accumulation.
        qkv = jnp.dot(xf, wqkv_ref[...],
                      preferred_element_type=jnp.float32) + bqkv_ref[...]
        q = qkv[:, :c].astype(jnp.bfloat16).reshape(bw, t, c)
        k = qkv[:, c:2 * c].astype(jnp.bfloat16).reshape(bw, t, c)
        v = qkv[:, 2 * c:].astype(jnp.bfloat16).reshape(bw, t, c)

        # Per-head attention (static lane slices, unrolled over heads).  T and dh are small,
        # so these batched matmuls are MXU-cadence bound regardless of layout.
        ctx_heads = []
        for h in range(num_heads):
            lo = h * dh
            qh = q[:, :, lo:lo + dh]
            kh = k[:, :, lo:lo + dh]
            vh = v[:, :, lo:lo + dh]
            s = jnp.einsum("bqd,bkd->bqk", qh, kh,
                           preferred_element_type=jnp.float32)
            s = s - jnp.max(s, axis=-1, keepdims=True)
            p = jnp.exp(s)
            p = p * pl.reciprocal(jnp.sum(p, axis=-1, keepdims=True), approx=True)
            ctx_heads.append(jnp.einsum("bqk,bkd->bqd", p.astype(jnp.bfloat16), vh,
                                        preferred_element_type=jnp.float32))

        # Heads concatenated back along lanes -> lane-dense (C,C) output projection
        # (no (H,N,C) pre-sum intermediate, head reduction happens inside the MXU).
        ctx = jnp.concatenate(ctx_heads, axis=-1).astype(jnp.bfloat16).reshape(n, c)
        attn = jnp.dot(ctx, wo_ref[...],
                       preferred_element_type=jnp.float32) + bo_ref[...]

        y_scr[...] = xf.astype(jnp.float32) + attn       # residual 1 (f32)
        f_acc[...] = jnp.zeros(f_acc.shape, f_acc.dtype)

    # ---- FFN hidden-dim tile k_id: f_acc += GELU(y @ w1_blk + b1_blk) @ w2_blk. ----
    y = y_scr[...]
    h1 = jnp.dot(y.astype(jnp.bfloat16), w1_ref[...],
                 preferred_element_type=jnp.float32) + b1_ref[...]
    h1 = jax.nn.gelu(h1, approximate=True)
    f_acc[...] += jnp.dot(h1.astype(jnp.bfloat16), w2_ref[...],
                          preferred_element_type=jnp.float32)

    # ---- Final bias + residual 2 + store (last hidden block). ----
    @pl.when(k_id == pl.num_programs(1) - 1)
    def _store():
        out = y_scr[...] + f_acc[...] + b2_ref[...]
        o_ref[...] = out.reshape(bw, t, c).astype(o_ref.dtype)


# ------------------------------- Tiling heuristics ------------------------------------

def _pick_block_windows(num_windows, tokens_per_window, target_rows=512):
    """Windows per grid step: as many rows as possible (<= target_rows), while keeping the
    window grid even and >= 4 steps when achievable (>= 2 pipelined steps per v7x core)."""
    divisors = [d for d in range(1, num_windows + 1) if num_windows % d == 0]

    def ok(d, min_steps, need_even):
        g = num_windows // d
        return (d * tokens_per_window <= target_rows and g >= min_steps
                and (g % 2 == 0 or not need_even))

    for min_steps, need_even in ((4, True), (2, True), (2, False), (1, False)):
        cands = [d for d in divisors if ok(d, min_steps, need_even)]
        if cands:
            return max(cands)
    return 1


def _pick_block_hidden(hidden_dim, target=512):
    """FFN hidden-dim block: whole thing if small, else largest lane-friendly divisor."""
    if hidden_dim <= target:
        return hidden_dim
    divs = [d for d in range(1, target + 1) if hidden_dim % d == 0]
    lane_divs = [d for d in divs if d % 128 == 0]
    return max(lane_divs) if lane_divs else max(divs)


# ------------------------------ Module wrapper (glue) ---------------------------------

def init_params(key, channels, hidden_dim):
    ks = jax.random.split(key, 10)
    std = 0.02
    p = {
        "attn": {
            "wq": jax.random.normal(ks[0], (channels, channels), jnp.float32) * std,
            "wk": jax.random.normal(ks[1], (channels, channels), jnp.float32) * std,
            "wv": jax.random.normal(ks[2], (channels, channels), jnp.float32) * std,
            "wo": jax.random.normal(ks[3], (channels, channels), jnp.float32) * std,
            "bq": jax.random.normal(ks[4], (1, channels), jnp.float32) * 0.01,
            "bk": jax.random.normal(ks[5], (1, channels), jnp.float32) * 0.01,
            "bv": jax.random.normal(ks[6], (1, channels), jnp.float32) * 0.01,
            "bo": jnp.zeros((1, channels), jnp.float32),
        },
        "ffn": {
            "w1": jax.random.normal(ks[7], (channels, hidden_dim), jnp.float32) * std,
            "b1": jax.random.normal(ks[8], (1, hidden_dim), jnp.float32) * 0.01,
            "w2": jax.random.normal(ks[9], (hidden_dim, channels), jnp.float32) * std,
            "b2": jnp.zeros((1, channels), jnp.float32),
        },
    }
    return p


def adaptive_grid_attention_forward(x_nchw, params, *, grid_size, num_heads,
                                    block_windows=None, block_hidden=None,
                                    single_buffer_weights=True):
    """Forward pass matching the PyTorch module (inference).  x_nchw: (B, C, H, W) f32."""
    b, c, h, w = x_nchw.shape
    g = grid_size
    assert h % g == 0 and w % g == 0 and c % num_heads == 0
    nh, nw = h // g, w // g
    t = g * g
    nwin = b * nh * nw
    dh = c // num_heads
    bf = jnp.bfloat16

    # NCHW -> (num_windows, T, C) in bf16.  XLA fuses this chain into a single copy pass.
    xw = jnp.transpose(x_nchw.astype(bf), (0, 2, 3, 1))                  # (B, H, W, C)
    xw = xw.reshape(b, nh, g, nw, g, c)
    xw = jnp.transpose(xw, (0, 1, 3, 2, 4, 5)).reshape(nwin, t, c)

    pa, pf = params["attn"], params["ffn"]
    hd = pf["w1"].shape[1]
    sm = 1.0 / math.sqrt(dh)

    # Host weight prep (one-time): fold sm_scale into Q, stack QKV into one (C, 3C) weight.
    wqkv = jnp.concatenate([pa["wq"] * sm, pa["wk"], pa["wv"]], axis=1).astype(bf)
    bqkv = jnp.concatenate([pa["bq"] * sm, pa["bk"], pa["bv"]], axis=1)   # (1, 3C) f32
    wo = pa["wo"].astype(bf)
    bo = pa["bo"]
    w1 = pf["w1"].astype(bf)
    b1 = pf["b1"]
    w2 = pf["w2"].astype(bf)
    b2 = pf["b2"]

    if block_windows is None:
        block_windows = _pick_block_windows(nwin, t)
    bw_blk = block_windows
    assert nwin % bw_blk == 0
    grid_len = nwin // bw_blk

    if block_hidden is None:
        block_hidden = _pick_block_hidden(hd)
    hd_blk = block_hidden
    assert hd % hd_blk == 0
    n_hid = hd // hd_blk

    def const_spec(shape):
        nd = len(shape)
        idx = lambda i, k, _n=nd: (0,) * _n
        if single_buffer_weights:
            # Weights never change across the grid -> single-buffer to save VMEM (v7x/v5e).
            return pl.BlockSpec(shape, idx, pipeline_mode=pl.Buffered(1))
        return pl.BlockSpec(shape, idx)

    out_win = pl.pallas_call(
        functools.partial(_fused_grid_attn_ffn_kernel, num_heads=num_heads),
        out_shape=jax.ShapeDtypeStruct((nwin, t, c), bf),
        grid_spec=pltpu.PrefetchScalarGridSpec(
            num_scalar_prefetch=0,
            grid=(grid_len, n_hid),
            in_specs=[
                pl.BlockSpec((bw_blk, t, c), lambda i, k: (i, 0, 0)),     # x (windows)
                const_spec((c, 3 * c)),                                   # wqkv
                const_spec((1, 3 * c)),                                   # bqkv
                const_spec((c, c)),                                       # wo
                const_spec((1, c)),                                       # bo
                pl.BlockSpec((c, hd_blk), lambda i, k: (0, k)),           # w1 (hidden-tiled)
                pl.BlockSpec((1, hd_blk), lambda i, k: (0, k)),           # b1
                pl.BlockSpec((hd_blk, c), lambda i, k: (k, 0)),           # w2
                const_spec((1, c)),                                       # b2
            ],
            out_specs=pl.BlockSpec((bw_blk, t, c), lambda i, k: (i, 0, 0)),
            scratch_shapes=[pltpu.VMEM((bw_blk * t, c), jnp.float32),     # y (residual 1)
                            pltpu.VMEM((bw_blk * t, c), jnp.float32)],    # FFN accumulator
        ),
        compiler_params=pltpu.CompilerParams(
            dimension_semantics=("parallel", "arbitrary"),
            vmem_limit_bytes=64 * 1024 * 1024),
    )(xw, wqkv, bqkv, wo, bo, w1, b1, w2, b2)

    # (num_windows, T, C) bf16 -> NCHW (single fused copy pass); cast to f32 at the very end.
    out = out_win.reshape(b, nh, nw, g, g, c)
    out = jnp.transpose(out, (0, 1, 3, 2, 4, 5)).reshape(b, h, w, c)
    return jnp.transpose(out, (0, 3, 1, 2)).astype(jnp.float32)


# ----------------------------------- Reference ------------------------------------------

def _reference_forward(x_nchw, params, *, grid_size, num_heads):
    b, c, h, w = x_nchw.shape
    g = grid_size
    nh, nw = h // g, w // g
    dh = c // num_heads
    x = jnp.transpose(x_nchw, (0, 2, 3, 1)).reshape(b, nh, g, nw, g, c)
    xw = jnp.transpose(x, (0, 1, 3, 2, 4, 5)).reshape(b * nh * nw, g * g, c)

    pa = params["attn"]
    q = xw @ pa["wq"] + pa["bq"]
    k = xw @ pa["wk"] + pa["bk"]
    v = xw @ pa["wv"] + pa["bv"]
    NW, T, _ = xw.shape
    q = q.reshape(NW, T, num_heads, dh).transpose(0, 2, 1, 3)
    k = k.reshape(NW, T, num_heads, dh).transpose(0, 2, 1, 3)
    v = v.reshape(NW, T, num_heads, dh).transpose(0, 2, 1, 3)
    s = jnp.einsum("nhtd,nhsd->nhts", q, k) / math.sqrt(dh)
    p = jax.nn.softmax(s, axis=-1)
    o = jnp.einsum("nhts,nhsd->nhtd", p, v).transpose(0, 2, 1, 3).reshape(NW, T, c)
    xw = xw + (o @ pa["wo"] + pa["bo"])

    xo = xw.reshape(b, nh, nw, g, g, c)
    xo = jnp.transpose(xo, (0, 1, 3, 2, 4, 5)).reshape(b * h * w, c)

    pf = params["ffn"]
    hmid = jax.nn.gelu(xo @ pf["w1"] + pf["b1"], approximate=True)
    xo = xo + (hmid @ pf["w2"] + pf["b2"])
    return jnp.transpose(xo.reshape(b, h, w, c), (0, 3, 1, 2))


# -------------------------------------- Main ---------------------------------------------

if __name__ == "__main__":
    B, C, H, W = 2, 32, 16, 16
    GRID_SIZE = 4
    NUM_HEADS = 2
    HIDDEN_DIM = 64

    key = jax.random.PRNGKey(0)
    kx, kp = jax.random.split(key)
    x = jax.random.normal(kx, (B, C, H, W), jnp.float32)
    params = init_params(kp, C, HIDDEN_DIM)

    def make_fwd(single_buffer_weights):
        return jax.jit(functools.partial(
            adaptive_grid_attention_forward, grid_size=GRID_SIZE,
            num_heads=NUM_HEADS, single_buffer_weights=single_buffer_weights))

    try:
        fwd = make_fwd(True)
        out = fwd(x, params)
        jax.block_until_ready(out)
    except Exception:
        # Installed Pallas may not accept pipeline_mode=pl.Buffered(1); fall back to default.
        fwd = make_fwd(False)
        out = fwd(x, params)
        jax.block_until_ready(out)

    # f32 reference evaluated on the same bf16-rounded activations / weights the kernel uses;
    # rounded to bf16 at the end to match the kernel's bf16 output precision.
    def _rq(a):
        return a.astype(jnp.bfloat16).astype(jnp.float32)

    params_q = {grp: {k: (_rq(v) if k.startswith("w") else v) for k, v in d.items()}
                for grp, d in params.items()}
    ref = _reference_forward(_rq(x), params_q, grid_size=GRID_SIZE, num_heads=NUM_HEADS)
    ref_b = ref.astype(jnp.bfloat16).astype(jnp.float32)

    assert out.shape == (B, C, H, W)
    max_err = float(jnp.max(jnp.abs(out - ref_b)))
    assert jnp.allclose(out, ref_b, atol=2.5e-2, rtol=2.5e-2), \
        f"Pallas output mismatch vs JAX reference (max abs err {max_err})"

    print("KERNEL_OK")
</pallas_src>

<mosaic_0001>
module attributes {stable_mosaic.version = 11 : i64} {
  func.func @_fused_grid_attn_ffn_kernel(%arg0: i32, %arg1: i32, %arg2: memref<8x16x32xbf16, #tpu.memory_space<vmem>>, %arg3: memref<32x96xbf16, #tpu.memory_space<vmem>>, %arg4: memref<1x96xf32, #tpu.memory_space<vmem>>, %arg5: memref<32x32xbf16, #tpu.memory_space<vmem>>, %arg6: memref<1x32xf32, #tpu.memory_space<vmem>>, %arg7: memref<32x64xbf16, #tpu.memory_space<vmem>>, %arg8: memref<1x64xf32, #tpu.memory_space<vmem>>, %arg9: memref<64x32xbf16, #tpu.memory_space<vmem>>, %arg10: memref<1x32xf32, #tpu.memory_space<vmem>>, %arg11: memref<8x16x32xbf16, #tpu.memory_space<vmem>>, %arg12: memref<128x32xf32, #tpu.memory_space<vmem>>, %arg13: memref<128x32xf32, #tpu.memory_space<vmem>>) attributes {dimension_semantics = [#tpu.dimension_semantics<parallel>, #tpu.dimension_semantics<arbitrary>], iteration_bounds = array<i64: 4, 1>, scalar_prefetch = 0 : i64, scratch_operands = 2 : i64, tpu.core_type = #tpu.core_type<tc>, window_params = [{transform_indices = @transform_0, window_bounds = array<i64: 8, 16, 32>}, {pipeline_mode = #tpu.pipeline_mode<synchronous>, transform_indices = @transform_1, window_bounds = array<i64: 32, 96>}, {pipeline_mode = #tpu.pipeline_mode<synchronous>, transform_indices = @transform_2, window_bounds = array<i64: 1, 96>}, {pipeline_mode = #tpu.pipeline_mode<synchronous>, transform_indices = @transform_3, window_bounds = array<i64: 32, 32>}, {pipeline_mode = #tpu.pipeline_mode<synchronous>, transform_indices = @transform_4, window_bounds = array<i64: 1, 32>}, {transform_indices = @transform_5, window_bounds = array<i64: 32, 64>}, {transform_indices = @transform_6, window_bounds = array<i64: 1, 64>}, {transform_indices = @transform_7, window_bounds = array<i64: 64, 32>}, {pipeline_mode = #tpu.pipeline_mode<synchronous>, transform_indices = @transform_8, window_bounds = array<i64: 1, 32>}, {transform_indices = @transform_9, window_bounds = array<i64: 8, 16, 32>}]} {
    %c0_i32 = arith.constant 0 : i32
    %0 = arith.cmpi eq, %arg1, %c0_i32 : i32
    %1 = arith.extui %0 : i1 to i32
    %c0_i32_0 = arith.constant 0 : i32
    %2 = arith.cmpi ne, %1, %c0_i32_0 : i32
    scf.if %2 {
      %c0_19 = arith.constant 0 : index
      %c0_20 = arith.constant 0 : index
      %c0_21 = arith.constant 0 : index
      %32 = vector.load %arg2[%c0_19, %c0_20, %c0_21] : memref<8x16x32xbf16, #tpu.memory_space<vmem>>, vector<8x16x32xbf16>
      %33 = vector.shape_cast %32 : vector<8x16x32xbf16> to vector<128x32xbf16>
      %c0_22 = arith.constant 0 : index
      %c0_23 = arith.constant 0 : index
      %34 = vector.load %arg3[%c0_22, %c0_23] : memref<32x96xbf16, #tpu.memory_space<vmem>>, vector<32x96xbf16>
      %cst_24 = arith.constant dense<0.000000e+00> : vector<128x96xf32>
      %35 = tpu.matmul %33, %34, %cst_24 {dimension_numbers = #tpu.dot_dimension_numbers<[1], [0], [0], [1], [0, 0, 1, 1], [], []>} : vector<128x32xbf16>, vector<32x96xbf16>, vector<128x96xf32> -> vector<128x96xf32>
      %c0_25 = arith.constant 0 : index
      %c0_26 = arith.constant 0 : index
      %36 = vector.load %arg4[%c0_25, %c0_26] : memref<1x96xf32, #tpu.memory_space<vmem>>, vector<1x96xf32>
      %37 = vector.broadcast %36 : vector<1x96xf32> to vector<128x96xf32>
      %38 = arith.addf %35, %37 : vector<128x96xf32>
      %39 = vector.extract_strided_slice %38 {offsets = [0, 0], sizes = [128, 32], strides = [1, 1]} : vector<128x96xf32> to vector<128x32xf32>
      %40 = arith.truncf %39 : vector<128x32xf32> to vector<128x32xbf16>
      %41 = vector.shape_cast %40 : vector<128x32xbf16> to vector<8x16x32xbf16>
      %42 = vector.extract_strided_slice %38 {offsets = [0, 32], sizes = [128, 32], strides = [1, 1]} : vector<128x96xf32> to vector<128x32xf32>
      %43 = arith.truncf %42 : vector<128x32xf32> to vector<128x32xbf16>
      %44 = vector.shape_cast %43 : vector<128x32xbf16> to vector<8x16x32xbf16>
      %45 = vector.extract_strided_slice %38 {offsets = [0, 64], sizes = [128, 32], strides = [1, 1]} : vector<128x96xf32> to vector<128x32xf32>
      %46 = arith.truncf %45 : vector<128x32xf32> to vector<128x32xbf16>
      %47 = vector.shape_cast %46 : vector<128x32xbf16> to vector<8x16x32xbf16>
      %48 = vector.extract_strided_slice %41 {offsets = [0, 0, 0], sizes = [8, 16, 16], strides = [1, 1, 1]} : vector<8x16x32xbf16> to vector<8x16x16xbf16>
      %49 = vector.extract_strided_slice %44 {offsets = [0, 0, 0], sizes = [8, 16, 16], strides = [1, 1, 1]} : vector<8x16x32xbf16> to vector<8x16x16xbf16>
      %50 = vector.extract_strided_slice %47 {offsets = [0, 0, 0], sizes = [8, 16, 16], strides = [1, 1, 1]} : vector<8x16x32xbf16> to vector<8x16x16xbf16>
      "tpu.trace_start"() <{level = 10 : i32, message = "bqd,bkd->bqk"}> : () -> ()
      %cst_27 = arith.constant dense<0.000000e+00> : vector<8x16x16xf32>
      %51 = tpu.matmul %48, %49, %cst_27 {dimension_numbers = #tpu.dot_dimension_numbers<[2], [2], [1], [1], [0, 0, 0, 1, 1, 1], [0], [0]>} : vector<8x16x16xbf16>, vector<8x16x16xbf16>, vector<8x16x16xf32> -> vector<8x16x16xf32>
      "tpu.trace_stop"() : () -> ()
      %cst_28 = arith.constant dense<0xFF800000> : vector<8x16xf32>
      %52 = vector.multi_reduction <maximumf>, %51, %cst_28 [2] : vector<8x16x16xf32> to vector<8x16xf32>
      %53 = vector.shape_cast %52 : vector<8x16xf32> to vector<8x16x1xf32>
      %54 = vector.broadcast %53 : vector<8x16x1xf32> to vector<8x16x16xf32>
      %55 = arith.subf %51, %54 : vector<8x16x16xf32>
      %56 = math.exp %55 : vector<8x16x16xf32>
      %cst_29 = arith.constant dense<0.000000e+00> : vector<8x16xf32>
      %57 = vector.multi_reduction <add>, %56, %cst_29 [2] : vector<8x16x16xf32> to vector<8x16xf32>
      %58 = vector.shape_cast %57 : vector<8x16xf32> to vector<8x16x1xf32>
      %59 = tpu.reciprocal %58 {approx = true} : vector<8x16x1xf32> -> vector<8x16x1xf32>
      %60 = vector.broadcast %59 : vector<8x16x1xf32> to vector<8x16x16xf32>
      %61 = arith.mulf %56, %60 : vector<8x16x16xf32>
      %62 = arith.truncf %61 : vector<8x16x16xf32> to vector<8x16x16xbf16>
      "tpu.trace_start"() <{level = 10 : i32, message = "bqk,bkd->bqd"}> : () -> ()
      %cst_30 = arith.constant dense<0.000000e+00> : vector<8x16x16xf32>
      %63 = tpu.matmul %62, %50, %cst_30 {dimension_numbers = #tpu.dot_dimension_numbers<[2], [1], [1], [2], [0, 0, 0, 1, 1, 2], [0], [0]>} : vector<8x16x16xbf16>, vector<8x16x16xbf16>, vector<8x16x16xf32> -> vector<8x16x16xf32>
      "tpu.trace_stop"() : () -> ()
      %64 = vector.extract_strided_slice %41 {offsets = [0, 0, 16], sizes = [8, 16, 16], strides = [1, 1, 1]} : vector<8x16x32xbf16> to vector<8x16x16xbf16>
      %65 = vector.extract_strided_slice %44 {offsets = [0, 0, 16], sizes = [8, 16, 16], strides = [1, 1, 1]} : vector<8x16x32xbf16> to vector<8x16x16xbf16>
      %66 = vector.extract_strided_slice %47 {offsets = [0, 0, 16], sizes = [8, 16, 16], strides = [1, 1, 1]} : vector<8x16x32xbf16> to vector<8x16x16xbf16>
      "tpu.trace_start"() <{level = 10 : i32, message = "bqd,bkd->bqk"}> : () -> ()
      %cst_31 = arith.constant dense<0.000000e+00> : vector<8x16x16xf32>
      %67 = tpu.matmul %64, %65, %cst_31 {dimension_numbers = #tpu.dot_dimension_numbers<[2], [2], [1], [1], [0, 0, 0, 1, 1, 1], [0], [0]>} : vector<8x16x16xbf16>, vector<8x16x16xbf16>, vector<8x16x16xf32> -> vector<8x16x16xf32>
      "tpu.trace_stop"() : () -> ()
      %cst_32 = arith.constant dense<0xFF800000> : vector<8x16xf32>
      %68 = vector.multi_reduction <maximumf>, %67, %cst_32 [2] : vector<8x16x16xf32> to vector<8x16xf32>
      %69 = vector.shape_cast %68 : vector<8x16xf32> to vector<8x16x1xf32>
      %70 = vector.broadcast %69 : vector<8x16x1xf32> to vector<8x16x16xf32>
      %71 = arith.subf %67, %70 : vector<8x16x16xf32>
      %72 = math.exp %71 : vector<8x16x16xf32>
      %cst_33 = arith.constant dense<0.000000e+00> : vector<8x16xf32>
      %73 = vector.multi_reduction <add>, %72, %cst_33 [2] : vector<8x16x16xf32> to vector<8x16xf32>
      %74 = vector.shape_cast %73 : vector<8x16xf32> to vector<8x16x1xf32>
      %75 = tpu.reciprocal %74 {approx = true} : vector<8x16x1xf32> -> vector<8x16x1xf32>
      %76 = vector.broadcast %75 : vector<8x16x1xf32> to vector<8x16x16xf32>
      %77 = arith.mulf %72, %76 : vector<8x16x16xf32>
      %78 = arith.truncf %77 : vector<8x16x16xf32> to vector<8x16x16xbf16>
      "tpu.trace_start"() <{level = 10 : i32, message = "bqk,bkd->bqd"}> : () -> ()
      %cst_34 = arith.constant dense<0.000000e+00> : vector<8x16x16xf32>
      %79 = tpu.matmul %78, %66, %cst_34 {dimension_numbers = #tpu.dot_dimension_numbers<[2], [1], [1], [2], [0, 0, 0, 1, 1, 2], [0], [0]>} : vector<8x16x16xbf16>, vector<8x16x16xbf16>, vector<8x16x16xf32> -> vector<8x16x16xf32>
      "tpu.trace_stop"() : () -> ()
      %80 = tpu.concatenate %63, %79 in 2 : vector<8x16x16xf32>, vector<8x16x16xf32> -> vector<8x16x32xf32>
      %81 = arith.truncf %80 : vector<8x16x32xf32> to vector<8x16x32xbf16>
      %82 = vector.shape_cast %81 : vector<8x16x32xbf16> to vector<128x32xbf16>
      %c0_35 = arith.constant 0 : index
      %c0_36 = arith.constant 0 : index
      %83 = vector.load %arg5[%c0_35, %c0_36] : memref<32x32xbf16, #tpu.memory_space<vmem>>, vector<32x32xbf16>
      %cst_37 = arith.constant dense<0.000000e+00> : vector<128x32xf32>
      %84 = tpu.matmul %82, %83, %cst_37 {dimension_numbers = #tpu.dot_dimension_numbers<[1], [0], [0], [1], [0, 0, 1, 1], [], []>} : vector<128x32xbf16>, vector<32x32xbf16>, vector<128x32xf32> -> vector<128x32xf32>
      %c0_38 = arith.constant 0 : index
      %c0_39 = arith.constant 0 : index
      %85 = vector.load %arg6[%c0_38, %c0_39] : memref<1x32xf32, #tpu.memory_space<vmem>>, vector<1x32xf32>
      %86 = vector.broadcast %85 : vector<1x32xf32> to vector<128x32xf32>
      %87 = arith.addf %84, %86 : vector<128x32xf32>
      %88 = arith.extf %33 : vector<128x32xbf16> to vector<128x32xf32>
      %89 = arith.addf %88, %87 : vector<128x32xf32>
      %c0_40 = arith.constant 0 : index
      %c0_41 = arith.constant 0 : index
      %90 = vector.load %arg12[%c0_40, %c0_41] : memref<128x32xf32, #tpu.memory_space<vmem>>, vector<128x32xf32>
      tpu.vector_store %arg12[%c0_40, %c0_41], %89 {strides = array<i32>} : memref<128x32xf32, #tpu.memory_space<vmem>>, vector<128x32xf32>,
      %cst_42 = arith.constant 0.000000e+00 : f32
      %91 = vector.broadcast %cst_42 : f32 to vector<128x32xf32>
      %c0_43 = arith.constant 0 : index
      %c0_44 = arith.constant 0 : index
      %92 = vector.load %arg13[%c0_43, %c0_44] : memref<128x32xf32, #tpu.memory_space<vmem>>, vector<128x32xf32>
      tpu.vector_store %arg13[%c0_43, %c0_44], %91 {strides = array<i32>} : memref<128x32xf32, #tpu.memory_space<vmem>>, vector<128x32xf32>,
    } else {
    }
    %c0 = arith.constant 0 : index
    %c0_1 = arith.constant 0 : index
    %3 = vector.load %arg12[%c0, %c0_1] : memref<128x32xf32, #tpu.memory_space<vmem>>, vector<128x32xf32>
    %4 = arith.truncf %3 : vector<128x32xf32> to vector<128x32xbf16>
    %c0_2 = arith.constant 0 : index
    %c0_3 = arith.constant 0 : index
    %5 = vector.load %arg7[%c0_2, %c0_3] : memref<32x64xbf16, #tpu.memory_space<vmem>>, vector<32x64xbf16>
    %cst = arith.constant dense<0.000000e+00> : vector<128x64xf32>
    %6 = tpu.matmul %4, %5, %cst {dimension_numbers = #tpu.dot_dimension_numbers<[1], [0], [0], [1], [0, 0, 1, 1], [], []>} : vector<128x32xbf16>, vector<32x64xbf16>, vector<128x64xf32> -> vector<128x64xf32>
    %c0_4 = arith.constant 0 : index
    %c0_5 = arith.constant 0 : index
    %7 = vector.load %arg8[%c0_4, %c0_5] : memref<1x64xf32, #tpu.memory_space<vmem>>, vector<1x64xf32>
    %8 = vector.broadcast %7 : vector<1x64xf32> to vector<128x64xf32>
    %9 = arith.addf %6, %8 : vector<128x64xf32>
    %10 = arith.mulf %9, %9 : vector<128x64xf32>
    %11 = arith.mulf %9, %10 : vector<128x64xf32>
    %cst_6 = arith.constant 4.471500e-02 : f32
    %12 = vector.broadcast %cst_6 : f32 to vector<128x64xf32>
    %13 = arith.mulf %12, %11 : vector<128x64xf32>
    %14 = arith.addf %9, %13 : vector<128x64xf32>
    %cst_7 = arith.constant 0.797884583 : f32
    %15 = vector.broadcast %cst_7 : f32 to vector<128x64xf32>
    %16 = arith.mulf %15, %14 : vector<128x64xf32>
    %17 = math.tanh %16 : vector<128x64xf32>
    %cst_8 = arith.constant 1.000000e+00 : f32
    %18 = vector.broadcast %cst_8 : f32 to vector<128x64xf32>
    %19 = arith.addf %18, %17 : vector<128x64xf32>
    %cst_9 = arith.constant 5.000000e-01 : f32
    %20 = vector.broadcast %cst_9 : f32 to vector<128x64xf32>
    %21 = arith.mulf %20, %19 : vector<128x64xf32>
    %22 = arith.mulf %9, %21 : vector<128x64xf32>
    %c0_10 = arith.constant 0 : index
    %c0_11 = arith.constant 0 : index
    %23 = vector.load %arg13[%c0_10, %c0_11] : memref<128x32xf32, #tpu.memory_space<vmem>>, vector<128x32xf32>
    %24 = arith.truncf %22 : vector<128x64xf32> to vector<128x64xbf16>
    %c0_12 = arith.constant 0 : index
    %c0_13 = arith.constant 0 : index
    %25 = vector.load %arg9[%c0_12, %c0_13] : memref<64x32xbf16, #tpu.memory_space<vmem>>, vector<64x32xbf16>
    %cst_14 = arith.constant dense<0.000000e+00> : vector<128x32xf32>
    %26 = tpu.matmul %24, %25, %cst_14 {dimension_numbers = #tpu.dot_dimension_numbers<[1], [0], [0], [1], [0, 0, 1, 1], [], []>} : vector<128x64xbf16>, vector<64x32xbf16>, vector<128x32xf32> -> vector<128x32xf32>
    %27 = arith.addf %23, %26 : vector<128x32xf32>
    %c0_15 = arith.constant 0 : index
    %c0_16 = arith.constant 0 : index
    %28 = vector.load %arg13[%c0_15, %c0_16] : memref<128x32xf32, #tpu.memory_space<vmem>>, vector<128x32xf32>
    tpu.vector_store %arg13[%c0_15, %c0_16], %27 {strides = array<i32>} : memref<128x32xf32, #tpu.memory_space<vmem>>, vector<128x32xf32>,
    %c0_i32_17 = arith.constant 0 : i32
    %29 = arith.cmpi eq, %arg1, %c0_i32_17 : i32
    %30 = arith.extui %29 : i1 to i32
    %c0_i32_18 = arith.constant 0 : i32
    %31 = arith.cmpi ne, %30, %c0_i32_18 : i32
    scf.if %31 {
      %c0_19 = arith.constant 0 : index
      %c0_20 = arith.constant 0 : index
      %32 = vector.load %arg12[%c0_19, %c0_20] : memref<128x32xf32, #tpu.memory_space<vmem>>, vector<128x32xf32>
      %c0_21 = arith.constant 0 : index
      %c0_22 = arith.constant 0 : index
      %33 = vector.load %arg13[%c0_21, %c0_22] : memref<128x32xf32, #tpu.memory_space<vmem>>, vector<128x32xf32>
      %34 = arith.addf %32, %33 : vector<128x32xf32>
      %c0_23 = arith.constant 0 : index
      %c0_24 = arith.constant 0 : index
      %35 = vector.load %arg10[%c0_23, %c0_24] : memref<1x32xf32, #tpu.memory_space<vmem>>, vector<1x32xf32>
      %36 = vector.broadcast %35 : vector<1x32xf32> to vector<128x32xf32>
      %37 = arith.addf %34, %36 : vector<128x32xf32>
      %38 = vector.shape_cast %37 : vector<128x32xf32> to vector<8x16x32xf32>
      %39 = arith.truncf %38 : vector<8x16x32xf32> to vector<8x16x32xbf16>
      %c0_25 = arith.constant 0 : index
      %c0_26 = arith.constant 0 : index
      %c0_27 = arith.constant 0 : index
      %40 = vector.load %arg11[%c0_25, %c0_26, %c0_27] : memref<8x16x32xbf16, #tpu.memory_space<vmem>>, vector<8x16x32xbf16>
      tpu.vector_store %arg11[%c0_25, %c0_26, %c0_27], %39 {strides = array<i32>} : memref<8x16x32xbf16, #tpu.memory_space<vmem>>, vector<8x16x32xbf16>,
    } else {
    }
    return
  }
  func.func @transform_0(%arg0: i32, %arg1: i32) -> (i32, i32, i32) {
    %c0_i32 = arith.constant 0 : i32
    %c0_i32_0 = arith.constant 0 : i32
    %c0_i32_1 = arith.constant 0 : i32
    return %arg0, %c0_i32, %c0_i32_0 : i32, i32, i32
  }
  func.func @transform_1(%arg0: i32, %arg1: i32) -> (i32, i32) {
    %c0_i32 = arith.constant 0 : i32
    %c0_i32_0 = arith.constant 0 : i32
    %c0_i32_1 = arith.constant 0 : i32
    return %c0_i32, %c0_i32_0 : i32, i32
  }
  func.func @transform_2(%arg0: i32, %arg1: i32) -> (i32, i32) {
    %c0_i32 = arith.constant 0 : i32
    %c0_i32_0 = arith.constant 0 : i32
    %c0_i32_1 = arith.constant 0 : i32
    return %c0_i32, %c0_i32_0 : i32, i32
  }
  func.func @transform_3(%arg0: i32, %arg1: i32) -> (i32, i32) {
    %c0_i32 = arith.constant 0 : i32
    %c0_i32_0 = arith.constant 0 : i32
    %c0_i32_1 = arith.constant 0 : i32
    return %c0_i32, %c0_i32_0 : i32, i32
  }
  func.func @transform_4(%arg0: i32, %arg1: i32) -> (i32, i32) {
    %c0_i32 = arith.constant 0 : i32
    %c0_i32_0 = arith.constant 0 : i32
    %c0_i32_1 = arith.constant 0 : i32
    return %c0_i32, %c0_i32_0 : i32, i32
  }
  func.func @transform_5(%arg0: i32, %arg1: i32) -> (i32, i32) {
    %c0_i32 = arith.constant 0 : i32
    %c0_i32_0 = arith.constant 0 : i32
    return %c0_i32, %arg1 : i32, i32
  }
  func.func @transform_6(%arg0: i32, %arg1: i32) -> (i32, i32) {
    %c0_i32 = arith.constant 0 : i32
    %c0_i32_0 = arith.constant 0 : i32
    return %c0_i32, %arg1 : i32, i32
  }
  func.func @transform_7(%arg0: i32, %arg1: i32) -> (i32, i32) {
    %c0_i32 = arith.constant 0 : i32
    %c0_i32_0 = arith.constant 0 : i32
    return %arg1, %c0_i32 : i32, i32
  }
  func.func @transform_8(%arg0: i32, %arg1: i32) -> (i32, i32) {
    %c0_i32 = arith.constant 0 : i32
    %c0_i32_0 = arith.constant 0 : i32
    %c0_i32_1 = arith.constant 0 : i32
    return %c0_i32, %c0_i32_0 : i32, i32
  }
  func.func @transform_9(%arg0: i32, %arg1: i32) -> (i32, i32, i32) {
    %c0_i32 = arith.constant 0 : i32
    %c0_i32_0 = arith.constant 0 : i32
    %c0_i32_1 = arith.constant 0 : i32
    return %arg0, %c0_i32, %c0_i32_0 : i32, i32, i32
  }
}

module attributes {stable_mosaic.version = 11 : i64} {
  func.func @_fused_grid_attn_ffn_kernel(%arg0: i32, %arg1: i32, %arg2: memref<8x16x32xbf16, #tpu.memory_space<vmem>>, %arg3: memref<32x96xbf16, #tpu.memory_space<vmem>>, %arg4: memref<1x96xf32, #tpu.memory_space<vmem>>, %arg5: memref<32x32xbf16, #tpu.memory_space<vmem>>, %arg6: memref<1x32xf32, #tpu.memory_space<vmem>>, %arg7: memref<32x64xbf16, #tpu.memory_space<vmem>>, %arg8: memref<1x64xf32, #tpu.memory_space<vmem>>, %arg9: memref<64x32xbf16, #tpu.memory_space<vmem>>, %arg10: memref<1x32xf32, #tpu.memory_space<vmem>>, %arg11: memref<8x16x32xbf16, #tpu.memory_space<vmem>>, %arg12: memref<128x32xf32, #tpu.memory_space<vmem>>, %arg13: memref<128x32xf32, #tpu.memory_space<vmem>>) attributes {dimension_semantics = [#tpu.dimension_semantics<parallel>, #tpu.dimension_semantics<arbitrary>], iteration_bounds = array<i64: 4, 1>, scalar_prefetch = 0 : i64, scratch_operands = 2 : i64, tpu.core_type = #tpu.core_type<tc>, window_params = [{transform_indices = @transform_0, window_bounds = array<i64: 8, 16, 32>}, {pipeline_mode = #tpu.pipeline_mode<synchronous>, transform_indices = @transform_1, window_bounds = array<i64: 32, 96>}, {pipeline_mode = #tpu.pipeline_mode<synchronous>, transform_indices = @transform_2, window_bounds = array<i64: 1, 96>}, {pipeline_mode = #tpu.pipeline_mode<synchronous>, transform_indices = @transform_3, window_bounds = array<i64: 32, 32>}, {pipeline_mode = #tpu.pipeline_mode<synchronous>, transform_indices = @transform_4, window_bounds = array<i64: 1, 32>}, {transform_indices = @transform_5, window_bounds = array<i64: 32, 64>}, {transform_indices = @transform_6, window_bounds = array<i64: 1, 64>}, {transform_indices = @transform_7, window_bounds = array<i64: 64, 32>}, {pipeline_mode = #tpu.pipeline_mode<synchronous>, transform_indices = @transform_8, window_bounds = array<i64: 1, 32>}, {transform_indices = @transform_9, window_bounds = array<i64: 8, 16, 32>}]} {
    %c0_i32 = arith.constant 0 : i32
    %0 = arith.cmpi eq, %arg1, %c0_i32 : i32
    %1 = arith.extui %0 : i1 to i32
    %c0_i32_0 = arith.constant 0 : i32
    %2 = arith.cmpi ne, %1, %c0_i32_0 : i32
    scf.if %2 {
      %c0_19 = arith.constant 0 : index
      %c0_20 = arith.constant 0 : index
      %c0_21 = arith.constant 0 : index
      %32 = vector.load %arg2[%c0_19, %c0_20, %c0_21] : memref<8x16x32xbf16, #tpu.memory_space<vmem>>, vector<8x16x32xbf16>
      %33 = vector.shape_cast %32 : vector<8x16x32xbf16> to vector<128x32xbf16>
      %c0_22 = arith.constant 0 : index
      %c0_23 = arith.constant 0 : index
      %34 = vector.load %arg3[%c0_22, %c0_23] : memref<32x96xbf16, #tpu.memory_space<vmem>>, vector<32x96xbf16>
      %cst_24 = arith.constant dense<0.000000e+00> : vector<128x96xf32>
      %35 = tpu.matmul %33, %34, %cst_24 {dimension_numbers = #tpu.dot_dimension_numbers<[1], [0], [0], [1], [0, 0, 1, 1], [], []>} : vector<128x32xbf16>, vector<32x96xbf16>, vector<128x96xf32> -> vector<128x96xf32>
      %c0_25 = arith.constant 0 : index
      %c0_26 = arith.constant 0 : index
      %36 = vector.load %arg4[%c0_25, %c0_26] : memref<1x96xf32, #tpu.memory_space<vmem>>, vector<1x96xf32>
      %37 = vector.broadcast %36 : vector<1x96xf32> to vector<128x96xf32>
      %38 = arith.addf %35, %37 : vector<128x96xf32>
      %39 = vector.extract_strided_slice %38 {offsets = [0, 0], sizes = [128, 32], strides = [1, 1]} : vector<128x96xf32> to vector<128x32xf32>
      %40 = arith.truncf %39 : vector<128x32xf32> to vector<128x32xbf16>
      %41 = vector.shape_cast %40 : vector<128x32xbf16> to vector<8x16x32xbf16>
      %42 = vector.extract_strided_slice %38 {offsets = [0, 32], sizes = [128, 32], strides = [1, 1]} : vector<128x96xf32> to vector<128x32xf32>
      %43 = arith.truncf %42 : vector<128x32xf32> to vector<128x32xbf16>
      %44 = vector.shape_cast %43 : vector<128x32xbf16> to vector<8x16x32xbf16>
      %45 = vector.extract_strided_slice %38 {offsets = [0, 64], sizes = [128, 32], strides = [1, 1]} : vector<128x96xf32> to vector<128x32xf32>
      %46 = arith.truncf %45 : vector<128x32xf32> to vector<128x32xbf16>
      %47 = vector.shape_cast %46 : vector<128x32xbf16> to vector<8x16x32xbf16>
      %48 = vector.extract_strided_slice %41 {offsets = [0, 0, 0], sizes = [8, 16, 16], strides = [1, 1, 1]} : vector<8x16x32xbf16> to vector<8x16x16xbf16>
      %49 = vector.extract_strided_slice %44 {offsets = [0, 0, 0], sizes = [8, 16, 16], strides = [1, 1, 1]} : vector<8x16x32xbf16> to vector<8x16x16xbf16>
      %50 = vector.extract_strided_slice %47 {offsets = [0, 0, 0], sizes = [8, 16, 16], strides = [1, 1, 1]} : vector<8x16x32xbf16> to vector<8x16x16xbf16>
      "tpu.trace_start"() <{level = 10 : i32, message = "bqd,bkd->bqk"}> : () -> ()
      %cst_27 = arith.constant dense<0.000000e+00> : vector<8x16x16xf32>
      %51 = tpu.matmul %48, %49, %cst_27 {dimension_numbers = #tpu.dot_dimension_numbers<[2], [2], [1], [1], [0, 0, 0, 1, 1, 1], [0], [0]>} : vector<8x16x16xbf16>, vector<8x16x16xbf16>, vector<8x16x16xf32> -> vector<8x16x16xf32>
      "tpu.trace_stop"() : () -> ()
      %cst_28 = arith.constant dense<0xFF800000> : vector<8x16xf32>
      %52 = vector.multi_reduction <maximumf>, %51, %cst_28 [2] : vector<8x16x16xf32> to vector<8x16xf32>
      %53 = vector.shape_cast %52 : vector<8x16xf32> to vector<8x16x1xf32>
      %54 = vector.broadcast %53 : vector<8x16x1xf32> to vector<8x16x16xf32>
      %55 = arith.subf %51, %54 : vector<8x16x16xf32>
      %56 = math.exp %55 : vector<8x16x16xf32>
      %cst_29 = arith.constant dense<0.000000e+00> : vector<8x16xf32>
      %57 = vector.multi_reduction <add>, %56, %cst_29 [2] : vector<8x16x16xf32> to vector<8x16xf32>
      %58 = vector.shape_cast %57 : vector<8x16xf32> to vector<8x16x1xf32>
      %59 = tpu.reciprocal %58 {approx = true} : vector<8x16x1xf32> -> vector<8x16x1xf32>
      %60 = vector.broadcast %59 : vector<8x16x1xf32> to vector<8x16x16xf32>
      %61 = arith.mulf %56, %60 : vector<8x16x16xf32>
      %62 = arith.truncf %61 : vector<8x16x16xf32> to vector<8x16x16xbf16>
      "tpu.trace_start"() <{level = 10 : i32, message = "bqk,bkd->bqd"}> : () -> ()
      %cst_30 = arith.constant dense<0.000000e+00> : vector<8x16x16xf32>
      %63 = tpu.matmul %62, %50, %cst_30 {dimension_numbers = #tpu.dot_dimension_numbers<[2], [1], [1], [2], [0, 0, 0, 1, 1, 2], [0], [0]>} : vector<8x16x16xbf16>, vector<8x16x16xbf16>, vector<8x16x16xf32> -> vector<8x16x16xf32>
      "tpu.trace_stop"() : () -> ()
      %64 = vector.extract_strided_slice %41 {offsets = [0, 0, 16], sizes = [8, 16, 16], strides = [1, 1, 1]} : vector<8x16x32xbf16> to vector<8x16x16xbf16>
      %65 = vector.extract_strided_slice %44 {offsets = [0, 0, 16], sizes = [8, 16, 16], strides = [1, 1, 1]} : vector<8x16x32xbf16> to vector<8x16x16xbf16>
      %66 = vector.extract_strided_slice %47 {offsets = [0, 0, 16], sizes = [8, 16, 16], strides = [1, 1, 1]} : vector<8x16x32xbf16> to vector<8x16x16xbf16>
      "tpu.trace_start"() <{level = 10 : i32, message = "bqd,bkd->bqk"}> : () -> ()
      %cst_31 = arith.constant dense<0.000000e+00> : vector<8x16x16xf32>
      %67 = tpu.matmul %64, %65, %cst_31 {dimension_numbers = #tpu.dot_dimension_numbers<[2], [2], [1], [1], [0, 0, 0, 1, 1, 1], [0], [0]>} : vector<8x16x16xbf16>, vector<8x16x16xbf16>, vector<8x16x16xf32> -> vector<8x16x16xf32>
      "tpu.trace_stop"() : () -> ()
      %cst_32 = arith.constant dense<0xFF800000> : vector<8x16xf32>
      %68 = vector.multi_reduction <maximumf>, %67, %cst_32 [2] : vector<8x16x16xf32> to vector<8x16xf32>
      %69 = vector.shape_cast %68 : vector<8x16xf32> to vector<8x16x1xf32>
      %70 = vector.broadcast %69 : vector<8x16x1xf32> to vector<8x16x16xf32>
      %71 = arith.subf %67, %70 : vector<8x16x16xf32>
      %72 = math.exp %71 : vector<8x16x16xf32>
      %cst_33 = arith.constant dense<0.000000e+00> : vector<8x16xf32>
      %73 = vector.multi_reduction <add>, %72, %cst_33 [2] : vector<8x16x16xf32> to vector<8x16xf32>
      %74 = vector.shape_cast %73 : vector<8x16xf32> to vector<8x16x1xf32>
      %75 = tpu.reciprocal %74 {approx = true} : vector<8x16x1xf32> -> vector<8x16x1xf32>
      %76 = vector.broadcast %75 : vector<8x16x1xf32> to vector<8x16x16xf32>
      %77 = arith.mulf %72, %76 : vector<8x16x16xf32>
      %78 = arith.truncf %77 : vector<8x16x16xf32> to vector<8x16x16xbf16>
      "tpu.trace_start"() <{level = 10 : i32, message = "bqk,bkd->bqd"}> : () -> ()
      %cst_34 = arith.constant dense<0.000000e+00> : vector<8x16x16xf32>
      %79 = tpu.matmul %78, %66, %cst_34 {dimension_numbers = #tpu.dot_dimension_numbers<[2], [1], [1], [2], [0, 0, 0, 1, 1, 2], [0], [0]>} : vector<8x16x16xbf16>, vector<8x16x16xbf16>, vector<8x16x16xf32> -> vector<8x16x16xf32>
      "tpu.trace_stop"() : () -> ()
      %80 = tpu.concatenate %63, %79 in 2 : vector<8x16x16xf32>, vector<8x16x16xf32> -> vector<8x16x32xf32>
      %81 = arith.truncf %80 : vector<8x16x32xf32> to vector<8x16x32xbf16>
      %82 = vector.shape_cast %81 : vector<8x16x32xbf16> to vector<128x32xbf16>
      %c0_35 = arith.constant 0 : index
      %c0_36 = arith.constant 0 : index
      %83 = vector.load %arg5[%c0_35, %c0_36] : memref<32x32xbf16, #tpu.memory_space<vmem>>, vector<32x32xbf16>
      %cst_37 = arith.constant dense<0.000000e+00> : vector<128x32xf32>
      %84 = tpu.matmul %82, %83, %cst_37 {dimension_numbers = #tpu.dot_dimension_numbers<[1], [0], [0], [1], [0, 0, 1, 1], [], []>} : vector<128x32xbf16>, vector<32x32xbf16>, vector<128x32xf32> -> vector<128x32xf32>
      %c0_38 = arith.constant 0 : index
      %c0_39 = arith.constant 0 : index
      %85 = vector.load %arg6[%c0_38, %c0_39] : memref<1x32xf32, #tpu.memory_space<vmem>>, vector<1x32xf32>
      %86 = vector.broadcast %85 : vector<1x32xf32> to vector<128x32xf32>
      %87 = arith.addf %84, %86 : vector<128x32xf32>
      %88 = arith.extf %33 : vector<128x32xbf16> to vector<128x32xf32>
      %89 = arith.addf %88, %87 : vector<128x32xf32>
      %c0_40 = arith.constant 0 : index
      %c0_41 = arith.constant 0 : index
      %90 = vector.load %arg12[%c0_40, %c0_41] : memref<128x32xf32, #tpu.memory_space<vmem>>, vector<128x32xf32>
      tpu.vector_store %arg12[%c0_40, %c0_41], %89 {strides = array<i32>} : memref<128x32xf32, #tpu.memory_space<vmem>>, vector<128x32xf32>,
      %cst_42 = arith.constant 0.000000e+00 : f32
      %91 = vector.broadcast %cst_42 : f32 to vector<128x32xf32>
      %c0_43 = arith.constant 0 : index
      %c0_44 = arith.constant 0 : index
      %92 = vector.load %arg13[%c0_43, %c0_44] : memref<128x32xf32, #tpu.memory_space<vmem>>, vector<128x32xf32>
      tpu.vector_store %arg13[%c0_43, %c0_44], %91 {strides = array<i32>} : memref<128x32xf32, #tpu.memory_space<vmem>>, vector<128x32xf32>,
    } else {
    }
    %c0 = arith.constant 0 : index
    %c0_1 = arith.constant 0 : index
    %3 = vector.load %arg12[%c0, %c0_1] : memref<128x32xf32, #tpu.memory_space<vmem>>, vector<128x32xf32>
    %4 = arith.truncf %3 : vector<128x32xf32> to vector<128x32xbf16>
    %c0_2 = arith.constant 0 : index
    %c0_3 = arith.constant 0 : index
    %5 = vector.load %arg7[%c0_2, %c0_3] : memref<32x64xbf16, #tpu.memory_space<vmem>>, vector<32x64xbf16>
    %cst = arith.constant dense<0.000000e+00> : vector<128x64xf32>
    %6 = tpu.matmul %4, %5, %cst {dimension_numbers = #tpu.dot_dimension_numbers<[1], [0], [0], [1], [0, 0, 1, 1], [], []>} : vector<128x32xbf16>, vector<32x64xbf16>, vector<128x64xf32> -> vector<128x64xf32>
    %c0_4 = arith.constant 0 : index
    %c0_5 = arith.constant 0 : index
    %7 = vector.load %arg8[%c0_4, %c0_5] : memref<1x64xf32, #tpu.memory_space<vmem>>, vector<1x64xf32>
    %8 = vector.broadcast %7 : vector<1x64xf32> to vector<128x64xf32>
    %9 = arith.addf %6, %8 : vector<128x64xf32>
    %10 = arith.mulf %9, %9 : vector<128x64xf32>
    %11 = arith.mulf %9, %10 : vector<128x64xf32>
    %cst_6 = arith.constant 4.471500e-02 : f32
    %12 = vector.broadcast %cst_6 : f32 to vector<128x64xf32>
    %13 = arith.mulf %12, %11 : vector<128x64xf32>
    %14 = arith.addf %9, %13 : vector<128x64xf32>
    %cst_7 = arith.constant 0.797884583 : f32
    %15 = vector.broadcast %cst_7 : f32 to vector<128x64xf32>
    %16 = arith.mulf %15, %14 : vector<128x64xf32>
    %17 = math.tanh %16 : vector<128x64xf32>
    %cst_8 = arith.constant 1.000000e+00 : f32
    %18 = vector.broadcast %cst_8 : f32 to vector<128x64xf32>
    %19 = arith.addf %18, %17 : vector<128x64xf32>
    %cst_9 = arith.constant 5.000000e-01 : f32
    %20 = vector.broadcast %cst_9 : f32 to vector<128x64xf32>
    %21 = arith.mulf %20, %19 : vector<128x64xf32>
    %22 = arith.mulf %9, %21 : vector<128x64xf32>
    %c0_10 = arith.constant 0 : index
    %c0_11 = arith.constant 0 : index
    %23 = vector.load %arg13[%c0_10, %c0_11] : memref<128x32xf32, #tpu.memory_space<vmem>>, vector<128x32xf32>
    %24 = arith.truncf %22 : vector<128x64xf32> to vector<128x64xbf16>
    %c0_12 = arith.constant 0 : index
    %c0_13 = arith.constant 0 : index
    %25 = vector.load %arg9[%c0_12, %c0_13] : memref<64x32xbf16, #tpu.memory_space<vmem>>, vector<64x32xbf16>
    %cst_14 = arith.constant dense<0.000000e+00> : vector<128x32xf32>
    %26 = tpu.matmul %24, %25, %cst_14 {dimension_numbers = #tpu.dot_dimension_numbers<[1], [0], [0], [1], [0, 0, 1, 1], [], []>} : vector<128x64xbf16>, vector<64x32xbf16>, vector<128x32xf32> -> vector<128x32xf32>
    %27 = arith.addf %23, %26 : vector<128x32xf32>
    %c0_15 = arith.constant 0 : index
    %c0_16 = arith.constant 0 : index
    %28 = vector.load %arg13[%c0_15, %c0_16] : memref<128x32xf32, #tpu.memory_space<vmem>>, vector<128x32xf32>
    tpu.vector_store %arg13[%c0_15, %c0_16], %27 {strides = array<i32>} : memref<128x32xf32, #tpu.memory_space<vmem>>, vector<128x32xf32>,
    %c0_i32_17 = arith.constant 0 : i32
    %29 = arith.cmpi eq, %arg1, %c0_i32_17 : i32
    %30 = arith.extui %29 : i1 to i32
    %c0_i32_18 = arith.constant 0 : i32
    %31 = arith.cmpi ne, %30, %c0_i32_18 : i32
    scf.if %31 {
      %c0_19 = arith.constant 0 : index
      %c0_20 = arith.constant 0 : index
      %32 = vector.load %arg12[%c0_19, %c0_20] : memref<128x32xf32, #tpu.memory_space<vmem>>, vector<128x32xf32>
      %c0_21 = arith.constant 0 : index
      %c0_22 = arith.constant 0 : index
      %33 = vector.load %arg13[%c0_21, %c0_22] : memref<128x32xf32, #tpu.memory_space<vmem>>, vector<128x32xf32>
      %34 = arith.addf %32, %33 : vector<128x32xf32>
      %c0_23 = arith.constant 0 : index
      %c0_24 = arith.constant 0 : index
      %35 = vector.load %arg10[%c0_23, %c0_24] : memref<1x32xf32, #tpu.memory_space<vmem>>, vector<1x32xf32>
      %36 = vector.broadcast %35 : vector<1x32xf32> to vector<128x32xf32>
      %37 = arith.addf %34, %36 : vector<128x32xf32>
      %38 = vector.shape_cast %37 : vector<128x32xf32> to vector<8x16x32xf32>
      %39 = arith.truncf %38 : vector<8x16x32xf32> to vector<8x16x32xbf16>
      %c0_25 = arith.constant 0 : index
      %c0_26 = arith.constant 0 : index
      %c0_27 = arith.constant 0 : index
      %40 = vector.load %arg11[%c0_25, %c0_26, %c0_27] : memref<8x16x32xbf16, #tpu.memory_space<vmem>>, vector<8x16x32xbf16>
      tpu.vector_store %arg11[%c0_25, %c0_26, %c0_27], %39 {strides = array<i32>} : memref<8x16x32xbf16, #tpu.memory_space<vmem>>, vector<8x16x32xbf16>,
    } else {
    }
    return
  }
  func.func @transform_0(%arg0: i32, %arg1: i32) -> (i32, i32, i32) {
    %c0_i32 = arith.constant 0 : i32
    %c0_i32_0 = arith.constant 0 : i32
    %c0_i32_1 = arith.constant 0 : i32
    return %arg0, %c0_i32, %c0_i32_0 : i32, i32, i32
  }
  func.func @transform_1(%arg0: i32, %arg1: i32) -> (i32, i32) {
    %c0_i32 = arith.constant 0 : i32
    %c0_i32_0 = arith.constant 0 : i32
    %c0_i32_1 = arith.constant 0 : i32
    return %c0_i32, %c0_i32_0 : i32, i32
  }
  func.func @transform_2(%arg0: i32, %arg1: i32) -> (i32, i32) {
    %c0_i32 = arith.constant 0 : i32
    %c0_i32_0 = arith.constant 0 : i32
    %c0_i32_1 = arith.constant 0 : i32
    return %c0_i32, %c0_i32_0 : i32, i32
  }
  func.func @transform_3(%arg0: i32, %arg1: i32) -> (i32, i32) {
    %c0_i32 = arith.constant 0 : i32
    %c0_i32_0 = arith.constant 0 : i32
    %c0_i32_1 = arith.constant 0 : i32
    return %c0_i32, %c0_i32_0 : i32, i32
  }
  func.func @transform_4(%arg0: i32, %arg1: i32) -> (i32, i32) {
    %c0_i32 = arith.constant 0 : i32
    %c0_i32_0 = arith.constant 0 : i32
    %c0_i32_1 = arith.constant 0 : i32
    return %c0_i32, %c0_i32_0 : i32, i32
  }
  func.func @transform_5(%arg0: i32, %arg1: i32) -> (i32, i32) {
    %c0_i32 = arith.constant 0 : i32
    %c0_i32_0 = arith.constant 0 : i32
    return %c0_i32, %arg1 : i32, i32
  }
  func.func @transform_6(%arg0: i32, %arg1: i32) -> (i32, i32) {
    %c0_i32 = arith.constant 0 : i32
    %c0_i32_0 = arith.constant 0 : i32
    return %c0_i32, %arg1 : i32, i32
  }
  func.func @transform_7(%arg0: i32, %arg1: i32) -> (i32, i32) {
    %c0_i32 = arith.constant 0 : i32
    %c0_i32_0 = arith.constant 0 : i32
    return %arg1, %c0_i32 : i32, i32
  }
  func.func @transform_8(%arg0: i32, %arg1: i32) -> (i32, i32) {
    %c0_i32 = arith.constant 0 : i32
    %c0_i32_0 = arith.constant 0 : i32
    %c0_i32_1 = arith.constant 0 : i32
    return %c0_i32, %c0_i32_0 : i32, i32
  }
  func.func @transform_9(%arg0: i32, %arg1: i32) -> (i32, i32, i32) {
    %c0_i32 = arith.constant 0 : i32
    %c0_i32_0 = arith.constant 0 : i32
    %c0_i32_1 = arith.constant 0 : i32
    return %arg0, %c0_i32, %c0_i32_0 : i32, i32, i32
  }
}

</mosaic_0001>

<bundles_post_ra>
// kernel: adaptive_grid_attention_forward.1
= control target key start
LH: loop header
LB: loop body
LE: loop exit
PB: predicated region body
PF: predicated region fallthrough
CT: control target
= control target key end

     0   :  { %s4502_s30 = smov 0   ;;  %s4504_s10 = smov 0   ;;  %s5598_s0 = inlined_call_operand.vmem [shape: bf16[32,16,32], index: 0, kind: input, shape index: {}]   ;;  %s5599_s1 = inlined_call_operand.vmem [shape: bf16[32,96], index: 1, kind: input, shape index: {}]   ;;  %s5600_s2 = inlined_call_operand.vmem [shape: f32[1,96], index: 2, kind: input, shape index: {}]   ;;  %s5601_s3 = inlined_call_operand.vmem [shape: bf16[32,32], index: 3, kind: input, shape index: {}]   ;;  %s5602_s4 = inlined_call_operand.vmem [shape: f32[1,32], index: 4, kind: input, shape index: {}]   ;;  %s5603_s5 = inlined_call_operand.vmem [shape: bf16[32,64], index: 5, kind: input, shape index: {}]   ;;  %s5604_s6 = inlined_call_operand.vmem [shape: f32[1,64], index: 6, kind: input, shape index: {}]   ;;  %s5605_s7 = inlined_call_operand.vmem [shape: bf16[64,32], index: 7, kind: input, shape index: {}]   ;;  %s5606_s8 = inlined_call_operand.vmem [shape: f32[1,32], index: 8, kind: input, shape index: {}]   ;;  %s5607_s9 = inlined_call_operand.vmem [shape: bf16[32,16,32], index: 9, kind: output, shape index: {}]  }
   0x1   :  { %s4506_s11 = smov 0  }
   0x2 LB: > { %s31_s12 = sadd.s32 1, %s4438_s10  ;;  %p3639_p0 = scmp.ge.s32.totalorder %s4442_s11, 1  ;;  %s4442_s11 = sphi %s4506_s11, %s19_s11   ;;  %s4438_s10 = sphi %s4504_s10, %s5609_s10   ;;  %s4434_s30 = sphi %s4502_s30, %s5608_s30  }
   0x3   : > { %p33_p1 = scmp.ge.s32.totalorder %s31_s12, 4  ;;  %p329_p2 = scmp.lt.s32.totalorder %s4442_s11, 5 }
   0x5   : > { %s5611_s12 = smov (%p33_p1, %s31_s12), 0  ;;  %p330_p3 = pnand %p3639_p0, %p329_p2 }
   0x6   : > { %s3640_s15 = sshll.u32 (!%p330_p3), %s4434_s30, 3  ;;  %s4446_s24 = smov (!%p330_p3), 96  }
   0x7   : > { %333 = sbr.rel (%p330_p3) target bundleno = 2475 (0x9ab), region = 56  ;;  %p380_p4 = scmp.lt.s32.totalorder (!%p330_p3), %s3640_s15, 31 }
   0x8   : > { %s4447_s25 = smov (!%p330_p3), 64   ;;  %s4448_s26 = smov (!%p330_p3), 80  }
   0x9   : > { %s4449_s27 = smov (!%p330_p3), 112   ;;  %s4450_s28 = smov (!%p330_p3), 48  }
   0xa   : > { %s4451_s13 = smov (!%p330_p3), 16  }
   0xc   : > { %v4226_v0 = vld [vmem:[%s5599_s1 + $0x8] sm:$0xff]   ;;  %v4227_v1 = vld [vmem:[%s5599_s1] sm:$0xff]   ;;  %s5613_s15 = smov (!%p380_p4, %s3640_s15), 31  ;;  %vm490_vm0 = vcmask 261120   ;;  %v4444_v10 = vmov 0.0   ;;  %vm4445_vm1 = vmmov 0  }
   0xd   : > { %3874 = vmatprep.subr.bf16.mxu0 %v4226_v0  ;;  %4150 = vmatprep.subr.bf16.mxu1 %v4226_v0  ;;  %s3750_s18 = sshll.u32 %s5613_s15, 3  ;;  %2829 = vst.msk [vmem:[#allocation3] sm:$0xff] %vm490_vm0, %v4444_v10  ;;  %2830 = vst.msk [vmem:[#allocation3 + $0x8] sm:$0xff] %vm490_vm0, %v4444_v10  ;;  %v3646_v17 = vld [vmem:[%s5600_s2] ss:$0 sm:$0xff]  ;;  %vm623_vm2 = vcmask 130048  }
   0xe   : > { %3875 = vmatpush3.bf16.msra.mxu0 %v4226_v0  ;;  %4152 = vmatpush3.bf16.msra.mxu1 %v4226_v0  ;;  %s4534_s21 = scalar_lea.vmem %s5598_s0, %s3750_s18  ;;  %2831 = vst.msk [vmem:[#allocation3 + $0x10] sm:$0xff] %vm490_vm0, %v4444_v10  ;;  %2832 = vst.msk [vmem:[#allocation3 + $0x18] sm:$0xff] %vm490_vm0, %v4444_v10  ;;  %vm3214_vm3 = vcmask 523264   ;;  %s5516_s23 = scalar_lea.vmem %s5607_s9, %s3750_s18  ;;  %vm3506_vm4 = vcmask 257024  }
   0xf   : > { %3876 = vmatprep.subr.bf16.mxu0 %v4227_v1  ;;  %4151 = vmatprep.subr.bf16.mxu1 %v4227_v1  ;;  %v411_v2 = vld [vmem:[%s4534_s21] sm:$0xff]   ;;  %v413_v3 = vld [vmem:[%s4534_s21 + $0x8] sm:$0xff]   ;;  %v415_v6 = vld [vmem:[%s4534_s21 + $0x10] sm:$0xff]   ;;  %2833 = vst.msk [vmem:[#allocation3 + $0x20] sm:$0xff] %vm490_vm0, %v4444_v10 }
  0x10   : > { %v419_v4 = vld [vmem:[%s4534_s21 + $0x20] sm:$0xff]   ;;  %v421_v5 = vld [vmem:[%s4534_s21 + $0x28] sm:$0xff]   ;;  %v423_v7 = vld [vmem:[%s4534_s21 + $0x30] sm:$0xff]   ;;  %3878 = vmatprep.mubr.msk.bf16.mxu0 %vm490_vm0, %v411_v2  ;;  %2834 = vst.msk [vmem:[#allocation3 + $0x28] sm:$0xff] %vm490_vm0, %v4444_v10 }
  0x11   : > { %3886 = vmatprep.mubr.msk.bf16.mxu1 %vm490_vm0, %v419_v4  ;;  %v417_v8 = vld [vmem:[%s4534_s21 + $0x18] sm:$0xff]   ;;  %2835 = vst.msk [vmem:[#allocation3 + $0x30] sm:$0xff] %vm490_vm0, %v4444_v10  ;;  %2836 = vst.msk [vmem:[#allocation3 + $0x38] sm:$0xff] %vm490_vm0, %v4444_v10 }
  0x12   : > { %3877 = vmatpush3.bf16.msra.mxu0 %v4227_v1  ;;  %4153 = vmatpush3.bf16.msra.mxu1 %v4227_v1  ;;  %v425_v9 = vld [vmem:[%s4534_s21 + $0x38] sm:$0xff]   ;;  %2837 = vst.msk [vmem:[#allocation3 + $0x40] sm:$0xff] %vm490_vm0, %v4444_v10  ;;  %2838 = vst.msk [vmem:[#allocation3 + $0x48] sm:$0xff] %vm490_vm0, %v4444_v10 }
  0x13   : > { %3894 = vmatprep.subr.bf16.mxu1 %v4444_v10  ;;  %2839 = vst.msk [vmem:[#allocation3 + $0x50] sm:$0xff] %vm490_vm0, %v4444_v10  ;;  %2840 = vst.msk [vmem:[#allocation3 + $0x58] sm:$0xff] %vm490_vm0, %v4444_v10  ;;  %3918 = vmatprep.subr.bf16.mxu0 %v4444_v10 }
  0x14   : > { %2841 = vst.msk [vmem:[#allocation3 + $0x60] sm:$0xff] %vm490_vm0, %v4444_v10  ;;  %2842 = vst.msk [vmem:[#allocation3 + $0x68] sm:$0xff] %vm490_vm0, %v4444_v10 }
  0x15   : > { %3879 = vmatmul.mubr.msk.bf16.vlgmr.msra.gmra.mxu0 %vm490_vm0, %v413_v3  ;;  %3887 = vmatmul.mubr.msk.bf16.vlgmr.msra.gmra.mxu1 %vm490_vm0, %v421_v5  ;;  %2843 = vst.msk [vmem:[#allocation3 + $0x70] sm:$0xff] %vm490_vm0, %v4444_v10  ;;  %2844 = vst.msk [vmem:[#allocation3 + $0x78] sm:$0xff] %vm490_vm0, %v4444_v10 }
  0x16   : > { %3882 = vmatprep.mubr.msk.bf16.mxu0 %vm490_vm0, %v415_v6  ;;  %3890 = vmatprep.mubr.msk.bf16.mxu1 %vm490_vm0, %v423_v7 }
  0x1d   : > { %3883 = vmatmul.mubr.msk.bf16.gmra.mxu0 %vm490_vm0, %v417_v8  ;;  %3891 = vmatmul.mubr.msk.bf16.gmra.mxu1 %vm490_vm0, %v425_v9 }
  0x1e   : > { %3896 = vmatprep.mubr.msk.bf16.mxu1 %vm4445_vm1, %v4444_v10  ;;  %3920 = vmatprep.mubr.msk.bf16.mxu0 %vm4445_vm1, %v4444_v10 }
  0xd5   : > { %v3880_v11 = vpop.f32.mrf.mxu0  ;;  %v3888_v12 = vpop.f32.mrf.mxu1 }
  0xd6   : > { %v558_v27 = vadd.f32 %v3880_v11, %v3646_v17  ;;  %v590_v45 = vadd.f32 %v3888_v12, %v3646_v17 }
  0xd7   : > { %v549_v13 = vpop.f32.mrf.mxu0  ;;  %v581_v14 = vpop.f32.mrf.mxu1 }
  0xd8   : > { %v550_v19 = vadd.f32 %v3646_v17, %v549_v13  ;;  %v582_v31 = vadd.f32 %v3646_v17, %v581_v14 }
  0xd9   : > { %v3881_v15 = vpop.f32.mrf.mxu0  ;;  %v3889_v16 = vpop.f32.mrf.mxu1 }
  0xda   : > { %v561_v23 = vadd.f32 %v3881_v15, %v3646_v17  ;;  %v593_v46 = vadd.f32 %v3889_v16, %v3646_v17 }
  0xdb   : > { %v552_v18 = vpop.f32.mrf.mxu0  ;;  %v584_v21 = vpop.f32.mrf.mxu1 }
  0xdc   : > { %v553_v20 = vadd.f32 %v3646_v17, %v552_v18  ;;  %v4597_v30 = vpack.c.bf16 %v561_v23, %v558_v27  ;;  %v585_v32 = vadd.f32 %v3646_v17, %v584_v21  ;;  %v4617_v48 = vpack.c.bf16 %v593_v46, %v590_v45 }
  0xdd   : > { %v3884_v22 = vpop.f32.mrf.mxu0  ;;  %v3892_v25 = vpop.f32.mrf.mxu1 }
  0xde   : > { %v4593_v24 = vpack.c.bf16 %v553_v20, %v550_v19  ;;  %v574_v40 = vadd.f32 %v3884_v22, %v3646_v17  ;;  %v4601_v41 = vpack.c.bf16 %v585_v32, %v582_v31  ;;  %v606_v49 = vadd.f32 %v3892_v25, %v3646_v17 }
  0xdf   : > { %v565_v26 = vpop.f32.mrf.mxu0  ;;  %v597_v28 = vpop.f32.mrf.mxu1 }
  0xe0   : > { %621 = vrot.lane.b32.xlu0 %v4593_v24, %s4446_s24  ;;  %v566_v33 = vadd.f32 %v3646_v17, %v565_v26  ;;  %v598_v37 = vadd.f32 %v3646_v17, %v597_v28 }
  0xe1   : > { %v3885_v29 = vpop.f32.mrf.mxu0  ;;  %v3893_v34 = vpop.f32.mrf.mxu1 }
  0xe2   : > { %v577_v42 = vadd.f32 %v3885_v29, %v3646_v17  ;;  %v609_v50 = vadd.f32 %v3893_v34, %v3646_v17 }
  0xe3   : > { %v568_v35 = vpop.f32.mrf.mxu0  ;;  %v600_v38 = vpop.f32.mrf.mxu1 }
  0xe4   : > { %v569_v36 = vadd.f32 %v3646_v17, %v568_v35  ;;  %672 = vrot.lane.b32.xlu0 %v4597_v30, %s4446_s24  ;;  %v601_v39 = vadd.f32 %v3646_v17, %v600_v38  ;;  %v4611_v47 = vpack.c.bf16 %v577_v42, %v574_v40  ;;  %v4623_v51 = vpack.c.bf16 %v609_v50, %v606_v49 }
  0xe6   : > { %v4603_v43 = vpack.c.bf16 %v569_v36, %v566_v33  ;;  %v4605_v44 = vpack.c.bf16 %v601_v39, %v598_v37 }
  0xe8   : > { %722 = vrot.lane.b32.xlu1 %v4603_v43, %s4446_s24  ;;  %822 = vrot.lane.b32.xlu0 %v4601_v41, %s4446_s24 }
  0xec   : > { %772 = vrot.lane.b32.xlu1 %v4611_v47, %s4446_s24  ;;  %922 = vrot.lane.b32.xlu0 %v4605_v44, %s4446_s24 }
  0xf0   : > { %872 = vrot.lane.b32.xlu1 %v4617_v48, %s4446_s24  ;;  %1252 = vrot.lane.b32.xlu0 %v4597_v30, %s4447_s25 }
  0xf4   : > { %972 = vrot.lane.b32.xlu1 %v4623_v51, %s4446_s24 }
  0xf8   : > { %1205 = vrot.lane.b32.xlu1 %v4593_v24, %s4447_s25 }
  0xfc   : > { %1346 = vrot.lane.b32.xlu1 %v4611_v47, %s4447_s25 }
 0x100   : > { %1299 = vrot.lane.b32.xlu1 %v4603_v43, %s4447_s25 }
 0x152   : > { %v622_v52 = vpop.permute.xlu0 %621 }
 0x153   : > { %v628_v53 = vsel %vm623_vm2, %v622_v52, 0 }
 0x154   : > { %3895 = vmatpush3.bf16.xpose.msra.mxu1 %v628_v53 }
 0x155   : > { %3900 = vmatprep.subr.bf16.mxu1 %v4444_v10 }
 0x156   : > { %v673_v54 = vpop.permute.xlu0 %672 }
 0x157   : > { %v678_v57 = vsel %vm623_vm2, %v673_v54, 0 }
 0x15a   : > { %v723_v55 = vpop.permute.xlu1 %722  ;;  %v823_v56 = vpop.permute.xlu0 %822 }
 0x15b   : > { %v828_v58 = vsel %vm623_vm2, %v823_v56, 0  ;;  %3897 = vmatmul.mubr.msk.bf16.vlgmr.msra.gmra.mxu1 %vm623_vm2, %v4593_v24  ;;  %v728_v62 = vsel %vm623_vm2, %v723_v55, 0 }
 0x15c   : > { %3901 = vmatpush3.bf16.xpose.msra.mxu1 %v678_v57  ;;  %3919 = vmatpush3.bf16.xpose.msra.mxu0 %v828_v58 }
 0x15d   : > { %3902 = vmatprep.mubr.msk.bf16.mxu1 %vm4445_vm1, %v4444_v10  ;;  %3906 = vmatprep.subr.bf16.mxu1 %v4444_v10 }
 0x15e   : > { %v773_v59 = vpop.permute.xlu1 %772  ;;  %3930 = vmatprep.subr.bf16.mxu0 %v4444_v10  ;;  %v923_v60 = vpop.permute.xlu0 %922 }
 0x15f   : > { %v928_v63 = vsel %vm623_vm2, %v923_v60, 0  ;;  %v778_v2 = vsel %vm623_vm2, %v773_v59, 0 }
 0x162   : > { %v873_v61 = vpop.permute.xlu1 %872  ;;  %v1253_v5 = vpop.permute.xlu0 %1252 }
 0x163   : > { %3903 = vmatmul.mubr.msk.bf16.vlgmr.msra.gmra.mxu1 %vm623_vm2, %v4597_v30  ;;  %3921 = vmatmul.mubr.msk.bf16.vlgmr.msra.gmra.mxu0 %vm623_vm2, %v4601_v41  ;;  %v878_v3 = vsel %vm623_vm2, %v873_v61, 0 }
 0x164   : > { %3907 = vmatpush3.bf16.xpose.msra.mxu1 %v728_v62  ;;  %3931 = vmatpush3.bf16.xpose.msra.mxu0 %v928_v63 }
 0x165   : > { %3908 = vmatprep.mubr.msk.bf16.mxu1 %vm4445_vm1, %v4444_v10  ;;  %3932 = vmatprep.mubr.msk.bf16.mxu0 %vm4445_vm1, %v4444_v10 }
 0x166   : > { %v973_v0 = vpop.permute.xlu1 %972  ;;  %3912 = vmatprep.subr.bf16.mxu1 %v4444_v10  ;;  %3942 = vmatprep.subr.bf16.mxu0 %v4444_v10 }
 0x167   : > { %v978_v4 = vsel %vm623_vm2, %v973_v0, 0 }
 0x16a   : > { %v1206_v1 = vpop.permute.xlu1 %1205 }
 0x16b   : > { %3909 = vmatmul.mubr.msk.bf16.vlgmr.msra.gmra.mxu1 %vm623_vm2, %v4603_v43  ;;  %3933 = vmatmul.mubr.msk.bf16.vlgmr.msra.gmra.mxu0 %vm623_vm2, %v4605_v44 }
 0x16c   : > { %3913 = vmatpush3.bf16.xpose.msra.mxu1 %v778_v2  ;;  %3943 = vmatpush3.bf16.msra.mxu0 %v1206_v1 }
 0x16d   : > { %3914 = vmatprep.mubr.msk.bf16.mxu1 %vm4445_vm1, %v4444_v10  ;;  %3924 = vmatprep.subr.bf16.mxu1 %v4444_v10 }
 0x16e   : > { %3944 = vmatprep.mubr.msk.bf16.mxu0 %vm4445_vm1, %v4444_v10  ;;  %3954 = vmatprep.subr.bf16.mxu0 %v4444_v10  ;;  %v4751_v63 = vpop.permute.xlu1 %1346 }
 0x173   : > { %3915 = vmatmul.mubr.msk.bf16.vlgmr.msra.gmra.mxu1 %vm623_vm2, %v4611_v47 }
 0x174   : > { %3925 = vmatpush3.bf16.xpose.msra.mxu1 %v878_v3  ;;  %3926 = vmatprep.mubr.msk.bf16.mxu1 %vm4445_vm1, %v4444_v10  ;;  %v4754_v3 = vpop.permute.xlu1 %1299 }
 0x175   : > { %3936 = vmatprep.subr.bf16.mxu1 %v4444_v10 }
 0x17b   : > { %3927 = vmatmul.mubr.msk.bf16.vlgmr.msra.gmra.mxu1 %vm623_vm2, %v4617_v48 }
 0x17c   : > { %3937 = vmatpush3.bf16.xpose.msra.mxu1 %v978_v4  ;;  %3938 = vmatprep.mubr.msk.bf16.mxu1 %vm4445_vm1, %v4444_v10 }
 0x17d   : > { %3948 = vmatprep.subr.bf16.mxu1 %v4444_v10 }
 0x183   : > { %3939 = vmatmul.mubr.msk.bf16.vlgmr.msra.gmra.mxu1 %vm623_vm2, %v4623_v51 }
 0x184   : > { %3949 = vmatpush3.bf16.msra.mxu1 %v1253_v5  ;;  %3950 = vmatprep.mubr.msk.bf16.mxu1 %vm4445_vm1, %v4444_v10 }
 0x185   : > { %3960 = vmatprep.subr.bf16.mxu1 %v4444_v10 }
 0x21b   : > { %v4683_v6 = vpop.f32.mrf.mxu1 }
 0x21c   : > { %v1021_v7 = vsel %vm623_vm2, %v4683_v6, -inf }
 0x21d   : > { %1022 = vmax.xlane.f32.xlu0 %v1021_v7  ;;  %v3898_v8 = vpop.f32.mrf.mxu1 }
 0x21f   : > { %v4687_v9 = vpop.f32.mrf.mxu1 }
 0x220   : > { %v1024_v19 = vsel %vm623_vm2, %v4687_v9, -inf }
 0x221   : > { %v3899_v11 = vpop.f32.mrf.mxu1 }
 0x223   : > { %v4689_v12 = vpop.f32.mrf.mxu1  ;;  %v4691_v13 = vpop.f32.mrf.mxu0 }
 0x224   : > { %v1045_v14 = vsel %vm623_vm2, %v4691_v13, -inf  ;;  %v1027_v26 = vsel %vm623_vm2, %v4689_v12, -inf }
 0x225   : > { %v3904_v15 = vpop.f32.mrf.mxu1  ;;  %1046 = vmax.xlane.f32.xlu1 %v1045_v14  ;;  %v3922_v16 = vpop.f32.mrf.mxu0 }
 0x227   : > { %v4695_v17 = vpop.f32.mrf.mxu1  ;;  %v4697_v18 = vpop.f32.mrf.mxu0 }
 0x228   : > { %v1048_v20 = vsel %vm623_vm2, %v4697_v18, -inf  ;;  %v1030_v33 = vsel %vm623_vm2, %v4695_v17, -inf }
 0x229   : > { %v3905_v21 = vpop.f32.mrf.mxu1  ;;  %1025 = vmax.xlane.f32.xlu1 %v1024_v19  ;;  %1049 = vmax.xlane.f32.xlu0 %v1048_v20  ;;  %v3923_v22 = vpop.f32.mrf.mxu0 }
 0x22b   : > { %v4703_v23 = vpop.f32.mrf.mxu1  ;;  %v4705_v25 = vpop.f32.mrf.mxu0 }
 0x22c   : > { %v1057_v27 = vsel %vm623_vm2, %v4705_v25, -inf  ;;  %v1033_v34 = vsel %vm623_vm2, %v4703_v23, -inf }
 0x22d   : > { %v3910_v28 = vpop.f32.mrf.mxu1  ;;  %1028 = vmax.xlane.f32.xlu0 %v1027_v26  ;;  %1058 = vmax.xlane.f32.xlu1 %v1057_v27  ;;  %v3934_v29 = vpop.f32.mrf.mxu0 }
 0x22f   : > { %v4711_v31 = vpop.f32.mrf.mxu1  ;;  %v4713_v32 = vpop.f32.mrf.mxu0 }
 0x230   : > { %v1060_v39 = vsel %vm623_vm2, %v4713_v32, -inf  ;;  %v1036_v45 = vsel %vm623_vm2, %v4711_v31, -inf }
 0x231   : > { %v3911_v35 = vpop.f32.mrf.mxu1  ;;  %1031 = vmax.xlane.f32.xlu0 %v1030_v33  ;;  %1034 = vmax.xlane.f32.xlu1 %v1033_v34  ;;  %v3935_v36 = vpop.f32.mrf.mxu0 }
 0x233   : > { %v4719_v37 = vpop.f32.mrf.mxu1 }
 0x234   : > { %v1039_v38 = vsel %vm623_vm2, %v4719_v37, -inf }
 0x235   : > { %v3916_v40 = vpop.f32.mrf.mxu1  ;;  %1040 = vmax.xlane.f32.xlu1 %v1039_v38  ;;  %1061 = vmax.xlane.f32.xlu0 %v1060_v39 }
 0x237   : > { %v4725_v42 = vpop.f32.mrf.mxu1 }
 0x238   : > { %v1042_v52 = vsel %vm623_vm2, %v4725_v42, -inf }
 0x239   : > { %v3917_v46 = vpop.f32.mrf.mxu1  ;;  %1037 = vmax.xlane.f32.xlu0 %v1036_v45 }
 0x23b   : > { %v4729_v49 = vpop.f32.mrf.mxu1 }
 0x23c   : > { %v1051_v50 = vsel %vm623_vm2, %v4729_v49, -inf }
 0x23d   : > { %v3928_v53 = vpop.f32.mrf.mxu1  ;;  %1052 = vmax.xlane.f32.xlu1 %v1051_v50  ;;  %1043 = vmax.xlane.f32.xlu0 %v1042_v52 }
 0x23f   : > { %v4735_v54 = vpop.f32.mrf.mxu1 }
 0x240   : > { %v1054_v55 = vsel %vm623_vm2, %v4735_v54, -inf }
 0x241   : > { %v3929_v56 = vpop.f32.mrf.mxu1  ;;  %1055 = vmax.xlane.f32.xlu0 %v1054_v55 }
 0x243   : > { %v4739_v57 = vpop.f32.mrf.mxu1 }
 0x244   : > { %v1063_v58 = vsel %vm623_vm2, %v4739_v57, -inf }
 0x245   : > { %v3940_v59 = vpop.f32.mrf.mxu1  ;;  %1064 = vmax.xlane.f32.xlu1 %v1063_v58 }
 0x247   : > { %v4743_v60 = vpop.f32.mrf.mxu1 }
 0x248   : > { %v1066_v61 = vsel %vm623_vm2, %v4743_v60, -inf }
 0x249   : > { %v3941_v62 = vpop.f32.mrf.mxu1  ;;  %1067 = vmax.xlane.f32.xlu0 %v1066_v61 }
 0x256   : > { %1440 = vrot.lane.b32.xlu1 %v4617_v48, %s4447_s25 }
 0x25f   : > { %1393 = vrot.lane.b32.xlu0 %v4601_v41, %s4447_s25 }
 0x2a6   : > { %v1023_v0 = vpop.xlane.xlu0 %1022 }
 0x2a7   : > { %v1069_v1 = vsub.f32 %v4683_v6, %v1023_v0 }
 0x2a9   : > { %v1085_v2 = vmul.f32 1.442695, %v1069_v1 }
 0x2ab   : > { %4252 = vpow2.f32 %v1085_v2 }
 0x2ae   : > { %v1047_v4 = vpop.xlane.xlu1 %1046 }
 0x2af   : > { %v1077_v5 = vsub.f32 %v4691_v13, %v1047_v4 }
 0x2b1   : > { %v1101_v7 = vmul.f32 1.442695, %v1077_v5 }
 0x2b2   : > { %v1026_v8 = vpop.xlane.xlu1 %1025  ;;  %v1050_v11 = vpop.xlane.xlu0 %1049 }
 0x2b3   : > { %4254 = vpow2.f32 %v1101_v7  ;;  %v1070_v14 = vsub.f32 %v4687_v9, %v1026_v8  ;;  %v1078_v15 = vsub.f32 %v4697_v18, %v1050_v11 }
 0x2b5   : > { %v1087_v16 = vmul.f32 1.442695, %v1070_v14  ;;  %v1103_v19 = vmul.f32 1.442695, %v1078_v15 }
 0x2b6   : > { %v1059_v20 = vpop.xlane.xlu1 %1058  ;;  %v1029_v21 = vpop.xlane.xlu0 %1028 }
 0x2b7   : > { %4256 = vpow2.f32 %v1087_v16  ;;  %v1081_v6 = vsub.f32 %v4705_v25, %v1059_v20  ;;  %v1071_v22 = vsub.f32 %v4689_v12, %v1029_v21 }
 0x2b8   : > { %v4761_v26 = vpop.eup %4252  ;;  %4258 = vpow2.f32 %v1103_v19 }
 0x2b9   : > { %v1089_v13 = vmul.f32 1.442695, %v1071_v22  ;;  %v1117_v27 = vsel %vm623_vm2, %v4761_v26, 0.0  ;;  %v1109_v28 = vmul.f32 1.442695, %v1081_v6 }
 0x2ba   : > { %v1035_v9 = vpop.xlane.xlu1 %1034  ;;  %1118 = vadd.xlane.f32.xlu1 %v1117_v27  ;;  %v1032_v18 = vpop.xlane.xlu0 %1031 }
 0x2bb   : > { %v1073_v29 = vsub.f32 %v4703_v23, %v1035_v9  ;;  %v1072_v33 = vsub.f32 %v4695_v17, %v1032_v18  ;;  %4260 = vpow2.f32 %v1089_v13 }
 0x2bc   : > { %4262 = vpow2.f32 %v1109_v28 }
 0x2bd   : > { %v1091_v34 = vmul.f32 1.442695, %v1072_v33  ;;  %v1093_v25 = vmul.f32 1.442695, %v1073_v29 }
 0x2be   : > { %v1041_v12 = vpop.xlane.xlu1 %1040  ;;  %v1062_v35 = vpop.xlane.xlu0 %1061 }
 0x2bf   : > { %v1075_v36 = vsub.f32 %v4719_v37, %v1041_v12  ;;  %v1082_v38 = vsub.f32 %v4713_v32, %v1062_v35  ;;  %4264 = vpow2.f32 %v1091_v34 }
 0x2c0   : > { %v4769_v39 = vpop.eup %4254  ;;  %4266 = vpow2.f32 %v1093_v25 }
 0x2c1   : > { %v1111_v40 = vmul.f32 1.442695, %v1082_v38  ;;  %v1141_v45 = vsel %vm623_vm2, %v4769_v39, 0.0  ;;  %v1097_v23 = vmul.f32 1.442695, %v1075_v36 }
 0x2c2   : > { %1142 = vadd.xlane.f32.xlu1 %v1141_v45  ;;  %v1038_v17 = vpop.xlane.xlu0 %1037 }
 0x2c3   : > { %v1074_v46 = vsub.f32 %v4711_v31, %v1038_v17  ;;  %4268 = vpow2.f32 %v1111_v40 }
 0x2c4   : > { %v4774_v50 = vpop.eup %4256  ;;  %4270 = vpow2.f32 %v1097_v23 }
 0x2c5   : > { %v1095_v52 = vmul.f32 1.442695, %v1074_v46  ;;  %v1120_v32 = vsel %vm623_vm2, %v4774_v50, 0.0  ;;  %v4778_v37 = vpop.eup %4258 }
 0x2c6   : > { %v1053_v53 = vpop.xlane.xlu1 %1052  ;;  %1121 = vadd.xlane.f32.xlu0 %v1120_v32  ;;  %v1044_v55 = vpop.xlane.xlu0 %1043  ;;  %v1144_v62 = vsel %vm623_vm2, %v4778_v37, 0.0 }
 0x2c7   : > { %4272 = vpow2.f32 %v1095_v52  ;;  %v1079_v56 = vsub.f32 %v4729_v49, %v1053_v53  ;;  %v1076_v58 = vsub.f32 %v4725_v42, %v1044_v55 }
 0x2c8   : > { %v4782_v59 = vpop.eup %4260 }
 0x2c9   : > { %v1105_v31 = vmul.f32 1.442695, %v1079_v56  ;;  %v1099_v61 = vmul.f32 1.442695, %v1076_v58  ;;  %v1123_v0 = vsel %vm623_vm2, %v4782_v59, 0.0  ;;  %v4788_v2 = vpop.eup %4262 }
 0x2ca   : > { %1145 = vadd.xlane.f32.xlu0 %v1144_v62  ;;  %v1056_v1 = vpop.xlane.xlu0 %1055  ;;  %1124 = vadd.xlane.f32.xlu1 %v1123_v0  ;;  %v1153_v5 = vsel %vm623_vm2, %v4788_v2, 0.0 }
 0x2cb   : > { %4274 = vpow2.f32 %v1105_v31  ;;  %v1080_v49 = vsub.f32 %v4735_v54, %v1056_v1 }
 0x2cc   : > { %4276 = vpow2.f32 %v1099_v61  ;;  %v4791_v42 = vpop.eup %4264 }
 0x2cd   : > { %v1107_v4 = vmul.f32 1.442695, %v1080_v49  ;;  %v1126_v7 = vsel %vm623_vm2, %v4791_v42, 0.0  ;;  %v4797_v8 = vpop.eup %4266 }
 0x2ce   : > { %1154 = vadd.xlane.f32.xlu1 %v1153_v5  ;;  %1127 = vadd.xlane.f32.xlu0 %v1126_v7  ;;  %v1129_v54 = vsel %vm623_vm2, %v4797_v8, 0.0  ;;  %v1065_v9 = vpop.xlane.xlu1 %1064 }
 0x2cf   : > { %4278 = vpow2.f32 %v1107_v4  ;;  %v1083_v18 = vsub.f32 %v4739_v57, %v1065_v9 }
 0x2d0   : > { %v4799_v11 = vpop.eup %4268 }
 0x2d1   : > { %v1156_v14 = vsel %vm623_vm2, %v4799_v11, 0.0  ;;  %v4805_v15 = vpop.eup %4270  ;;  %v1113_v33 = vmul.f32 1.442695, %v1083_v18 }
 0x2d2   : > { %1130 = vadd.xlane.f32.xlu1 %v1129_v54  ;;  %1157 = vadd.xlane.f32.xlu0 %v1156_v14  ;;  %v1135_v20 = vsel %vm623_vm2, %v4805_v15, 0.0  ;;  %v1068_v29 = vpop.xlane.xlu0 %1067  ;;  %v4857_v57 = vpop.permute.xlu1 %1440 }
 0x2d3   : > { %v1084_v34 = vsub.f32 %v4743_v60, %v1068_v29  ;;  %4280 = vpow2.f32 %v1113_v33 }
 0x2d4   : > { %v4807_v16 = vpop.eup %4272 }
 0x2d5   : > { %v1132_v19 = vsel %vm623_vm2, %v4807_v16, 0.0  ;;  %v1115_v25 = vmul.f32 1.442695, %v1084_v34 }
 0x2d6   : > { %1136 = vadd.xlane.f32.xlu1 %v1135_v20  ;;  %1133 = vadd.xlane.f32.xlu0 %v1132_v19  ;;  %v1394_v60 = vpop.permute.xlu0 %1393 }
 0x2d7   : > { %4282 = vpow2.f32 %v1115_v25 }
 0x2d8   : > { %v4813_v21 = vpop.eup %4274 }
 0x2d9   : > { %v4815_v6 = vpop.eup %4276  ;;  %v1147_v22 = vsel %vm623_vm2, %v4813_v21, 0.0 }
 0x2da   : > { %v1138_v13 = vsel %vm623_vm2, %v4815_v6, 0.0  ;;  %1148 = vadd.xlane.f32.xlu1 %v1147_v22 }
 0x2db   : > { %1139 = vadd.xlane.f32.xlu0 %v1138_v13 }
 0x2dc   : > { %v4821_v27 = vpop.eup %4278 }
 0x2dd   : > { %v1150_v28 = vsel %vm623_vm2, %v4821_v27, 0.0 }
 0x2df   : > { %1151 = vadd.xlane.f32.xlu0 %v1150_v28 }
 0x2e0   : > { %v4831_v12 = vpop.eup %4280 }
 0x2e1   : > { %v1159_v35 = vsel %vm623_vm2, %v4831_v12, 0.0 }
 0x2e4   : > { %v4835_v36 = vpop.eup %4282 }
 0x2e5   : > { %v1162_v38 = vsel %vm623_vm2, %v4835_v36, 0.0 }
 0x2eb   : > { %1534 = vrot.lane.b32.xlu1 %v4623_v51, %s4447_s25 }
 0x2f5   : > { %1487 = vrot.lane.b32.xlu0 %v4605_v44, %s4447_s25 }
 0x30f   : > { %1160 = vadd.xlane.f32.xlu1 %v1159_v35 }
 0x314   : > { %1163 = vadd.xlane.f32.xlu0 %v1162_v38 }
 0x320   : > { %1634 = vrot.lane.b32.xlu1 %v4597_v30, %s4448_s26 }
 0x324   : > { %1685 = vrot.lane.b32.xlu1 %v4603_v43, %s4448_s26 }
 0x328   : > { %1736 = vrot.lane.b32.xlu1 %v4611_v47, %s4448_s26 }
 0x32a   : > { %1583 = vrot.lane.b32.xlu0 %v4593_v24, %s4448_s26 }
 0x32c   : > { %1787 = vrot.lane.b32.xlu1 %v4601_v41, %s4448_s26 }
 0x32e   : > { %1581 = vrot.lane.b32.xlu0 %v4593_v24, %s4449_s27 }
 0x330   : > { %1838 = vrot.lane.b32.xlu1 %v4617_v48, %s4448_s26 }
 0x332   : > { %1632 = vrot.lane.b32.xlu0 %v4597_v30, %s4449_s27 }
 0x334   : > { %1889 = vrot.lane.b32.xlu1 %v4605_v44, %s4448_s26 }
 0x336   : > { %1683 = vrot.lane.b32.xlu0 %v4603_v43, %s4449_s27 }
 0x338   : > { %1940 = vrot.lane.b32.xlu1 %v4623_v51, %s4448_s26 }
 0x33a   : > { %1734 = vrot.lane.b32.xlu0 %v4611_v47, %s4449_s27 }
 0x33c   : > { %1938 = vrot.lane.b32.xlu1 %v4623_v51, %s4449_s27 }
 0x33e   : > { %1785 = vrot.lane.b32.xlu0 %v4601_v41, %s4449_s27 }
 0x340   : > { %2173 = vrot.lane.b32.xlu1 %v4593_v24, %s4450_s28 }
 0x342   : > { %1836 = vrot.lane.b32.xlu0 %v4617_v48, %s4449_s27 }
 0x343   : > { %v1119_v40 = vpop.xlane.xlu1 %1118 }
 0x344   : > { %4284 = vrcp.f32 %v1119_v40 }
 0x346   : > { %1887 = vrot.lane.b32.xlu0 %v4605_v44, %s4449_s27 }
 0x34b   : > { %v1143_v23 = vpop.xlane.xlu1 %1142 }
 0x34f   : > { %v1122_v45 = vpop.xlane.xlu0 %1121 }
 0x350   : > { %4286 = vrcp.f32 %v1122_v45 }
 0x351   : > { %v4285_v53 = vpop.eup %4284 }
 0x352   : > { %v1181_v58 = vmul.f32 %v4285_v53, %v4761_v26 }
 0x353   : > { %v1146_v17 = vpop.xlane.xlu0 %1145  ;;  %v1125_v46 = vpop.xlane.xlu1 %1124 }
 0x354   : > { %4288 = vrcp.f32 %v1125_v46 }
 0x357   : > { %v1155_v52 = vpop.xlane.xlu1 %1154  ;;  %v1128_v32 = vpop.xlane.xlu0 %1127 }
 0x358   : > { %4290 = vrcp.f32 %v1128_v32 }
 0x35b   : > { %v1131_v24 = vpop.xlane.xlu1 %1130  ;;  %v1158_v55 = vpop.xlane.xlu0 %1157 }
 0x35c   : > { %4292 = vrcp.f32 %v1131_v24 }
 0x35d   : > { %v4287_v56 = vpop.eup %4286 }
 0x35e   : > { %v1182_v31 = vmul.f32 %v4287_v56, %v4774_v50 }
 0x35f   : > { %v1134_v61 = vpop.xlane.xlu0 %1133  ;;  %v1137_v0 = vpop.xlane.xlu1 %1136 }
 0x360   : > { %v1197_v62 = vpack.c.bf16 %v1182_v31, %v1181_v58  ;;  %4294 = vrcp.f32 %v1134_v61 }
 0x361   : > { %4296 = vrcp.f32 %v1137_v0  ;;  %v4289_v49 = vpop.eup %4288 }
 0x362   : > { %3945 = vmatmul.mubr.msk.bf16.vlgmr.msra.gmra.mxu0 %vm623_vm2, %v1197_v62  ;;  %4298 = vrcp.f32 %v1146_v17  ;;  %v1183_v4 = vmul.f32 %v4289_v49, %v4782_v59 }
 0x363   : > { %3955 = vmatpush3.bf16.msra.mxu0 %v4754_v3  ;;  %3956 = vmatprep.mubr.msk.bf16.mxu0 %vm4445_vm1, %v4444_v10  ;;  %v1149_v7 = vpop.xlane.xlu1 %1148 }
 0x364   : > { %v1140_v1 = vpop.xlane.xlu0 %1139  ;;  %3966 = vmatprep.subr.bf16.mxu0 %v4444_v10 }
 0x365   : > { %4300 = vrcp.f32 %v1140_v1  ;;  %v4291_v26 = vpop.eup %4290 }
 0x366   : > { %4302 = vrcp.f32 %v1143_v23  ;;  %v1184_v5 = vmul.f32 %v4291_v26, %v4791_v42 }
 0x368   : > { %v1152_v50 = vpop.xlane.xlu0 %1151  ;;  %v1198_v3 = vpack.c.bf16 %v1184_v5, %v1183_v4 }
 0x369   : > { %4304 = vrcp.f32 %v1152_v50  ;;  %v4293_v54 = vpop.eup %4292 }
 0x36a   : > { %4306 = vrcp.f32 %v1149_v7  ;;  %3951 = vmatmul.mubr.msk.bf16.vlgmr.msra.gmra.mxu1 %vm623_vm2, %v1198_v3  ;;  %v1185_v59 = vmul.f32 %v4293_v54, %v4797_v8 }
 0x36b   : > { %3961 = vmatpush3.bf16.msra.mxu1 %v4751_v63  ;;  %3962 = vmatprep.mubr.msk.bf16.mxu1 %vm4445_vm1, %v4444_v10  ;;  %4308 = vrcp.f32 %v1158_v55 }
 0x36c   : > { %3972 = vmatprep.subr.bf16.mxu1 %v4444_v10  ;;  %4310 = vrcp.f32 %v1155_v52  ;;  %v1488_v25 = vpop.permute.xlu0 %1487 }
 0x36d   : > { %v4295_v14 = vpop.eup %4294 }
 0x36e   : > { %v1186_v42 = vmul.f32 %v4295_v14, %v4807_v16  ;;  %v4297_v19 = vpop.eup %4296 }
 0x36f   : > { %v4299_v20 = vpop.eup %4298  ;;  %v1187_v63 = vmul.f32 %v4297_v19, %v4805_v15 }
 0x370   : > { %v1199_v22 = vpack.c.bf16 %v1186_v42, %v1185_v59  ;;  %v1190_v8 = vmul.f32 %v4299_v20, %v4778_v37 }
 0x372   : > { %v4301_v13 = vpop.eup %4300  ;;  %3957 = vmatmul.mubr.msk.bf16.vlgmr.msra.gmra.mxu0 %vm623_vm2, %v1199_v22 }
 0x373   : > { %v1188_v28 = vmul.f32 %v4301_v13, %v4815_v6  ;;  %v4303_v9 = vpop.eup %4302  ;;  %3967 = vmatpush3.bf16.msra.mxu0 %v1394_v60  ;;  %3968 = vmatprep.mubr.msk.bf16.mxu0 %vm4445_vm1, %v4444_v10 }
 0x374   : > { %3978 = vmatprep.subr.bf16.mxu0 %v4444_v10  ;;  %v1189_v29 = vmul.f32 %v4303_v9, %v4769_v39 }
 0x375   : > { %v1200_v18 = vpack.c.bf16 %v1188_v28, %v1187_v63 }
 0x376   : > { %v4305_v16 = vpop.eup %4304  ;;  %v1201_v15 = vpack.c.bf16 %v1190_v8, %v1189_v29 }
 0x377   : > { %3963 = vmatmul.mubr.msk.bf16.vlgmr.msra.gmra.mxu1 %vm623_vm2, %v1200_v18  ;;  %v4307_v33 = vpop.eup %4306  ;;  %v1192_v6 = vmul.f32 %v4305_v16, %v4821_v27 }
 0x378   : > { %3973 = vmatpush3.bf16.msra.mxu1 %v4857_v57  ;;  %3974 = vmatprep.mubr.msk.bf16.mxu1 %vm4445_vm1, %v4444_v10  ;;  %v4309_v34 = vpop.eup %4308  ;;  %v1191_v37 = vmul.f32 %v4307_v33, %v4813_v21  ;;  %v1535_v57 = vpop.permute.xlu1 %1534 }
 0x379   : > { %3984 = vmatprep.subr.bf16.mxu1 %v4444_v10  ;;  %v4311_v35 = vpop.eup %4310  ;;  %v1194_v38 = vmul.f32 %v4309_v34, %v4799_v11 }
 0x37a   : > { %3969 = vmatmul.mubr.msk.bf16.vlgmr.msra.gmra.mxu0 %vm623_vm2, %v1201_v15  ;;  %v1202_v39 = vpack.c.bf16 %v1192_v6, %v1191_v37  ;;  %v1193_v27 = vmul.f32 %v4311_v35, %v4788_v2 }
 0x37b   : > { %3979 = vmatpush3.bf16.msra.mxu0 %v1488_v25  ;;  %3980 = vmatprep.mubr.msk.bf16.mxu0 %vm4445_vm1, %v4444_v10 }
 0x37c   : > { %3990 = vmatprep.subr.bf16.mxu0 %v4444_v10  ;;  %v1203_v21 = vpack.c.bf16 %v1194_v38, %v1193_v27 }
 0x37f   : > { %3975 = vmatmul.mubr.msk.bf16.vlgmr.msra.gmra.mxu1 %vm623_vm2, %v1202_v39 }
 0x380   : > { %3985 = vmatpush3.bf16.msra.mxu1 %v1535_v57  ;;  %3986 = vmatprep.mubr.msk.bf16.mxu1 %vm4445_vm1, %v4444_v10 }
 0x381   : > { %3996 = vmatprep.subr.bf16.mxu1 %v4444_v10 }
 0x382   : > { %3981 = vmatmul.mubr.msk.bf16.vlgmr.msra.gmra.mxu0 %vm623_vm2, %v1203_v21 }
 0x383   : > { %3992 = vmatprep.mubr.msk.bf16.mxu0 %vm4445_vm1, %v4444_v10 }
 0x398   : > { %v1161_v11 = vpop.xlane.xlu1 %1160 }
 0x399   : > { %4312 = vrcp.f32 %v1161_v11 }
 0x39c   : > { %v1635_v60 = vpop.permute.xlu1 %1634 }
 0x39d   : > { %v1164_v40 = vpop.xlane.xlu0 %1163  ;;  %v1640_v0 = vsel %vm623_vm2, %v1635_v60, 0 }
 0x39e   : > { %4314 = vrcp.f32 %v1164_v40 }
 0x3a0   : > { %v1686_v45 = vpop.permute.xlu1 %1685 }
 0x3a1   : > { %v1584_v23 = vpop.permute.xlu0 %1583  ;;  %v1691_v24 = vsel %vm623_vm2, %v1686_v45, 0 }
 0x3a2   : > { %v1589_v2 = vsel %vm623_vm2, %v1584_v23, 0 }
 0x3a3   : > { %3991 = vmatpush3.bf16.xpose.msra.mxu0 %v1589_v2 }
 0x3a4   : > { %4002 = vmatprep.subr.bf16.mxu0 %v4444_v10  ;;  %v1737_v17 = vpop.permute.xlu1 %1736 }
 0x3a5   : > { %v1582_v46 = vpop.permute.xlu0 %1581  ;;  %v1742_v50 = vsel %vm623_vm2, %v1737_v17, 0 }
 0x3a6   : > { %v4313_v52 = vpop.eup %4312 }
 0x3a7   : > { %v1195_v56 = vmul.f32 %v4313_v52, %v4831_v12 }
 0x3a8   : > { %v1788_v32 = vpop.permute.xlu1 %1787 }
 0x3a9   : > { %v1633_v53 = vpop.permute.xlu0 %1632  ;;  %v1793_v26 = vsel %vm623_vm2, %v1788_v32, 0 }
 0x3aa   : > { %3993 = vmatmul.mubr.msk.bf16.vlgmr.msra.gmra.mxu0 %vm623_vm2, %v1582_v46 }
 0x3ab   : > { %v4315_v55 = vpop.eup %4314  ;;  %4003 = vmatpush3.bf16.xpose.msra.mxu0 %v1691_v24  ;;  %4004 = vmatprep.mubr.msk.bf16.mxu0 %vm4445_vm1, %v4444_v10 }
 0x3ac   : > { %v1196_v58 = vmul.f32 %v4315_v55, %v4835_v36  ;;  %4014 = vmatprep.subr.bf16.mxu0 %v4444_v10  ;;  %v1839_v31 = vpop.permute.xlu1 %1838 }
 0x3ad   : > { %v1684_v61 = vpop.permute.xlu0 %1683  ;;  %v1844_v3 = vsel %vm623_vm2, %v1839_v31, 0 }
 0x3ae   : > { %v1204_v62 = vpack.c.bf16 %v1196_v58, %v1195_v56 }
 0x3b0   : > { %3987 = vmatmul.mubr.msk.bf16.vlgmr.msra.gmra.mxu1 %vm623_vm2, %v1204_v62  ;;  %v1890_v1 = vpop.permute.xlu1 %1889 }
 0x3b1   : > { %3997 = vmatpush3.bf16.xpose.msra.mxu1 %v1640_v0  ;;  %v1735_v49 = vpop.permute.xlu0 %1734  ;;  %3998 = vmatprep.mubr.msk.bf16.mxu1 %vm4445_vm1, %v4444_v10  ;;  %v1895_v4 = vsel %vm623_vm2, %v1890_v1, 0 }
 0x3b2   : > { %4005 = vmatmul.mubr.msk.bf16.vlgmr.msra.gmra.mxu0 %vm623_vm2, %v1684_v61  ;;  %4008 = vmatprep.subr.bf16.mxu1 %v4444_v10 }
 0x3b3   : > { %4015 = vmatpush3.bf16.xpose.msra.mxu0 %v1793_v26  ;;  %4016 = vmatprep.mubr.msk.bf16.mxu0 %vm4445_vm1, %v4444_v10 }
 0x3b4   : > { %4026 = vmatprep.subr.bf16.mxu0 %v4444_v10  ;;  %v1941_v36 = vpop.permute.xlu1 %1940 }
 0x3b5   : > { %v1786_v12 = vpop.permute.xlu0 %1785  ;;  %v1946_v59 = vsel %vm623_vm2, %v1941_v36, 0 }
 0x3b8   : > { %3999 = vmatmul.mubr.msk.bf16.vlgmr.msra.gmra.mxu1 %vm623_vm2, %v1633_v53  ;;  %v1939_v7 = vpop.permute.xlu1 %1938 }
 0x3b9   : > { %4009 = vmatpush3.bf16.xpose.msra.mxu1 %v1742_v50  ;;  %4010 = vmatprep.mubr.msk.bf16.mxu1 %vm4445_vm1, %v4444_v10  ;;  %v1837_v5 = vpop.permute.xlu0 %1836 }
 0x3ba   : > { %4017 = vmatmul.mubr.msk.bf16.vlgmr.msra.gmra.mxu0 %vm623_vm2, %v1786_v12  ;;  %4020 = vmatprep.subr.bf16.mxu1 %v4444_v10 }
 0x3bb   : > { %4027 = vmatpush3.bf16.xpose.msra.mxu0 %v1895_v4  ;;  %4028 = vmatprep.mubr.msk.bf16.mxu0 %vm4445_vm1, %v4444_v10 }
 0x3bc   : > { %4038 = vmatprep.subr.bf16.mxu0 %v4444_v10  ;;  %v2174_v14 = vpop.permute.xlu1 %2173 }
 0x3bd   : > { %v1888_v54 = vpop.permute.xlu0 %1887 }
 0x3c0   : > { %4011 = vmatmul.mubr.msk.bf16.vlgmr.msra.gmra.mxu1 %vm623_vm2, %v1735_v49 }
 0x3c1   : > { %4021 = vmatpush3.bf16.xpose.msra.mxu1 %v1844_v3  ;;  %4022 = vmatprep.mubr.msk.bf16.mxu1 %vm4445_vm1, %v4444_v10 }
 0x3c2   : > { %4029 = vmatmul.mubr.msk.bf16.vlgmr.msra.gmra.mxu0 %vm623_vm2, %v1888_v54  ;;  %4032 = vmatprep.subr.bf16.mxu1 %v4444_v10 }
 0x3c3   : > { %4039 = vmatpush3.bf16.msra.mxu0 %v2174_v14  ;;  %4040 = vmatprep.mubr.msk.bf16.mxu0 %vm4445_vm1, %v4444_v10 }
 0x3c4   : > { %4050 = vmatprep.subr.bf16.mxu0 %v4444_v10 }
 0x3c8   : > { %4023 = vmatmul.mubr.msk.bf16.vlgmr.msra.gmra.mxu1 %vm623_vm2, %v1837_v5 }
 0x3c9   : > { %4033 = vmatpush3.bf16.xpose.msra.mxu1 %v1946_v59  ;;  %4034 = vmatprep.mubr.msk.bf16.mxu1 %vm4445_vm1, %v4444_v10 }
 0x3ca   : > { %4044 = vmatprep.subr.bf16.mxu1 %v4444_v10 }
 0x3d0   : > { %4035 = vmatmul.mubr.msk.bf16.vlgmr.msra.gmra.mxu1 %vm623_vm2, %v1939_v7 }
 0x3d1   : > { %4046 = vmatprep.mubr.msk.bf16.mxu1 %vm4445_vm1, %v4444_v10 }
 0x422   : > { %v4949_v42 = vpop.f32.mrf.mxu0 }
 0x424   : > { %v3946_v19 = vpop.f32.mrf.mxu0 }
 0x426   : > { %v4951_v20 = vpop.f32.mrf.mxu0 }
 0x428   : > { %v3947_v22 = vpop.f32.mrf.mxu0 }
 0x42a   : > { %v4953_v13 = vpop.f32.mrf.mxu1 }
 0x42c   : > { %v3952_v63 = vpop.f32.mrf.mxu1 }
 0x42e   : > { %v4955_v28 = vpop.f32.mrf.mxu1 }
 0x430   : > { %v3953_v9 = vpop.f32.mrf.mxu1 }
 0x432   : > { %v4957_v18 = vpop.f32.mrf.mxu0 }
 0x434   : > { %v3958_v8 = vpop.f32.mrf.mxu0 }
 0x436   : > { %v4959_v16 = vpop.f32.mrf.mxu0 }
 0x437   : > { %v4961_v29 = vpop.f32.mrf.mxu1 }
 0x438   : > { %v3959_v33 = vpop.f32.mrf.mxu0 }
 0x439   : > { %v3964_v15 = vpop.f32.mrf.mxu1 }
 0x43a   : > { %v4965_v34 = vpop.f32.mrf.mxu0 }
 0x43b   : > { %v4963_v6 = vpop.f32.mrf.mxu1 }
 0x43c   : > { %v3970_v37 = vpop.f32.mrf.mxu0 }
 0x43d   : > { %v3965_v25 = vpop.f32.mrf.mxu1 }
 0x43e   : > { %v4967_v35 = vpop.f32.mrf.mxu0 }
 0x43f   : > { %v4969_v39 = vpop.f32.mrf.mxu1 }
 0x440   : > { %v3971_v38 = vpop.f32.mrf.mxu0 }
 0x441   : > { %v3976_v57 = vpop.f32.mrf.mxu1 }
 0x442   : > { %v4973_v21 = vpop.f32.mrf.mxu0 }
 0x443   : > { %v4971_v27 = vpop.f32.mrf.mxu1 }
 0x444   : > { %v3982_v60 = vpop.f32.mrf.mxu0 }
 0x445   : > { %v3977_v11 = vpop.f32.mrf.mxu1 }
 0x446   : > { %v4975_v40 = vpop.f32.mrf.mxu0 }
 0x448   : > { %v3983_v45 = vpop.f32.mrf.mxu0 }
 0x46a   : > { %v4977_v23 = vpop.f32.mrf.mxu0 }
 0x46b   : > { %v1989_v2 = vsel %vm623_vm2, %v4977_v23, -inf }
 0x46c   : > { %1990 = vmax.xlane.f32.xlu0 %v1989_v2  ;;  %v3994_v17 = vpop.f32.mrf.mxu0 }
 0x46e   : > { %v4981_v46 = vpop.f32.mrf.mxu0 }
 0x46f   : > { %v1992_v52 = vsel %vm623_vm2, %v4981_v46, -inf }
 0x470   : > { %v4985_v32 = vpop.f32.mrf.mxu1  ;;  %1993 = vmax.xlane.f32.xlu1 %v1992_v52  ;;  %v3995_v53 = vpop.f32.mrf.mxu0 }
 0x472   : > { %v3988_v24 = vpop.f32.mrf.mxu1  ;;  %v4987_v55 = vpop.f32.mrf.mxu0 }
 0x473   : > { %v2001_v56 = vsel %vm623_vm2, %v4987_v55, -inf }
 0x474   : > { %v4991_v58 = vpop.f32.mrf.mxu1  ;;  %2002 = vmax.xlane.f32.xlu1 %v2001_v56  ;;  %v4006_v31 = vpop.f32.mrf.mxu0 }
 0x476   : > { %v3989_v61 = vpop.f32.mrf.mxu1  ;;  %v4993_v62 = vpop.f32.mrf.mxu0 }
 0x477   : > { %v2004_v14 = vsel %vm623_vm2, %v4993_v62, -inf }
 0x478   : > { %v4995_v0 = vpop.f32.mrf.mxu1  ;;  %v4007_v1 = vpop.f32.mrf.mxu0 }
 0x479   : > { %v1995_v49 = vsel %vm623_vm2, %v4995_v0, -inf }
 0x47a   : > { %1996 = vmax.xlane.f32.xlu0 %v1995_v49  ;;  %v4000_v26 = vpop.f32.mrf.mxu1  ;;  %v4999_v12 = vpop.f32.mrf.mxu0 }
 0x47b   : > { %v2013_v33 = vsel %vm623_vm2, %v4999_v12, -inf }
 0x47c   : > { %v5001_v36 = vpop.f32.mrf.mxu1  ;;  %v4018_v50 = vpop.f32.mrf.mxu0 }
 0x47d   : > { %v1998_v4 = vsel %vm623_vm2, %v5001_v36, -inf }
 0x47e   : > { %1999 = vmax.xlane.f32.xlu0 %v1998_v4  ;;  %v4001_v5 = vpop.f32.mrf.mxu1  ;;  %v5005_v7 = vpop.f32.mrf.mxu0 }
 0x47f   : > { %v2016_v57 = vsel %vm623_vm2, %v5005_v7, -inf }
 0x480   : > { %v5007_v3 = vpop.f32.mrf.mxu1  ;;  %v4019_v54 = vpop.f32.mrf.mxu0 }
 0x481   : > { %v2007_v59 = vsel %vm623_vm2, %v5007_v3, -inf }
 0x482   : > { %2005 = vmax.xlane.f32.xlu0 %v2004_v14  ;;  %2008 = vmax.xlane.f32.xlu1 %v2007_v59  ;;  %v4012_v19 = vpop.f32.mrf.mxu1  ;;  %v5013_v22 = vpop.f32.mrf.mxu0 }
 0x483   : > { %v2025_v17 = vsel %vm623_vm2, %v5013_v22, -inf }
 0x484   : > { %v5015_v63 = vpop.f32.mrf.mxu1  ;;  %v4030_v9 = vpop.f32.mrf.mxu0 }
 0x485   : > { %v2010_v8 = vsel %vm623_vm2, %v5015_v63, -inf }
 0x486   : > { %2011 = vmax.xlane.f32.xlu0 %v2010_v8  ;;  %v4013_v15 = vpop.f32.mrf.mxu1  ;;  %2014 = vmax.xlane.f32.xlu1 %v2013_v33  ;;  %v5021_v25 = vpop.f32.mrf.mxu0 }
 0x487   : > { %v2028_v56 = vsel %vm623_vm2, %v5021_v25, -inf }
 0x488   : > { %v5023_v37 = vpop.f32.mrf.mxu1  ;;  %v4031_v38 = vpop.f32.mrf.mxu0 }
 0x489   : > { %v2019_v11 = vsel %vm623_vm2, %v5023_v37, -inf }
 0x48a   : > { %2017 = vmax.xlane.f32.xlu0 %v2016_v57  ;;  %2020 = vmax.xlane.f32.xlu1 %v2019_v11  ;;  %v4024_v60 = vpop.f32.mrf.mxu1 }
 0x48c   : > { %v5029_v45 = vpop.f32.mrf.mxu1 }
 0x48d   : > { %v2022_v2 = vsel %vm623_vm2, %v5029_v45, -inf }
 0x48e   : > { %2023 = vmax.xlane.f32.xlu0 %v2022_v2  ;;  %v4025_v52 = vpop.f32.mrf.mxu1  ;;  %2026 = vmax.xlane.f32.xlu1 %v2025_v17 }
 0x490   : > { %v5035_v53 = vpop.f32.mrf.mxu1 }
 0x491   : > { %v2031_v24 = vsel %vm623_vm2, %v5035_v53, -inf }
 0x492   : > { %v4036_v31 = vpop.f32.mrf.mxu1  ;;  %2032 = vmax.xlane.f32.xlu1 %v2031_v24  ;;  %2029 = vmax.xlane.f32.xlu0 %v2028_v56 }
 0x494   : > { %v5041_v61 = vpop.f32.mrf.mxu1 }
 0x495   : > { %v2034_v1 = vsel %vm623_vm2, %v5041_v61, -inf }
 0x496   : > { %v4037_v49 = vpop.f32.mrf.mxu1  ;;  %2035 = vmax.xlane.f32.xlu0 %v2034_v1 }
 0x4a3   : > { %2267 = vrot.lane.b32.xlu1 %v4603_v43, %s4450_s28 }
 0x4a7   : > { %2314 = vrot.lane.b32.xlu1 %v4611_v47, %s4450_s28 }
 0x4ab   : > { %2408 = vrot.lane.b32.xlu1 %v4617_v48, %s4450_s28 }
 0x4ac   : > { %2220 = vrot.lane.b32.xlu0 %v4597_v30, %s4450_s28 }
 0x4b0   : > { %2361 = vrot.lane.b32.xlu0 %v4601_v41, %s4450_s28 }
 0x4f5   : > { %v1991_v26 = vpop.xlane.xlu0 %1990 }
 0x4f6   : > { %v2037_v50 = vsub.f32 %v4977_v23, %v1991_v26 }
 0x4f8   : > { %v2053_v4 = vmul.f32 1.442695, %v2037_v50 }
 0x4f9   : > { %v1994_v5 = vpop.xlane.xlu1 %1993 }
 0x4fa   : > { %4316 = vpow2.f32 %v2053_v4  ;;  %v2038_v43 = vsub.f32 %v4981_v46, %v1994_v5 }
 0x4fc   : > { %v2055_v54 = vmul.f32 1.442695, %v2038_v43 }
 0x4fd   : > { %v2003_v47 = vpop.xlane.xlu1 %2002 }
 0x4fe   : > { %4318 = vpow2.f32 %v2055_v54  ;;  %v2041_v14 = vsub.f32 %v4987_v55, %v2003_v47 }
 0x500   : > { %v2061_v30 = vmul.f32 1.442695, %v2041_v14 }
 0x503   : > { %v1997_v48 = vpop.xlane.xlu0 %1996 }
 0x504   : > { %v2039_v59 = vsub.f32 %v4995_v0, %v1997_v48 }
 0x506   : > { %v2057_v19 = vmul.f32 1.442695, %v2039_v59 }
 0x507   : > { %v5059_v9 = vpop.eup %4316  ;;  %v2000_v41 = vpop.xlane.xlu0 %1999 }
 0x508   : > { %4320 = vpow2.f32 %v2057_v19  ;;  %v2040_v23 = vsub.f32 %v5001_v36, %v2000_v41  ;;  %v2085_v8 = vsel %vm623_vm2, %v5059_v9, 0.0 }
 0x509   : > { %2086 = vadd.xlane.f32.xlu1 %v2085_v8  ;;  %4322 = vpow2.f32 %v2061_v30 }
 0x50a   : > { %v2059_v46 = vmul.f32 1.442695, %v2040_v23 }
 0x50b   : > { %v5064_v33 = vpop.eup %4318  ;;  %v2009_v55 = vpop.xlane.xlu1 %2008 }
 0x50c   : > { %v2006_v15 = vpop.xlane.xlu0 %2005  ;;  %4324 = vpow2.f32 %v2059_v46  ;;  %v2043_v0 = vsub.f32 %v5007_v3, %v2009_v55  ;;  %v2088_v57 = vsel %vm623_vm2, %v5064_v33, 0.0 }
 0x50d   : > { %v2042_v38 = vsub.f32 %v4993_v62, %v2006_v15  ;;  %2089 = vadd.xlane.f32.xlu0 %v2088_v57 }
 0x50e   : > { %v2065_v36 = vmul.f32 1.442695, %v2043_v0 }
 0x50f   : > { %v2063_v11 = vmul.f32 1.442695, %v2042_v38  ;;  %v2015_v60 = vpop.xlane.xlu1 %2014 }
 0x510   : > { %v2012_v2 = vpop.xlane.xlu0 %2011  ;;  %4326 = vpow2.f32 %v2065_v36  ;;  %v2045_v17 = vsub.f32 %v4999_v12, %v2015_v60 }
 0x511   : > { %v2044_v52 = vsub.f32 %v5015_v63, %v2012_v2  ;;  %4328 = vpow2.f32 %v2063_v11 }
 0x512   : > { %v2069_v24 = vmul.f32 1.442695, %v2045_v17 }
 0x513   : > { %v2067_v56 = vmul.f32 1.442695, %v2044_v52  ;;  %v2021_v31 = vpop.xlane.xlu1 %2020 }
 0x514   : > { %v2018_v3 = vpop.xlane.xlu0 %2017  ;;  %4330 = vpow2.f32 %v2069_v24  ;;  %v2047_v62 = vsub.f32 %v5023_v37, %v2021_v31 }
 0x515   : > { %v2046_v1 = vsub.f32 %v5005_v7, %v2018_v3  ;;  %v5074_v49 = vpop.eup %4320  ;;  %4332 = vpow2.f32 %v2067_v56 }
 0x516   : > { %v2073_v26 = vmul.f32 1.442695, %v2047_v62  ;;  %v2091_v12 = vsel %vm623_vm2, %v5074_v49, 0.0  ;;  %v5078_v4 = vpop.eup %4322 }
 0x517   : > { %v2071_v50 = vmul.f32 1.442695, %v2046_v1  ;;  %v2027_v63 = vpop.xlane.xlu1 %2026  ;;  %2092 = vadd.xlane.f32.xlu1 %v2091_v12  ;;  %v2097_v14 = vsel %vm623_vm2, %v5078_v4, 0.0 }
 0x518   : > { %v2024_v5 = vpop.xlane.xlu0 %2023  ;;  %4334 = vpow2.f32 %v2073_v26  ;;  %v2049_v43 = vsub.f32 %v5013_v22, %v2027_v63 }
 0x519   : > { %v2048_v37 = vsub.f32 %v5029_v45, %v2024_v5  ;;  %v5082_v54 = vpop.eup %4324  ;;  %4336 = vpow2.f32 %v2071_v50 }
 0x51a   : > { %v2077_v7 = vmul.f32 1.442695, %v2049_v43  ;;  %v2094_v48 = vsel %vm623_vm2, %v5082_v54, 0.0 }
 0x51b   : > { %v2075_v47 = vmul.f32 1.442695, %v2048_v37  ;;  %v2033_v59 = vpop.xlane.xlu1 %2032  ;;  %2098 = vadd.xlane.f32.xlu1 %v2097_v14  ;;  %2095 = vadd.xlane.f32.xlu0 %v2094_v48 }
 0x51c   : > { %v2030_v30 = vpop.xlane.xlu0 %2029  ;;  %4338 = vpow2.f32 %v2077_v7  ;;  %v2051_v22 = vsub.f32 %v5035_v53, %v2033_v59 }
 0x51d   : > { %v2050_v45 = vsub.f32 %v5021_v25, %v2030_v30  ;;  %v5090_v19 = vpop.eup %4326  ;;  %4340 = vpow2.f32 %v2075_v47 }
 0x51e   : > { %v5092_v41 = vpop.eup %4328  ;;  %v2081_v23 = vmul.f32 1.442695, %v2051_v22  ;;  %v2103_v46 = vsel %vm623_vm2, %v5090_v19, 0.0 }
 0x51f   : > { %v2079_v8 = vmul.f32 1.442695, %v2050_v45  ;;  %2104 = vadd.xlane.f32.xlu1 %v2103_v46  ;;  %v2100_v55 = vsel %vm623_vm2, %v5092_v41, 0.0  ;;  %v2268_v63 = vpop.permute.xlu1 %2267 }
 0x520   : > { %v2036_v15 = vpop.xlane.xlu0 %2035  ;;  %4342 = vpow2.f32 %v2081_v23  ;;  %2101 = vadd.xlane.f32.xlu0 %v2100_v55 }
 0x521   : > { %v2052_v53 = vsub.f32 %v5041_v61, %v2036_v15  ;;  %v5099_v25 = vpop.eup %4330  ;;  %4344 = vpow2.f32 %v2079_v8 }
 0x522   : > { %v5101_v0 = vpop.eup %4332  ;;  %v2109_v57 = vsel %vm623_vm2, %v5099_v25, 0.0 }
 0x523   : > { %v2083_v38 = vmul.f32 1.442695, %v2052_v53  ;;  %2110 = vadd.xlane.f32.xlu1 %v2109_v57  ;;  %v2106_v36 = vsel %vm623_vm2, %v5101_v0, 0.0  ;;  %v2315_v5 = vpop.permute.xlu1 %2314 }
 0x524   : > { %v2221_v11 = vpop.permute.xlu0 %2220  ;;  %2107 = vadd.xlane.f32.xlu0 %v2106_v36 }
 0x525   : > { %4346 = vpow2.f32 %v2083_v38  ;;  %4045 = vmatpush3.bf16.msra.mxu1 %v2221_v11  ;;  %v5107_v60 = vpop.eup %4334 }
 0x526   : > { %4056 = vmatprep.subr.bf16.mxu1 %v4444_v10  ;;  %v5110_v61 = vpop.eup %4336  ;;  %v2115_v2 = vsel %vm623_vm2, %v5107_v60, 0.0 }
 0x527   : > { %2116 = vadd.xlane.f32.xlu1 %v2115_v2  ;;  %v2112_v17 = vsel %vm623_vm2, %v5110_v61, 0.0  ;;  %v5140_v43 = vpop.permute.xlu1 %2408 }
 0x528   : > { %2113 = vadd.xlane.f32.xlu0 %v2112_v17  ;;  %v2362_v37 = vpop.permute.xlu0 %2361 }
 0x529   : > { %v5116_v52 = vpop.eup %4338 }
 0x52a   : > { %v5118_v24 = vpop.eup %4340  ;;  %v2121_v56 = vsel %vm623_vm2, %v5116_v52, 0.0 }
 0x52b   : > { %2122 = vadd.xlane.f32.xlu1 %v2121_v56  ;;  %v2118_v31 = vsel %vm623_vm2, %v5118_v24, 0.0 }
 0x52c   : > { %2119 = vadd.xlane.f32.xlu0 %v2118_v31 }
 0x52d   : > { %v5124_v3 = vpop.eup %4342 }
 0x52e   : > { %v5126_v62 = vpop.eup %4344  ;;  %v2127_v1 = vsel %vm623_vm2, %v5124_v3, 0.0 }
 0x52f   : > { %2128 = vadd.xlane.f32.xlu1 %v2127_v1  ;;  %v2124_v26 = vsel %vm623_vm2, %v5126_v62, 0.0 }
 0x530   : > { %2125 = vadd.xlane.f32.xlu0 %v2124_v26 }
 0x532   : > { %v5132_v50 = vpop.eup %4346 }
 0x533   : > { %v2130_v12 = vsel %vm623_vm2, %v5132_v50, 0.0 }
 0x534   : > { %2131 = vadd.xlane.f32.xlu0 %v2130_v12 }
 0x540   : > { %2502 = vrot.lane.b32.xlu1 %v4623_v51, %s4450_s28 }
 0x54a   : > { %2455 = vrot.lane.b32.xlu0 %v4605_v44, %s4450_s28 }
 0x592   : > { %v2087_v7 = vpop.xlane.xlu1 %2086 }
 0x593   : > { %4348 = vrcp.f32 %v2087_v7 }
 0x596   : > { %v2090_v47 = vpop.xlane.xlu0 %2089 }
 0x597   : > { %4350 = vrcp.f32 %v2090_v47 }
 0x5a0   : > { %v2093_v14 = vpop.xlane.xlu1 %2092  ;;  %v4349_v48 = vpop.eup %4348 }
 0x5a1   : > { %4352 = vrcp.f32 %v2093_v14  ;;  %v2149_v51 = vmul.f32 %v4349_v48, %v5059_v9 }
 0x5a4   : > { %v4351_v59 = vpop.eup %4350  ;;  %v2099_v30 = vpop.xlane.xlu1 %2098 }
 0x5a5   : > { %v2096_v22 = vpop.xlane.xlu0 %2095  ;;  %v2150_v45 = vmul.f32 %v4351_v59, %v5064_v33 }
 0x5a6   : > { %4354 = vrcp.f32 %v2096_v22 }
 0x5a7   : > { %v2165_v44 = vpack.c.bf16 %v2150_v45, %v2149_v51  ;;  %4356 = vrcp.f32 %v2099_v30 }
 0x5a8   : > { %v2105_v23 = vpop.xlane.xlu1 %2104 }
 0x5a9   : > { %v2102_v8 = vpop.xlane.xlu0 %2101  ;;  %4041 = vmatmul.mubr.msk.bf16.vlgmr.msra.gmra.mxu0 %vm623_vm2, %v2165_v44 }
 0x5aa   : > { %4358 = vrcp.f32 %v2102_v8  ;;  %4051 = vmatpush3.bf16.msra.mxu0 %v2268_v63  ;;  %4052 = vmatprep.mubr.msk.bf16.mxu0 %vm4445_vm1, %v4444_v10 }
 0x5ab   : > { %4062 = vmatprep.subr.bf16.mxu0 %v4444_v10  ;;  %4360 = vrcp.f32 %v2105_v23 }
 0x5ac   : > { %v2111_v46 = vpop.xlane.xlu1 %2110 }
 0x5ad   : > { %v2108_v55 = vpop.xlane.xlu0 %2107 }
 0x5ae   : > { %4362 = vrcp.f32 %v2108_v55  ;;  %v4353_v33 = vpop.eup %4352 }
 0x5af   : > { %4364 = vrcp.f32 %v2111_v46  ;;  %v2151_v57 = vmul.f32 %v4353_v33, %v5074_v49 }
 0x5b0   : > { %v2117_v9 = vpop.xlane.xlu1 %2116 }
 0x5b1   : > { %v2114_v15 = vpop.xlane.xlu0 %2113 }
 0x5b2   : > { %4366 = vrcp.f32 %v2114_v15 }
 0x5b3   : > { %v4355_v53 = vpop.eup %4354  ;;  %4368 = vrcp.f32 %v2117_v9 }
 0x5b4   : > { %v2123_v38 = vpop.xlane.xlu1 %2122  ;;  %v2152_v36 = vmul.f32 %v4355_v53, %v5082_v54  ;;  %v4357_v11 = vpop.eup %4356 }
 0x5b5   : > { %v2120_v2 = vpop.xlane.xlu0 %2119  ;;  %v2153_v31 = vmul.f32 %v4357_v11, %v5078_v4 }
 0x5b6   : > { %4370 = vrcp.f32 %v2120_v2  ;;  %v2166_v17 = vpack.c.bf16 %v2152_v36, %v2151_v57 }
 0x5b7   : > { %v4359_v56 = vpop.eup %4358  ;;  %4372 = vrcp.f32 %v2123_v38 }
 0x5b8   : > { %4047 = vmatmul.mubr.msk.bf16.vlgmr.msra.gmra.mxu1 %vm623_vm2, %v2166_v17  ;;  %v2154_v1 = vmul.f32 %v4359_v56, %v5092_v41  ;;  %v4361_v26 = vpop.eup %4360  ;;  %v2129_v12 = vpop.xlane.xlu1 %2128 }
 0x5b9   : > { %4057 = vmatpush3.bf16.msra.mxu1 %v2315_v5  ;;  %v2126_v63 = vpop.xlane.xlu0 %2125  ;;  %4058 = vmatprep.mubr.msk.bf16.mxu1 %vm4445_vm1, %v4444_v10  ;;  %v2155_v7 = vmul.f32 %v4361_v26, %v5090_v19 }
 0x5ba   : > { %4374 = vrcp.f32 %v2126_v63  ;;  %v2167_v49 = vpack.c.bf16 %v2154_v1, %v2153_v31  ;;  %4068 = vmatprep.subr.bf16.mxu1 %v4444_v10 }
 0x5bb   : > { %v4363_v54 = vpop.eup %4362  ;;  %4376 = vrcp.f32 %v2129_v12 }
 0x5bc   : > { %4053 = vmatmul.mubr.msk.bf16.vlgmr.msra.gmra.mxu0 %vm623_vm2, %v2167_v49  ;;  %v2156_v4 = vmul.f32 %v4363_v54, %v5101_v0  ;;  %v4365_v41 = vpop.eup %4364  ;;  %v2503_v45 = vpop.permute.xlu1 %2502 }
 0x5bd   : > { %4063 = vmatpush3.bf16.msra.mxu0 %v2362_v37  ;;  %v2132_v5 = vpop.xlane.xlu0 %2131  ;;  %4064 = vmatprep.mubr.msk.bf16.mxu0 %vm4445_vm1, %v4444_v10  ;;  %v2157_v48 = vmul.f32 %v4365_v41, %v5099_v25 }
 0x5be   : > { %4378 = vrcp.f32 %v2132_v5  ;;  %v2168_v47 = vpack.c.bf16 %v2156_v4, %v2155_v7  ;;  %4074 = vmatprep.subr.bf16.mxu0 %v4444_v10 }
 0x5bf   : > { %v4367_v14 = vpop.eup %4366 }
 0x5c0   : > { %4059 = vmatmul.mubr.msk.bf16.vlgmr.msra.gmra.mxu1 %vm623_vm2, %v2168_v47  ;;  %v2158_v59 = vmul.f32 %v4367_v14, %v5110_v61  ;;  %v4369_v19 = vpop.eup %4368 }
 0x5c1   : > { %4069 = vmatpush3.bf16.msra.mxu1 %v5140_v43  ;;  %4070 = vmatprep.mubr.msk.bf16.mxu1 %vm4445_vm1, %v4444_v10  ;;  %v2456_v30 = vpop.permute.xlu0 %2455  ;;  %v2159_v22 = vmul.f32 %v4369_v19, %v5107_v60 }
 0x5c2   : > { %v2169_v0 = vpack.c.bf16 %v2158_v59, %v2157_v48  ;;  %4080 = vmatprep.subr.bf16.mxu1 %v4444_v10 }
 0x5c3   : > { %v4371_v37 = vpop.eup %4370 }
 0x5c4   : > { %4065 = vmatmul.mubr.msk.bf16.vlgmr.msra.gmra.mxu0 %vm623_vm2, %v2169_v0  ;;  %v2160_v51 = vmul.f32 %v4371_v37, %v5118_v24  ;;  %v4373_v25 = vpop.eup %4372 }
 0x5c5   : > { %4075 = vmatpush3.bf16.msra.mxu0 %v2456_v30  ;;  %4076 = vmatprep.mubr.msk.bf16.mxu0 %vm4445_vm1, %v4444_v10  ;;  %v2161_v44 = vmul.f32 %v4373_v25, %v5116_v52  ;;  %v4236_v52 = vld [vmem:[%s5601_s3 + $0x8] sm:$0xff]  }
 0x5c6   : > { %v2170_v61 = vpack.c.bf16 %v2160_v51, %v2159_v22  ;;  %4086 = vmatprep.subr.bf16.mxu0 %v4236_v52 }
 0x5c7   : > { %v4375_v43 = vpop.eup %4374 }
 0x5c8   : > { %4071 = vmatmul.mubr.msk.bf16.vlgmr.msra.gmra.mxu1 %vm623_vm2, %v2170_v61  ;;  %v2162_v23 = vmul.f32 %v4375_v43, %v5126_v62  ;;  %v4377_v8 = vpop.eup %4376 }
 0x5c9   : > { %4081 = vmatpush3.bf16.msra.mxu1 %v2503_v45  ;;  %4082 = vmatprep.mubr.msk.bf16.mxu1 %vm4445_vm1, %v4444_v10  ;;  %v2163_v46 = vmul.f32 %v4377_v8, %v5124_v3  ;;  %v4237_v3 = vld [vmem:[%s5601_s3] sm:$0xff]  }
 0x5ca   : > { %v2171_v60 = vpack.c.bf16 %v2162_v23, %v2161_v44 }
 0x5cb   : > { %v4379_v24 = vpop.eup %4378 }
 0x5cc   : > { %4077 = vmatmul.mubr.msk.bf16.vlgmr.msra.gmra.mxu0 %vm623_vm2, %v2171_v60  ;;  %v2164_v55 = vmul.f32 %v4379_v24, %v5132_v50 }
 0x5cd   : > { %4087 = vmatpush3.bf16.msra.mxu0 %v4236_v52 }
 0x5ce   : > { %v2172_v9 = vpack.c.bf16 %v2164_v55, %v2163_v46  ;;  %4088 = vmatprep.subr.bf16.mxu0 %v4237_v3 }
 0x5d0   : > { %4083 = vmatmul.mubr.msk.bf16.vlgmr.msra.gmra.mxu1 %vm623_vm2, %v2172_v9 }
 0x5d1   : > { %4089 = vmatpush3.bf16.msra.mxu0 %v4237_v3 }
 0x669   : > { %v2213_v62 = vpop.f32.mrf.mxu0 }
 0x66b   : > { %v4042_v33 = vpop.f32.mrf.mxu0 }
 0x66d   : > { %v2216_v10 = vpop.f32.mrf.mxu0 }
 0x66e   : > { %v4186_v15 = vpack.i.bf16 %v2216_v10, %v2213_v62 }
 0x66f   : > { %v4043_v53 = vpop.f32.mrf.mxu0 }
 0x670   : > { %4187 = vrot.lane.b32.xlu0 %v4186_v15, %s4451_s13 }
 0x678   : > { %v2260_v50 = vpop.f32.mrf.mxu1 }
 0x67a   : > { %v4048_v38 = vpop.f32.mrf.mxu1 }
 0x67c   : > { %v2263_v57 = vpop.f32.mrf.mxu1  ;;  %v2307_v36 = vpop.f32.mrf.mxu0 }
 0x67d   : > { %v4191_v11 = vpack.i.bf16 %v2263_v57, %v2260_v50 }
 0x67e   : > { %v4049_v2 = vpop.f32.mrf.mxu1  ;;  %v4054_v17 = vpop.f32.mrf.mxu0 }
 0x67f   : > { %4192 = vrot.lane.b32.xlu1 %v4191_v11, %s4451_s13 }
 0x680   : > { %v2310_v56 = vpop.f32.mrf.mxu0  ;;  %v2354_v31 = vpop.f32.mrf.mxu1 }
 0x681   : > { %v4196_v1 = vpack.i.bf16 %v2310_v56, %v2307_v36 }
 0x682   : > { %v4055_v26 = vpop.f32.mrf.mxu0  ;;  %v4060_v12 = vpop.f32.mrf.mxu1 }
 0x683   : > { %4197 = vrot.lane.b32.xlu0 %v4196_v1, %s4451_s13 }
 0x684   : > { %v2357_v63 = vpop.f32.mrf.mxu1  ;;  %v2401_v49 = vpop.f32.mrf.mxu0 }
 0x685   : > { %v4201_v54 = vpack.i.bf16 %v2357_v63, %v2354_v31 }
 0x686   : > { %v4061_v7 = vpop.f32.mrf.mxu1  ;;  %v4066_v4 = vpop.f32.mrf.mxu0 }
 0x687   : > { %4202 = vrot.lane.b32.xlu1 %v4201_v54, %s4451_s13 }
 0x688   : > { %v2404_v41 = vpop.f32.mrf.mxu0  ;;  %v2448_v5 = vpop.f32.mrf.mxu1 }
 0x689   : > { %v4206_v47 = vpack.i.bf16 %v2404_v41, %v2401_v49 }
 0x68a   : > { %v4067_v14 = vpop.f32.mrf.mxu0  ;;  %v4072_v48 = vpop.f32.mrf.mxu1 }
 0x68b   : > { %4207 = vrot.lane.b32.xlu0 %v4206_v47, %s4451_s13 }
 0x68c   : > { %v2451_v59 = vpop.f32.mrf.mxu1  ;;  %v2495_v19 = vpop.f32.mrf.mxu0 }
 0x68d   : > { %v4211_v0 = vpack.i.bf16 %v2451_v59, %v2448_v5 }
 0x68e   : > { %v4073_v37 = vpop.f32.mrf.mxu1  ;;  %v4078_v30 = vpop.f32.mrf.mxu0 }
 0x68f   : > { %4212 = vrot.lane.b32.xlu1 %v4211_v0, %s4451_s13  ;;  %v4413_v37 = vld [vmem:[%s4534_s21] sm:$0xff]  }
 0x690   : > { %v2498_v22 = vpop.f32.mrf.mxu0  ;;  %v2542_v51 = vpop.f32.mrf.mxu1  ;;  %v2781_v30 = vunpack.c.l.bf16 %v4413_v37 }
 0x691   : > { %v4216_v25 = vpack.i.bf16 %v2498_v22, %v2495_v19 }
 0x692   : > { %v4079_v61 = vpop.f32.mrf.mxu0  ;;  %v4084_v43 = vpop.f32.mrf.mxu1 }
 0x693   : > { %4217 = vrot.lane.b32.xlu0 %v4216_v25, %s4451_s13 }
 0x694   : > { %v2545_v45 = vpop.f32.mrf.mxu1 }
 0x695   : > { %v4221_v44 = vpack.i.bf16 %v2545_v45, %v2542_v51 }
 0x696   : > { %v4085_v23 = vpop.f32.mrf.mxu1 }
 0x697   : > { %4222 = vrot.lane.b32.xlu1 %v4221_v44, %s4451_s13  ;;  %v2782_v44 = vunpack.c.h.bf16 %v4413_v37 }
 0x6e2   : > { %v4188_v8 = vpop.permute.xlu0 %4187 }
 0x6e3   : > { %v4190_v60 = vunpack.i.h.bf16 %v4188_v8  ;;  %v4189_v24 = vunpack.i.l.bf16 %v4188_v8 }
 0x6e5   : > { %v2614_v46 = vsel %vm623_vm2, %v4951_v20, %v4190_v60  ;;  %v2613_v55 = vsel %vm623_vm2, %v4949_v42, %v4189_v24 }
 0x6e6   : > { %v2629_v9 = vpack.c.bf16 %v2614_v46, %v2613_v55  ;;  %v4414_v55 = vld [vmem:[%s4534_s21 + $0x18] sm:$0xff]  }
 0x6e8   : > { %4090 = vmatprep.mubr.msk.bf16.mxu0 %vm490_vm0, %v2629_v9  ;;  %v2787_v9 = vunpack.c.l.bf16 %v4414_v55 }
 0x6f1   : > { %v4193_v52 = vpop.permute.xlu1 %4192 }
 0x6f2   : > { %v4195_v62 = vunpack.i.h.bf16 %v4193_v52  ;;  %v4194_v33 = vunpack.i.l.bf16 %v4193_v52 }
 0x6f4   : > { %v2616_v10 = vsel %vm623_vm2, %v4955_v28, %v4195_v62  ;;  %v2615_v15 = vsel %vm623_vm2, %v4953_v13, %v4194_v33 }
 0x6f5   : > { %v2630_v53 = vpack.c.bf16 %v2616_v10, %v2615_v15  ;;  %v4198_v3 = vpop.permute.xlu0 %4197  ;;  %v4415_v10 = vld [vmem:[%s4534_s21 + $0x10] sm:$0xff]  }
 0x6f6   : > { %v4200_v50 = vunpack.i.h.bf16 %v4198_v3  ;;  %v4199_v38 = vunpack.i.l.bf16 %v4198_v3  ;;  %v2785_v15 = vunpack.c.l.bf16 %v4415_v10 }
 0x6f7   : > { %4091 = vmatmul.mubr.msk.bf16.vlgmr.msra.gmra.mxu0 %vm490_vm0, %v2630_v53 }
 0x6f8   : > { %v2618_v42 = vsel %vm623_vm2, %v4959_v16, %v4200_v50  ;;  %v2617_v20 = vsel %vm623_vm2, %v4957_v18, %v4199_v38  ;;  %v2788_v38 = vunpack.c.h.bf16 %v4414_v55 }
 0x6f9   : > { %v2631_v57 = vpack.c.bf16 %v2618_v42, %v2617_v20  ;;  %v4203_v36 = vpop.permute.xlu1 %4202 }
 0x6fa   : > { %v4205_v11 = vunpack.i.h.bf16 %v4203_v36  ;;  %v4204_v2 = vunpack.i.l.bf16 %v4203_v36  ;;  %v2786_v36 = vunpack.c.h.bf16 %v4415_v10 }
 0x6fb   : > { %4094 = vmatprep.mubr.msk.bf16.mxu0 %vm490_vm0, %v2631_v57 }
 0x6fc   : > { %v2620_v13 = vsel %vm623_vm2, %v4963_v6, %v4205_v11  ;;  %v2619_v28 = vsel %vm623_vm2, %v4961_v29, %v4204_v2 }
 0x6fd   : > { %v2632_v17 = vpack.c.bf16 %v2620_v13, %v2619_v28  ;;  %v4208_v56 = vpop.permute.xlu0 %4207  ;;  %v4416_v28 = vld [vmem:[%s4534_s21 + $0x28] sm:$0xff]  }
 0x6fe   : > { %v4210_v31 = vunpack.i.h.bf16 %v4208_v56  ;;  %v4209_v1 = vunpack.i.l.bf16 %v4208_v56 }
 0x6ff   : > { %4095 = vmatmul.mubr.msk.bf16.gmra.mxu0 %vm490_vm0, %v2632_v17  ;;  %v2791_v17 = vunpack.c.l.bf16 %v4416_v28 }
 0x700   : > { %v2622_v18 = vsel %vm623_vm2, %v4967_v35, %v4210_v31  ;;  %v2621_v16 = vsel %vm623_vm2, %v4965_v34, %v4209_v1  ;;  %v4417_v31 = vld [vmem:[%s4534_s21 + $0x20] sm:$0xff]  }
 0x701   : > { %v2633_v26 = vpack.c.bf16 %v2622_v18, %v2621_v16  ;;  %v4213_v12 = vpop.permute.xlu1 %4212  ;;  %v2789_v1 = vunpack.c.l.bf16 %v4417_v31 }
 0x702   : > { %v4215_v63 = vunpack.i.h.bf16 %v4213_v12  ;;  %v4214_v49 = vunpack.i.l.bf16 %v4213_v12 }
 0x703   : > { %4098 = vmatprep.mubr.msk.bf16.mxu0 %vm490_vm0, %v2633_v26 }
 0x704   : > { %v2624_v29 = vsel %vm623_vm2, %v4971_v27, %v4215_v63  ;;  %v2623_v6 = vsel %vm623_vm2, %v4969_v39, %v4214_v49 }
 0x705   : > { %v2634_v54 = vpack.c.bf16 %v2624_v29, %v2623_v6  ;;  %v4218_v7 = vpop.permute.xlu0 %4217 }
 0x706   : > { %v4220_v4 = vunpack.i.h.bf16 %v4218_v7  ;;  %v4219_v41 = vunpack.i.l.bf16 %v4218_v7  ;;  %v2792_v7 = vunpack.c.h.bf16 %v4416_v28  ;;  %v4243_v28 = vld [vmem:[%s5605_s7] sm:$0xff]  }
 0x707   : > { %4099 = vmatmul.mubr.msk.bf16.gmra.mxu0 %vm490_vm0, %v2634_v54 }
 0x708   : > { %v2626_v34 = vsel %vm623_vm2, %v4975_v40, %v4220_v4  ;;  %v2625_v35 = vsel %vm623_vm2, %v4973_v21, %v4219_v41  ;;  %v4238_v21 = vld [vmem:[%s5603_s5 + $0x8] sm:$0xff]   ;;  %v4239_v40 = vld [vmem:[%s5603_s5] sm:$0xff]  }
 0x709   : > { %v2635_v5 = vpack.c.bf16 %v2626_v34, %v2625_v35  ;;  %v4223_v47 = vpop.permute.xlu1 %4222  ;;  %4106 = vmatprep.subr.bf16.mxu1 %v4238_v21  ;;  %v2790_v35 = vunpack.c.h.bf16 %v4417_v31 }
 0x70a   : > { %v4225_v14 = vunpack.i.h.bf16 %v4223_v47  ;;  %v4224_v27 = vunpack.i.l.bf16 %v4223_v47  ;;  %4107 = vmatpush3.bf16.msra.mxu1 %v4238_v21 }
 0x70b   : > { %4102 = vmatprep.mubr.msk.bf16.mxu0 %vm490_vm0, %v2635_v5  ;;  %4108 = vmatprep.subr.bf16.mxu1 %v4239_v40 }
 0x70c   : > { %v2628_v39 = vsel %vm623_vm2, %v4991_v58, %v4225_v14  ;;  %v2627_v48 = vsel %vm623_vm2, %v4985_v32, %v4224_v27  ;;  %v5246_v58 = vld [vmem:[%s5602_s4] ss:$0 sm:$0xff]  ;;  %v4412_v32 = vld [vmem:[%s4534_s21 + $0x8] sm:$0xff]  }
 0x70d   : > { %v2636_v59 = vpack.c.bf16 %v2628_v39, %v2627_v48  ;;  %v2783_v19 = vunpack.c.l.bf16 %v4412_v32  ;;  %v2784_v43 = vunpack.c.h.bf16 %v4412_v32  ;;  %v4418_v48 = vld [vmem:[%s4534_s21 + $0x38] sm:$0xff]  }
 0x70e   : > { %4109 = vmatpush3.bf16.msra.mxu1 %v4239_v40 }
 0x70f   : > { %4103 = vmatmul.mubr.msk.bf16.gmra.mxu0 %vm490_vm0, %v2636_v59  ;;  %v2795_v59 = vunpack.c.l.bf16 %v4418_v48 }
 0x7b7   : > { %v4092_v0 = vpop.f32.mrf.mxu0 }
 0x7b8   : > { %v2727_v22 = vadd.f32 %v4092_v0, %v5246_v58  ;;  %v4419_v0 = vld [vmem:[%s4534_s21 + $0x30] sm:$0xff]  }
 0x7b9   : > { %v2718_v51 = vpop.f32.mrf.mxu0  ;;  %v2793_v37 = vunpack.c.l.bf16 %v4419_v0 }
 0x7ba   : > { %v2799_v25 = vadd.f32 %v2783_v19, %v2727_v22  ;;  %v2719_v61 = vadd.f32 %v5246_v58, %v2718_v51 }
 0x7bb   : > { %v4093_v45 = vpop.f32.mrf.mxu0 }
 0x7bc   : > { %2815 = vst.msk [vmem:[#allocation2 + $0x10] sm:$0xff] %vm490_vm0, %v2799_v25  ;;  %v2797_v23 = vadd.f32 %v2781_v30, %v2719_v61  ;;  %v2730_v8 = vadd.f32 %v4093_v45, %v5246_v58  ;;  %v2796_v45 = vunpack.c.h.bf16 %v4418_v48 }
 0x7bd   : > { %v2721_v60 = vpop.f32.mrf.mxu0 }
 0x7be   : > { %2813 = vst.msk [vmem:[#allocation2] sm:$0xff] %vm490_vm0, %v2797_v23  ;;  %v2800_v24 = vadd.f32 %v2784_v43, %v2730_v8  ;;  %v2722_v46 = vadd.f32 %v5246_v58, %v2721_v60 }
 0x7bf   : > { %v4096_v52 = vpop.f32.mrf.mxu0 }
 0x7c0   : > { %2816 = vst.msk [vmem:[#allocation2 + $0x18] sm:$0xff] %vm490_vm0, %v2800_v24  ;;  %v2798_v62 = vadd.f32 %v2782_v44, %v2722_v46  ;;  %v2743_v33 = vadd.f32 %v4096_v52, %v5246_v58  ;;  %v2794_v46 = vunpack.c.h.bf16 %v4419_v0 }
 0x7c1   : > { %v2734_v53 = vpop.f32.mrf.mxu0 }
 0x7c2   : > { %2814 = vst.msk [vmem:[#allocation2 + $0x8] sm:$0xff] %vm490_vm0, %v2798_v62  ;;  %v2803_v3 = vadd.f32 %v2787_v9, %v2743_v33  ;;  %v2735_v50 = vadd.f32 %v5246_v58, %v2734_v53 }
 0x7c3   : > { %v4097_v42 = vpop.f32.mrf.mxu0  ;;  %v5276_v29 = vld [vmem:[#allocation2 + $0x10] sm:$0xff] }
 0x7c4   : > { %2819 = vst.msk [vmem:[#allocation2 + $0x30] sm:$0xff] %vm490_vm0, %v2803_v3  ;;  %v2801_v20 = vadd.f32 %v2785_v15, %v2735_v50  ;;  %v2746_v57 = vadd.f32 %v4097_v42, %v5246_v58 }
 0x7c5   : > { %v2737_v11 = vpop.f32.mrf.mxu0  ;;  %v5272_v12 = vld [vmem:[#allocation2] sm:$0xff] }
 0x7c6   : > { %2817 = vst.msk [vmem:[#allocation2 + $0x20] sm:$0xff] %vm490_vm0, %v2801_v20  ;;  %v2804_v2 = vadd.f32 %v2788_v38, %v2746_v57  ;;  %v2738_v13 = vadd.f32 %v5246_v58, %v2737_v11  ;;  %v4240_v11 = vld [vmem:[%s5605_s7 + $0x18] sm:$0xff]  }
 0x7c7   : > { %v4100_v56 = vpop.f32.mrf.mxu0  ;;  %v5268_v18 = vld [vmem:[#allocation2 + $0x18] sm:$0xff]  ;;  %4126 = vmatprep.subr.bf16.mxu0 %v4240_v11 }
 0x7c8   : > { %2820 = vst.msk [vmem:[#allocation2 + $0x38] sm:$0xff] %vm490_vm0, %v2804_v2  ;;  %v2802_v16 = vadd.f32 %v2786_v36, %v2738_v13  ;;  %v2759_v26 = vadd.f32 %v4100_v56, %v5246_v58  ;;  %v2862_v34 = vpack.c.bf16 %v5268_v18, %v5276_v29  ;;  %4127 = vmatpush3.bf16.msra.mxu0 %v4240_v11  ;;  %v4241_v2 = vld [vmem:[%s5605_s7 + $0x10] sm:$0xff]   ;;  %v4242_v13 = vld [vmem:[%s5605_s7 + $0x8] sm:$0xff]  }
 0x7c9   : > { %v5274_v63 = vld [vmem:[#allocation2 + $0x8] sm:$0xff]  ;;  %v2750_v49 = vpop.f32.mrf.mxu0  ;;  %4128 = vmatprep.subr.bf16.mxu0 %v4241_v2 }
 0x7ca   : > { %2818 = vst.msk [vmem:[#allocation2 + $0x28] sm:$0xff] %vm490_vm0, %v2802_v16  ;;  %v2807_v6 = vadd.f32 %v2791_v17, %v2759_v26  ;;  %v2751_v54 = vadd.f32 %v5246_v58, %v2750_v49  ;;  %v2861_v4 = vpack.c.bf16 %v5274_v63, %v5272_v12  ;;  %v5359_v17 = vld [vmem:[%s5604_s6] ss:$0 sm:$0xff] }
 0x7cb   : > { %v4101_v41 = vpop.f32.mrf.mxu0  ;;  %v5300_v25 = vld [vmem:[#allocation2 + $0x30] sm:$0xff] }
 0x7cc   : > { %2823 = vst.msk [vmem:[#allocation2 + $0x50] sm:$0xff] %vm490_vm0, %v2807_v6  ;;  %v2805_v5 = vadd.f32 %v2789_v1, %v2751_v54  ;;  %v2762_v47 = vadd.f32 %v4101_v41, %v5246_v58  ;;  %4110 = vmatprep.mubr.msk.bf16.mxu1 %vm490_vm0, %v2861_v4  ;;  %4129 = vmatpush3.bf16.msra.mxu0 %v4241_v2 }
 0x7cd   : > { %v2753_v14 = vpop.f32.mrf.mxu0  ;;  %4111 = vmatmul.mubr.msk.bf16.vlgmr.msra.gmra.mxu1 %vm490_vm0, %v2862_v34  ;;  %v5296_v30 = vld [vmem:[#allocation2 + $0x20] sm:$0xff]  ;;  %4130 = vmatprep.subr.bf16.mxu0 %v4242_v13 }
 0x7ce   : > { %2821 = vst.msk [vmem:[#allocation2 + $0x40] sm:$0xff] %vm490_vm0, %v2805_v5  ;;  %v2808_v27 = vadd.f32 %v2792_v7, %v2762_v47  ;;  %v2754_v39 = vadd.f32 %v5246_v58, %v2753_v14 }
 0x7cf   : > { %v4104_v21 = vpop.f32.mrf.mxu0  ;;  %v5291_v40 = vld [vmem:[#allocation2 + $0x38] sm:$0xff] }
 0x7d0   : > { %2824 = vst.msk [vmem:[#allocation2 + $0x58] sm:$0xff] %vm490_vm0, %v2808_v27  ;;  %v2806_v32 = vadd.f32 %v2790_v35, %v2754_v39  ;;  %v2775_v19 = vadd.f32 %v4104_v21, %v5246_v58  ;;  %v2864_v8 = vpack.c.bf16 %v5291_v40, %v5300_v25  ;;  %4131 = vmatpush3.bf16.msra.mxu0 %v4242_v13 }
 0x7d1   : > { %v5298_v22 = vld [vmem:[#allocation2 + $0x28] sm:$0xff]  ;;  %v2766_v51 = vpop.f32.mrf.mxu0  ;;  %4132 = vmatprep.subr.bf16.mxu0 %v4243_v28 }
 0x7d2   : > { %2822 = vst.msk [vmem:[#allocation2 + $0x48] sm:$0xff] %vm490_vm0, %v2806_v32  ;;  %v2811_v61 = vadd.f32 %v2795_v59, %v2775_v19  ;;  %v2767_v43 = vadd.f32 %v5246_v58, %v2766_v51  ;;  %v2863_v44 = vpack.c.bf16 %v5298_v22, %v5296_v30 }
 0x7d3   : > { %v4105_v23 = vpop.f32.mrf.mxu0  ;;  %v5321_v53 = vld [vmem:[#allocation2 + $0x50] sm:$0xff] }
 0x7d4   : > { %2827 = vst.msk [vmem:[#allocation2 + $0x70] sm:$0xff] %vm490_vm0, %v2811_v61  ;;  %v2809_v60 = vadd.f32 %v2793_v37, %v2767_v43  ;;  %v2778_v24 = vadd.f32 %v4105_v23, %v5246_v58  ;;  %4114 = vmatprep.mubr.msk.bf16.mxu1 %vm490_vm0, %v2863_v44  ;;  %4133 = vmatpush3.bf16.msra.mxu0 %v4243_v28 }
 0x7d5   : > { %v2769_v55 = vpop.f32.mrf.mxu0  ;;  %4115 = vmatmul.mubr.msk.bf16.gmra.mxu1 %vm490_vm0, %v2864_v8  ;;  %v5317_v10 = vld [vmem:[#allocation2 + $0x40] sm:$0xff] }
 0x7d6   : > { %2825 = vst.msk [vmem:[#allocation2 + $0x60] sm:$0xff] %vm490_vm0, %v2809_v60  ;;  %v2812_v9 = vadd.f32 %v2796_v45, %v2778_v24  ;;  %v2770_v52 = vadd.f32 %v5246_v58, %v2769_v55 }
 0x7d7   : > { %v5314_v62 = vld [vmem:[#allocation2 + $0x58] sm:$0xff] }
 0x7d8   : > { %2828 = vst.msk [vmem:[#allocation2 + $0x78] sm:$0xff] %vm490_vm0, %v2812_v9  ;;  %v2810_v33 = vadd.f32 %v2794_v46, %v2770_v52  ;;  %v2866_v50 = vpack.c.bf16 %v5314_v62, %v5321_v53 }
 0x7d9   : > { %v5319_v15 = vld [vmem:[#allocation2 + $0x48] sm:$0xff] }
 0x7da   : > { %2826 = vst.msk [vmem:[#allocation2 + $0x68] sm:$0xff] %vm490_vm0, %v2810_v33  ;;  %v2865_v3 = vpack.c.bf16 %v5319_v15, %v5317_v10 }
 0x7db   : > { %v5336_v20 = vld [vmem:[#allocation2 + $0x70] sm:$0xff] }
 0x7dc   : > { %4118 = vmatprep.mubr.msk.bf16.mxu1 %vm490_vm0, %v2865_v3 }
 0x7dd   : > { %4119 = vmatmul.mubr.msk.bf16.gmra.mxu1 %vm490_vm0, %v2866_v50  ;;  %v5332_v38 = vld [vmem:[#allocation2 + $0x60] sm:$0xff] }
 0x7df   : > { %v5330_v58 = vld [vmem:[#allocation2 + $0x78] sm:$0xff] }
 0x7e0   : > { %v2868_v36 = vpack.c.bf16 %v5330_v58, %v5336_v20 }
 0x7e1   : > { %v5334_v42 = vld [vmem:[#allocation2 + $0x68] sm:$0xff] }
 0x7e2   : > { %v2867_v57 = vpack.c.bf16 %v5334_v42, %v5332_v38 }
 0x7e4   : > { %4122 = vmatprep.mubr.msk.bf16.mxu1 %vm490_vm0, %v2867_v57 }
 0x7e5   : > { %4123 = vmatmul.mubr.msk.bf16.gmra.mxu1 %vm490_vm0, %v2868_v36 }
 0x88d   : > { %v4112_v56 = vpop.f32.mrf.mxu1 }
 0x88e   : > { %v5362_v31 = vadd.f32 %v4112_v56, %v5359_v17 }
 0x88f   : > { %v2951_v1 = vpop.f32.mrf.mxu1 }
 0x890   : > { %v3016_v16 = vmul.f32 %v5362_v31, %v5362_v31  ;;  %v5367_v26 = vadd.f32 %v5359_v17, %v2951_v1 }
 0x891   : > { %v4113_v49 = vpop.f32.mrf.mxu1 }
 0x892   : > { %v3032_v6 = vmul.f32 %v3016_v16, %v5362_v31  ;;  %v3014_v54 = vmul.f32 %v5367_v26, %v5367_v26  ;;  %v5373_v7 = vadd.f32 %v4113_v49, %v5359_v17 }
 0x893   : > { %v2954_v4 = vpop.f32.mrf.mxu1 }
 0x894   : > { %v3048_v41 = vmul.f32 0.044715, %v3032_v6  ;;  %v3030_v34 = vmul.f32 %v3014_v54, %v5367_v26  ;;  %v3017_v35 = vmul.f32 %v5373_v7, %v5373_v7  ;;  %v5379_v5 = vadd.f32 %v5359_v17, %v2954_v4 }
 0x895   : > { %v4116_v47 = vpop.f32.mrf.mxu1 }
 0x896   : > { %v3064_v14 = vadd.f32 %v3048_v41, %v5362_v31  ;;  %v3046_v27 = vmul.f32 0.044715, %v3030_v34  ;;  %v3033_v39 = vmul.f32 %v3017_v35, %v5373_v7  ;;  %v3015_v48 = vmul.f32 %v5379_v5, %v5379_v5 }
 0x897   : > { %v5386_v59 = vadd.f32 %v4116_v47, %v5359_v17  ;;  %v2967_v21 = vpop.f32.mrf.mxu1 }
 0x898   : > { %v3080_v32 = vmul.f32 0.7978846, %v3064_v14  ;;  %v3062_v19 = vadd.f32 %v3046_v27, %v5367_v26  ;;  %v3049_v0 = vmul.f32 0.044715, %v3033_v39  ;;  %v3031_v37 = vmul.f32 %v3015_v48, %v5379_v5 }
 0x899   : > { %v3020_v51 = vmul.f32 %v5386_v59, %v5386_v59  ;;  %v5393_v61 = vadd.f32 %v5359_v17, %v2967_v21  ;;  %v4117_v43 = vpop.f32.mrf.mxu1 }
 0x89a   : > { %4380 = vtanh.f32 %v3080_v32  ;;  %v3078_v45 = vmul.f32 0.7978846, %v3062_v19  ;;  %v3065_v44 = vadd.f32 %v3049_v0, %v5373_v7  ;;  %v3047_v23 = vmul.f32 0.044715, %v3031_v37 }
 0x89b   : > { %v3036_v8 = vmul.f32 %v3020_v51, %v5386_v59  ;;  %v3018_v60 = vmul.f32 %v5393_v61, %v5393_v61  ;;  %v5400_v24 = vadd.f32 %v4117_v43, %v5359_v17  ;;  %v2970_v46 = vpop.f32.mrf.mxu1 }
 0x89c   : > { %4382 = vtanh.f32 %v3078_v45  ;;  %v3081_v55 = vmul.f32 0.7978846, %v3065_v44  ;;  %v3063_v9 = vadd.f32 %v3047_v23, %v5379_v5  ;;  %v5404_v52 = vadd.f32 %v5359_v17, %v2970_v46 }
 0x89d   : > { %v3052_v33 = vmul.f32 0.044715, %v3036_v8  ;;  %v3034_v3 = vmul.f32 %v3018_v60, %v5393_v61  ;;  %v3021_v50 = vmul.f32 %v5400_v24, %v5400_v24  ;;  %v4120_v57 = vpop.f32.mrf.mxu1 }
 0x89e   : > { %4384 = vtanh.f32 %v3081_v55  ;;  %v3079_v36 = vmul.f32 0.7978846, %v3063_v9  ;;  %v3019_v11 = vmul.f32 %v5404_v52, %v5404_v52  ;;  %v5412_v2 = vadd.f32 %v4120_v57, %v5359_v17 }
 0x89f   : > { %v3068_v13 = vadd.f32 %v3052_v33, %v5386_v59  ;;  %v3050_v28 = vmul.f32 0.044715, %v3034_v3  ;;  %v3037_v56 = vmul.f32 %v3021_v50, %v5400_v24  ;;  %v2983_v1 = vpop.f32.mrf.mxu1 }
 0x8a0   : > { %4386 = vtanh.f32 %v3079_v36  ;;  %v3035_v16 = vmul.f32 %v3019_v11, %v5404_v52  ;;  %v3024_v49 = vmul.f32 %v5412_v2, %v5412_v2  ;;  %v5420_v6 = vadd.f32 %v5359_v17, %v2983_v1 }
 0x8a1   : > { %v3084_v54 = vmul.f32 0.7978846, %v3068_v13  ;;  %v3066_v4 = vadd.f32 %v3050_v28, %v5393_v61  ;;  %v3053_v41 = vmul.f32 0.044715, %v3037_v56  ;;  %v4121_v34 = vpop.f32.mrf.mxu1 }
 0x8a2   : > { %v3051_v35 = vmul.f32 0.044715, %v3035_v16  ;;  %v3040_v47 = vmul.f32 %v3024_v49, %v5412_v2  ;;  %v3022_v14 = vmul.f32 %v5420_v6, %v5420_v6  ;;  %v5427_v27 = vadd.f32 %v4121_v34, %v5359_v17 }
 0x8a3   : > { %4388 = vtanh.f32 %v3084_v54  ;;  %v3082_v39 = vmul.f32 0.7978846, %v3066_v4  ;;  %v3069_v48 = vadd.f32 %v3053_v41, %v5400_v24  ;;  %v2986_v21 = vpop.f32.mrf.mxu1 }
 0x8a4   : > { %v3067_v32 = vadd.f32 %v3051_v35, %v5404_v52  ;;  %v3056_v19 = vmul.f32 0.044715, %v3040_v47  ;;  %v3038_v0 = vmul.f32 %v3022_v14, %v5420_v6  ;;  %v3025_v37 = vmul.f32 %v5427_v27, %v5427_v27 }
 0x8a5   : > { %4390 = vtanh.f32 %v3082_v39  ;;  %v3085_v51 = vmul.f32 0.7978846, %v3069_v48  ;;  %v5435_v43 = vadd.f32 %v5359_v17, %v2986_v21  ;;  %v4124_v45 = vpop.f32.mrf.mxu1 }
 0x8a6   : > { %v3083_v44 = vmul.f32 0.7978846, %v3067_v32  ;;  %v3072_v23 = vadd.f32 %v3056_v19, %v5412_v2  ;;  %v3054_v8 = vmul.f32 0.044715, %v3038_v0  ;;  %v3041_v60 = vmul.f32 %v3025_v37, %v5427_v27 }
 0x8a7   : > { %v4381_v46 = vpop.eup %4380  ;;  %4392 = vtanh.f32 %v3085_v51  ;;  %v3023_v55 = vmul.f32 %v5435_v43, %v5435_v43  ;;  %v5442_v9 = vadd.f32 %v4124_v45, %v5359_v17  ;;  %v2999_v33 = vpop.f32.mrf.mxu1 }
 0x8a8   : > { %4394 = vtanh.f32 %v3083_v44  ;;  %v3088_v3 = vmul.f32 0.7978846, %v3072_v23  ;;  %v3070_v50 = vadd.f32 %v3054_v8, %v5420_v6  ;;  %v3057_v36 = vmul.f32 0.044715, %v3041_v60 }
 0x8a9   : > { %v4383_v57 = vpop.eup %4382  ;;  %v3039_v11 = vmul.f32 %v3023_v55, %v5435_v43  ;;  %v3028_v13 = vmul.f32 %v5442_v9, %v5442_v9  ;;  %v5449_v28 = vadd.f32 %v5359_v17, %v2999_v33  ;;  %v4125_v56 = vpop.f32.mrf.mxu1  ;;  %v3112_v1 = vadd.f32 1.0, %v4381_v46 }
 0x8aa   : > { %v3110_v16 = vadd.f32 1.0, %v4383_v57  ;;  %4396 = vtanh.f32 %v3088_v3  ;;  %v3086_v49 = vmul.f32 0.7978846, %v3070_v50  ;;  %v3073_v4 = vadd.f32 %v3057_v36, %v5427_v27 }
 0x8ab   : > { %v4385_v54 = vpop.eup %4384  ;;  %v3055_v41 = vmul.f32 0.044715, %v3039_v11  ;;  %v3044_v34 = vmul.f32 %v3028_v13, %v5442_v9  ;;  %v3026_v35 = vmul.f32 %v5449_v28, %v5449_v28  ;;  %v3002_v19 = vpop.f32.mrf.mxu1  ;;  %v5458_v45 = vadd.f32 %v4125_v56, %v5359_v17 }
 0x8ac   : > { %v3113_v47 = vadd.f32 1.0, %v4385_v54  ;;  %4398 = vtanh.f32 %v3086_v49  ;;  %v3089_v39 = vmul.f32 0.7978846, %v3073_v4  ;;  %v3126_v0 = vmul.f32 0.5, %v3110_v16 }
 0x8ad   : > { %v4387_v14 = vpop.eup %4386  ;;  %v3071_v48 = vadd.f32 %v3055_v41, %v5435_v43  ;;  %v3060_v21 = vmul.f32 0.044715, %v3044_v34  ;;  %v3042_v32 = vmul.f32 %v3026_v35, %v5449_v28  ;;  %v3128_v44 = vmul.f32 0.5, %v3112_v1 }
 0x8ae   : > { %v3129_v37 = vmul.f32 0.5, %v3113_v47  ;;  %v3111_v51 = vadd.f32 1.0, %v4387_v14  ;;  %4400 = vtanh.f32 %v3089_v39  ;;  %v3029_v33 = vmul.f32 %v5458_v45, %v5458_v45 }
 0x8af   : > { %v3087_v23 = vmul.f32 0.7978846, %v3071_v48  ;;  %v3058_v8 = vmul.f32 0.044715, %v3042_v32  ;;  %v3076_v55 = vadd.f32 %v3060_v21, %v5442_v9  ;;  %v5464_v3 = vadd.f32 %v5359_v17, %v3002_v19 }
 0x8b0   : > { %v4389_v60 = vpop.eup %4388  ;;  %v3127_v46 = vmul.f32 0.5, %v3111_v51  ;;  %v3145_v50 = vmul.f32 %v3129_v37, %v5373_v7  ;;  %v3142_v11 = vmul.f32 %v3126_v0, %v5367_v26  ;;  %v3045_v56 = vmul.f32 %v3029_v33, %v5458_v45 }
 0x8b1   : > { %4402 = vtanh.f32 %v3087_v23  ;;  %v3074_v57 = vadd.f32 %v3058_v8, %v5449_v28  ;;  %v3027_v1 = vmul.f32 %v5464_v3, %v5464_v3  ;;  %v3144_v16 = vmul.f32 %v3128_v44, %v5362_v31 }
 0x8b2   : > { %v4391_v36 = vpop.eup %4390  ;;  %v3143_v13 = vmul.f32 %v3127_v46, %v5379_v5  ;;  %v3116_v17 = vadd.f32 1.0, %v4389_v60  ;;  %v3092_v4 = vmul.f32 0.7978846, %v3076_v55  ;;  %v3061_v41 = vmul.f32 0.044715, %v3045_v56 }
 0x8b3   : > { %v3114_v49 = vadd.f32 1.0, %v4391_v36  ;;  %v3090_v54 = vmul.f32 0.7978846, %v3074_v57  ;;  %v3043_v34 = vmul.f32 %v3027_v1, %v5464_v3  ;;  %v3175_v26 = vpack.c.bf16 %v3145_v50, %v3144_v16 }
 0x8b4   : > { %v4393_v7 = vpop.eup %4392  ;;  %v3174_v35 = vpack.c.bf16 %v3143_v13, %v3142_v11  ;;  %v3077_v48 = vadd.f32 %v3061_v41, %v5458_v45  ;;  %v3132_v32 = vmul.f32 0.5, %v3116_v17 }
 0x8b5   : > { %v4395_v47 = vpop.eup %4394  ;;  %v3117_v14 = vadd.f32 1.0, %v4393_v7  ;;  %v3130_v5 = vmul.f32 0.5, %v3114_v49  ;;  %v3059_v21 = vmul.f32 0.044715, %v3043_v34  ;;  %4404 = vtanh.f32 %v3090_v54 }
 0x8b6   : > { %v3115_v39 = vadd.f32 1.0, %v4395_v47  ;;  %4134 = vmatprep.mubr.msk.bf16.mxu0 %vm3214_vm3, %v3174_v35  ;;  %4406 = vtanh.f32 %v3092_v4  ;;  %v3093_v37 = vmul.f32 0.7978846, %v3077_v48  ;;  %v3148_v46 = vmul.f32 %v3132_v32, %v5386_v59 }
 0x8b7   : > { %v4397_v31 = vpop.eup %4396  ;;  %v3133_v19 = vmul.f32 0.5, %v3117_v14  ;;  %4135 = vmatmul.mubr.msk.bf16.vlgmr.msra.gmra.mxu0 %vm3214_vm3, %v3175_v26  ;;  %v3075_v51 = vadd.f32 %v3059_v21, %v5464_v3  ;;  %v3146_v8 = vmul.f32 %v3130_v5, %v5393_v61 }
 0x8b8   : > { %v3131_v0 = vmul.f32 0.5, %v3115_v39  ;;  %4408 = vtanh.f32 %v3093_v37  ;;  %v3120_v57 = vadd.f32 1.0, %v4397_v31  ;;  %v3160_v37 = vld [vmem:[#allocation3 + $0x10] sm:$0xff] }
 0x8b9   : > { %v4399_v44 = vpop.eup %4398  ;;  %v3149_v23 = vmul.f32 %v3133_v19, %v5400_v24  ;;  %v3091_v33 = vmul.f32 0.7978846, %v3075_v51 }
 0x8ba   : > { %v3147_v60 = vmul.f32 %v3131_v0, %v5404_v52  ;;  %v3118_v55 = vadd.f32 1.0, %v4399_v44  ;;  %v3136_v61 = vmul.f32 0.5, %v3120_v57  ;;  %v3158_v44 = vld [vmem:[#allocation3] sm:$0xff] }
 0x8bb   : > { %v4401_v50 = vpop.eup %4400  ;;  %4410 = vtanh.f32 %v3091_v33  ;;  %v3177_v13 = vpack.c.bf16 %v3149_v23, %v3148_v46  ;;  %v3159_v46 = vld [vmem:[#allocation3 + $0x8] sm:$0xff]  ;;  %v3162_v57 = vld [vmem:[#allocation3 + $0x20] sm:$0xff] }
 0x8bc   : > { %v3176_v36 = vpack.c.bf16 %v3147_v60, %v3146_v8  ;;  %v3121_v11 = vadd.f32 1.0, %v4401_v50  ;;  %v3134_v1 = vmul.f32 0.5, %v3118_v55  ;;  %v3152_v7 = vmul.f32 %v3136_v61, %v5412_v2  ;;  %v3161_v60 = vld [vmem:[#allocation3 + $0x18] sm:$0xff]  ;;  %v3164_v55 = vld [vmem:[#allocation3 + $0x30] sm:$0xff] }
 0x8be   : > { %v4403_v56 = vpop.eup %4402  ;;  %4138 = vmatprep.mubr.msk.bf16.mxu0 %vm3214_vm3, %v3176_v36  ;;  %v3137_v24 = vmul.f32 0.5, %v3121_v11  ;;  %v3150_v17 = vmul.f32 %v3134_v1, %v5420_v6  ;;  %v3165_v1 = vld [vmem:[#allocation3 + $0x38] sm:$0xff] }
 0x8bf   : > { %v3119_v16 = vadd.f32 1.0, %v4403_v56  ;;  %4139 = vmatmul.mubr.msk.bf16.gmra.mxu0 %vm3214_vm3, %v3177_v13  ;;  %v5504_v13 = vld [vmem:[%s5606_s8] ss:$0 sm:$0xff] }
 0x8c0   : > { %v3153_v59 = vmul.f32 %v3137_v24, %v5427_v27 }
 0x8c1   : > { %v3135_v52 = vmul.f32 0.5, %v3119_v16 }
 0x8c2   : > { %v4405_v54 = vpop.eup %4404  ;;  %v3179_v34 = vpack.c.bf16 %v3153_v59, %v3152_v7  ;;  %v3163_v59 = vld [vmem:[#allocation3 + $0x28] sm:$0xff] }
 0x8c3   : > { %v3151_v49 = vmul.f32 %v3135_v52, %v5435_v43  ;;  %v4407_v4 = vpop.eup %4406  ;;  %v3122_v47 = vadd.f32 1.0, %v4405_v54 }
 0x8c4   : > { %v3124_v26 = vadd.f32 1.0, %v4407_v4 }
 0x8c5   : > { %v3178_v41 = vpack.c.bf16 %v3151_v49, %v3150_v17  ;;  %v4409_v35 = vpop.eup %4408  ;;  %v3138_v39 = vmul.f32 0.5, %v3122_v47 }
 0x8c6   : > { %v3125_v14 = vadd.f32 1.0, %v4409_v35  ;;  %v3140_v48 = vmul.f32 0.5, %v3124_v26  ;;  %v3168_v35 = vld [vmem:[#allocation3 + $0x50] sm:$0xff] }
 0x8c7   : > { %4142 = vmatprep.mubr.msk.bf16.mxu0 %vm3214_vm3, %v3178_v41  ;;  %v3154_v2 = vmul.f32 %v3138_v39, %v5449_v28  ;;  %v3166_v39 = vld [vmem:[#allocation3 + $0x40] sm:$0xff] }
 0x8c8   : > { %4143 = vmatmul.mubr.msk.bf16.gmra.mxu0 %vm3214_vm3, %v3179_v34  ;;  %v4411_v5 = vpop.eup %4410  ;;  %v3141_v27 = vmul.f32 0.5, %v3125_v14  ;;  %v3156_v32 = vmul.f32 %v3140_v48, %v5442_v9 }
 0x8c9   : > { %v3123_v6 = vadd.f32 1.0, %v4411_v5 }
 0x8ca   : > { %v3157_v21 = vmul.f32 %v3141_v27, %v5458_v45 }
 0x8cb   : > { %v3139_v43 = vmul.f32 0.5, %v3123_v6 }
 0x8cc   : > { %v3181_v0 = vpack.c.bf16 %v3157_v21, %v3156_v32 }
 0x8cd   : > { %v3155_v31 = vmul.f32 %v3139_v43, %v5464_v3 }
 0x8cf   : > { %v3180_v19 = vpack.c.bf16 %v3155_v31, %v3154_v2  ;;  %v3169_v31 = vld [vmem:[#allocation3 + $0x58] sm:$0xff] }
 0x8d1   : > { %4146 = vmatprep.mubr.msk.bf16.mxu0 %vm3214_vm3, %v3180_v19 }
 0x8d2   : > { %4147 = vmatmul.mubr.msk.bf16.gmra.mxu0 %vm3214_vm3, %v3181_v0 }
 0x977   : > { %v4136_v51 = vpop.f32.mrf.mxu0 }
 0x978   : > { %v3338_v23 = vadd.f32 %v4136_v51, %v3160_v37 }
 0x979   : > { %v3273_v8 = vpop.f32.mrf.mxu0 }
 0x97a   : > { %3354 = vst.msk [vmem:[#allocation3 + $0x10] sm:$0xff] %vm490_vm0, %v3338_v23  ;;  %v3336_v45 = vadd.f32 %v3273_v8, %v3158_v44  ;;  %v3167_v44 = vld [vmem:[#allocation3 + $0x48] sm:$0xff] }
 0x97b   : > { %v4137_v28 = vpop.f32.mrf.mxu0 }
 0x97c   : > { %3352 = vst.msk [vmem:[#allocation3] sm:$0xff] %vm490_vm0, %v3336_v45  ;;  %v3339_v9 = vadd.f32 %v4137_v28, %v3161_v60 }
 0x97d   : > { %v3276_v3 = vpop.f32.mrf.mxu0 }
 0x97e   : > { %3355 = vst.msk [vmem:[#allocation3 + $0x18] sm:$0xff] %vm490_vm0, %v3339_v9  ;;  %v3337_v33 = vadd.f32 %v3276_v3, %v3159_v46 }
 0x97f   : > { %v4140_v50 = vpop.f32.mrf.mxu0 }
 0x980   : > { %3353 = vst.msk [vmem:[#allocation3 + $0x8] sm:$0xff] %vm490_vm0, %v3337_v33  ;;  %v3342_v36 = vadd.f32 %v4140_v50, %v3164_v55 }
 0x981   : > { %v3389_v11 = vld [vmem:[#allocation3 + $0x10] sm:$0xff]  ;;  %v3289_v56 = vpop.f32.mrf.mxu0 }
 0x982   : > { %v3405_v24 = vadd.f32 %v3389_v11, %v5276_v29  ;;  %3358 = vst.msk [vmem:[#allocation3 + $0x30] sm:$0xff] %vm490_vm0, %v3342_v36  ;;  %v3340_v16 = vadd.f32 %v3289_v56, %v3162_v57  ;;  %v3172_v57 = vld [vmem:[#allocation3 + $0x70] sm:$0xff] }
 0x983   : > { %v3387_v61 = vld [vmem:[#allocation3] sm:$0xff]  ;;  %v4141_v52 = vpop.f32.mrf.mxu0 }
 0x984   : > { %v3428_v17 = vadd.f32 %v5504_v13, %v3405_v24  ;;  %v3403_v49 = vadd.f32 %v3387_v61, %v5272_v12  ;;  %3356 = vst.msk [vmem:[#allocation3 + $0x20] sm:$0xff] %vm490_vm0, %v3340_v16  ;;  %v3343_v54 = vadd.f32 %v4141_v52, %v3165_v1  ;;  %v3170_v24 = vld [vmem:[#allocation3 + $0x60] sm:$0xff] }
 0x985   : > { %v3390_v29 = vld [vmem:[#allocation3 + $0x18] sm:$0xff]  ;;  %v3292_v7 = vpop.f32.mrf.mxu0 }
 0x986   : > { %v3754_v4 = vpack.c.bf16 %v3428_v17, %v3428_v17  ;;  %v3426_v41 = vadd.f32 %v5504_v13, %v3403_v49  ;;  %v3406_v34 = vadd.f32 %v3390_v29, %v5268_v18  ;;  %3359 = vst.msk [vmem:[#allocation3 + $0x38] sm:$0xff] %vm490_vm0, %v3343_v54  ;;  %v3341_v12 = vadd.f32 %v3292_v7, %v3163_v59  ;;  %v3173_v17 = vld [vmem:[#allocation3 + $0x78] sm:$0xff] }
 0x987   : > { %v3388_v47 = vld [vmem:[#allocation3 + $0x8] sm:$0xff] }
 0x988   : > { %3509 = vst.msk [vmem:[%s5516_s23 + $0x8] sm:$0xf] %vm3506_vm4, %v3754_v4  ;;  %v3752_v26 = vpack.c.bf16 %v3426_v41, %v3426_v41  ;;  %v3429_v14 = vadd.f32 %v5504_v13, %v3406_v34  ;;  %v3404_v5 = vadd.f32 %v3388_v47, %v5274_v63  ;;  %v4144_v27 = vpop.f32.mrf.mxu0  ;;  %v3171_v41 = vld [vmem:[#allocation3 + $0x68] sm:$0xff] }
 0x989   : > { %3357 = vst.msk [vmem:[#allocation3 + $0x28] sm:$0xff] %vm490_vm0, %v3341_v12  ;;  %v3393_v6 = vld [vmem:[#allocation3 + $0x30] sm:$0xff]  ;;  %v3346_v48 = vadd.f32 %v4144_v27, %v3168_v35 }
 0x98a   : > { %3507 = vst.msk [vmem:[%s5516_s23] sm:$0xf] %vm3506_vm4, %v3752_v26  ;;  %v3755_v18 = vpack.c.bf16 %v3429_v14, %v3429_v14  ;;  %v3427_v43 = vadd.f32 %v5504_v13, %v3404_v5  ;;  %v3409_v21 = vadd.f32 %v3393_v6, %v5300_v25  ;;  %v3305_v2 = vpop.f32.mrf.mxu0 }
 0x98b   : > { %v3391_v32 = vld [vmem:[#allocation3 + $0x20] sm:$0xff]  ;;  %3362 = vst.msk [vmem:[#allocation3 + $0x50] sm:$0xff] %vm490_vm0, %v3346_v48  ;;  %v3344_v63 = vadd.f32 %v3305_v2, %v3166_v39 }
 0x98c   : > { %3510 = vst.msk [vmem:[%s5516_s23 + $0xc] sm:$0xf] %vm3506_vm4, %v3755_v18  ;;  %v3753_v19 = vpack.c.bf16 %v3427_v43, %v3427_v43  ;;  %v3432_v0 = vadd.f32 %v5504_v13, %v3409_v21  ;;  %v3407_v37 = vadd.f32 %v3391_v32, %v5296_v30  ;;  %v4145_v51 = vpop.f32.mrf.mxu0 }
 0x98d   : > { %v3394_v23 = vld [vmem:[#allocation3 + $0x38] sm:$0xff]  ;;  %3360 = vst.msk [vmem:[#allocation3 + $0x40] sm:$0xff] %vm490_vm0, %v3344_v63  ;;  %v3347_v25 = vadd.f32 %v4145_v51, %v3169_v31 }
 0x98e   : > { %3508 = vst.msk [vmem:[%s5516_s23 + $0x4] sm:$0xf] %vm3506_vm4, %v3753_v19  ;;  %v3758_v8 = vpack.c.bf16 %v3432_v0, %v3432_v0  ;;  %v3430_v60 = vadd.f32 %v5504_v13, %v3407_v37  ;;  %v3410_v45 = vadd.f32 %v3394_v23, %v5291_v40  ;;  %v3308_v28 = vpop.f32.mrf.mxu0 }
 0x98f   : > { %3363 = vst.msk [vmem:[#allocation3 + $0x58] sm:$0xff] %vm490_vm0, %v3347_v25  ;;  %v3345_v30 = vadd.f32 %v3308_v28, %v3167_v44 }
 0x990   : > { %v3392_v46 = vld [vmem:[#allocation3 + $0x28] sm:$0xff]  ;;  %3513 = vst.msk [vmem:[%s5516_s23 + $0x18] sm:$0xf] %vm3506_vm4, %v3758_v8  ;;  %v3756_v9 = vpack.c.bf16 %v3430_v60, %v3430_v60  ;;  %v3433_v3 = vadd.f32 %v5504_v13, %v3410_v45 }
 0x991   : > { %v3408_v55 = vadd.f32 %v3392_v46, %v5298_v22  ;;  %3361 = vst.msk [vmem:[#allocation3 + $0x48] sm:$0xff] %vm490_vm0, %v3345_v30 }
 0x992   : > { %3511 = vst.msk [vmem:[%s5516_s23 + $0x10] sm:$0xf] %vm3506_vm4, %v3756_v9  ;;  %v3759_v33 = vpack.c.bf16 %v3433_v3, %v3433_v3  ;;  %v3397_v50 = vld [vmem:[#allocation3 + $0x50] sm:$0xff]  ;;  %v4148_v1 = vpop.f32.mrf.mxu0 }
 0x993   : > { %v3431_v40 = vadd.f32 %v5504_v13, %v3408_v55  ;;  %v3413_v36 = vadd.f32 %v3397_v50, %v5321_v53  ;;  %v3350_v61 = vadd.f32 %v4148_v1, %v3172_v57 }
 0x994   : > { %3514 = vst.msk [vmem:[%s5516_s23 + $0x1c] sm:$0xf] %vm3506_vm4, %v3759_v33  ;;  %v3395_v56 = vld [vmem:[#allocation3 + $0x40] sm:$0xff]  ;;  %v3321_v59 = vpop.f32.mrf.mxu0 }
 0x995   : > { %v3757_v11 = vpack.c.bf16 %v3431_v40, %v3431_v40  ;;  %v3436_v22 = vadd.f32 %v5504_v13, %v3413_v36  ;;  %v3411_v16 = vadd.f32 %v3395_v56, %v5317_v10  ;;  %3366 = vst.msk [vmem:[#allocation3 + $0x70] sm:$0xff] %vm490_vm0, %v3350_v61  ;;  %v3348_v29 = vadd.f32 %v3321_v59, %v3170_v24 }
 0x996   : > { %v3398_v52 = vld [vmem:[#allocation3 + $0x58] sm:$0xff]  ;;  %v4149_v4 = vpop.f32.mrf.mxu0 }
 0x997   : > { %3512 = vst.msk [vmem:[%s5516_s23 + $0x14] sm:$0xf] %vm3506_vm4, %v3757_v11  ;;  %v3762_v49 = vpack.c.bf16 %v3436_v22, %v3436_v22  ;;  %v3434_v53 = vadd.f32 %v5504_v13, %v3411_v16  ;;  %v3414_v54 = vadd.f32 %v3398_v52, %v5314_v62  ;;  %v3351_v35 = vadd.f32 %v4149_v4, %v3173_v17 }
 0x998   : > { %v3396_v7 = vld [vmem:[#allocation3 + $0x48] sm:$0xff]  ;;  %3364 = vst.msk [vmem:[#allocation3 + $0x60] sm:$0xff] %vm490_vm0, %v3348_v29  ;;  %v3324_v47 = vpop.f32.mrf.mxu0 }
 0x999   : > { %3517 = vst.msk [vmem:[%s5516_s23 + $0x28] sm:$0xf] %vm3506_vm4, %v3762_v49  ;;  %v3760_v10 = vpack.c.bf16 %v3434_v53, %v3434_v53  ;;  %v3437_v34 = vadd.f32 %v5504_v13, %v3414_v54  ;;  %v3412_v12 = vadd.f32 %v3396_v7, %v5319_v15  ;;  %v3349_v14 = vadd.f32 %v3324_v47, %v3171_v41 }
 0x99a   : > { %3367 = vst.msk [vmem:[#allocation3 + $0x78] sm:$0xff] %vm490_vm0, %v3351_v35 }
 0x99b   : > { %3515 = vst.msk [vmem:[%s5516_s23 + $0x20] sm:$0xf] %vm3506_vm4, %v3760_v10  ;;  %v3763_v62 = vpack.c.bf16 %v3437_v34, %v3437_v34  ;;  %v3435_v26 = vadd.f32 %v5504_v13, %v3412_v12 }
 0x99c   : > { %3365 = vst.msk [vmem:[#allocation3 + $0x68] sm:$0xff] %vm490_vm0, %v3349_v14  ;;  %v3401_v15 = vld [vmem:[#allocation3 + $0x70] sm:$0xff] }
 0x99d   : > { %3518 = vst.msk [vmem:[%s5516_s23 + $0x2c] sm:$0xf] %vm3506_vm4, %v3763_v62  ;;  %v3761_v5 = vpack.c.bf16 %v3435_v26, %v3435_v26  ;;  %v3417_v27 = vadd.f32 %v3401_v15, %v5336_v20 }
 0x99f   : > { %3516 = vst.msk [vmem:[%s5516_s23 + $0x24] sm:$0xf] %vm3506_vm4, %v3761_v5  ;;  %v3399_v39 = vld [vmem:[#allocation3 + $0x60] sm:$0xff]  ;;  %v3440_v6 = vadd.f32 %v5504_v13, %v3417_v27 }
 0x9a0   : > { %v3415_v48 = vadd.f32 %v3399_v39, %v5332_v38 }
 0x9a1   : > { %v3402_v18 = vld [vmem:[#allocation3 + $0x78] sm:$0xff]  ;;  %v3766_v43 = vpack.c.bf16 %v3440_v6, %v3440_v6 }
 0x9a2   : > { %v3438_v21 = vadd.f32 %v5504_v13, %v3415_v48  ;;  %v3418_v2 = vadd.f32 %v3402_v18, %v5330_v58 }
 0x9a3   : > { %v3400_v31 = vld [vmem:[#allocation3 + $0x68] sm:$0xff]  ;;  %3521 = vst.msk [vmem:[%s5516_s23 + $0x38] sm:$0xf] %vm3506_vm4, %v3766_v43 }
 0x9a4   : > { %v3764_v32 = vpack.c.bf16 %v3438_v21, %v3438_v21  ;;  %v3441_v63 = vadd.f32 %v5504_v13, %v3418_v2  ;;  %v3416_v20 = vadd.f32 %v3400_v31, %v5334_v42 }
 0x9a6   : > { %3519 = vst.msk [vmem:[%s5516_s23 + $0x30] sm:$0xf] %vm3506_vm4, %v3764_v32  ;;  %v3767_v19 = vpack.c.bf16 %v3441_v63, %v3441_v63  ;;  %v3439_v0 = vadd.f32 %v5504_v13, %v3416_v20 }
 0x9a8   : > { %3522 = vst.msk [vmem:[%s5516_s23 + $0x3c] sm:$0xf] %vm3506_vm4, %v3767_v19  ;;  %v3765_v38 = vpack.c.bf16 %v3439_v0, %v3439_v0 }
 0x9aa   : > { %3520 = vst.msk [vmem:[%s5516_s23 + $0x34] sm:$0xf] %vm3506_vm4, %v3765_v38 }
 0x9ab PF: > { %s19_s11 = sadd.s32 1, %s4442_s11   ;;  %s5608_s30 = smov %s4438_s10 }
 0x9ac   : > { %p16_p5 = scmp.ge.s32.totalorder %s19_s11, 6   ;;  %s5609_s10 = smov %s5611_s12 }
 0x9ae   :  { %18 = sbr.rel (!%p16_p5) target bundleno = 2 (0x2), region = 103 }

// kernel: adaptive_grid_attention_forward.1
= control target key start
LH: loop header
LB: loop body
LE: loop exit
PB: predicated region body
PF: predicated region fallthrough
CT: control target
= control target key end

     0   :  { %s4502_s30 = smov 0   ;;  %s4504_s10 = smov 0   ;;  %s5598_s0 = inlined_call_operand.vmem [shape: bf16[32,16,32], index: 0, kind: input, shape index: {}]   ;;  %s5599_s1 = inlined_call_operand.vmem [shape: bf16[32,96], index: 1, kind: input, shape index: {}]   ;;  %s5600_s2 = inlined_call_operand.vmem [shape: f32[1,96], index: 2, kind: input, shape index: {}]   ;;  %s5601_s3 = inlined_call_operand.vmem [shape: bf16[32,32], index: 3, kind: input, shape index: {}]   ;;  %s5602_s4 = inlined_call_operand.vmem [shape: f32[1,32], index: 4, kind: input, shape index: {}]   ;;  %s5603_s5 = inlined_call_operand.vmem [shape: bf16[32,64], index: 5, kind: input, shape index: {}]   ;;  %s5604_s6 = inlined_call_operand.vmem [shape: f32[1,64], index: 6, kind: input, shape index: {}]   ;;  %s5605_s7 = inlined_call_operand.vmem [shape: bf16[64,32], index: 7, kind: input, shape index: {}]   ;;  %s5606_s8 = inlined_call_operand.vmem [shape: f32[1,32], index: 8, kind: input, shape index: {}]   ;;  %s5607_s9 = inlined_call_operand.vmem [shape: bf16[32,16,32], index: 9, kind: output, shape index: {}]  }
   0x1   :  { %s4506_s11 = smov 0  }
   0x2 LB: > { %s31_s12 = sadd.s32 1, %s4438_s10  ;;  %p3639_p0 = scmp.ge.s32.totalorder %s4442_s11, 1  ;;  %s4442_s11 = sphi %s4506_s11, %s19_s11   ;;  %s4438_s10 = sphi %s4504_s10, %s5609_s10   ;;  %s4434_s30 = sphi %s4502_s30, %s5608_s30  }
   0x3   : > { %p33_p1 = scmp.ge.s32.totalorder %s31_s12, 4  ;;  %p329_p2 = scmp.lt.s32.totalorder %s4442_s11, 5 }
   0x5   : > { %s5611_s12 = smov (%p33_p1, %s31_s12), 0  ;;  %p330_p3 = pnand %p3639_p0, %p329_p2 }
   0x6   : > { %s3640_s15 = sshll.u32 (!%p330_p3), %s4434_s30, 3  ;;  %s4446_s24 = smov (!%p330_p3), 96  }
   0x7   : > { %333 = sbr.rel (%p330_p3) target bundleno = 2475 (0x9ab), region = 56  ;;  %p380_p4 = scmp.lt.s32.totalorder (!%p330_p3), %s3640_s15, 31 }
   0x8   : > { %s4447_s25 = smov (!%p330_p3), 64   ;;  %s4448_s26 = smov (!%p330_p3), 80  }
   0x9   : > { %s4449_s27 = smov (!%p330_p3), 112   ;;  %s4450_s28 = smov (!%p330_p3), 48  }
   0xa   : > { %s4451_s13 = smov (!%p330_p3), 16  }
   0xc   : > { %v4226_v0 = vld [vmem:[%s5599_s1 + $0x8] sm:$0xff]   ;;  %v4227_v1 = vld [vmem:[%s5599_s1] sm:$0xff]   ;;  %s5613_s15 = smov (!%p380_p4, %s3640_s15), 31  ;;  %vm490_vm0 = vcmask 261120   ;;  %v4444_v10 = vmov 0.0   ;;  %vm4445_vm1 = vmmov 0  }
   0xd   : > { %3874 = vmatprep.subr.bf16.mxu0 %v4226_v0  ;;  %4150 = vmatprep.subr.bf16.mxu1 %v4226_v0  ;;  %s3750_s18 = sshll.u32 %s5613_s15, 3  ;;  %2829 = vst.msk [vmem:[#allocation3] sm:$0xff] %vm490_vm0, %v4444_v10  ;;  %2830 = vst.msk [vmem:[#allocation3 + $0x8] sm:$0xff] %vm490_vm0, %v4444_v10  ;;  %v3646_v17 = vld [vmem:[%s5600_s2] ss:$0 sm:$0xff]  ;;  %vm623_vm2 = vcmask 130048  }
   0xe   : > { %3875 = vmatpush3.bf16.msra.mxu0 %v4226_v0  ;;  %4152 = vmatpush3.bf16.msra.mxu1 %v4226_v0  ;;  %s4534_s21 = scalar_lea.vmem %s5598_s0, %s3750_s18  ;;  %2831 = vst.msk [vmem:[#allocation3 + $0x10] sm:$0xff] %vm490_vm0, %v4444_v10  ;;  %2832 = vst.msk [vmem:[#allocation3 + $0x18] sm:$0xff] %vm490_vm0, %v4444_v10  ;;  %vm3214_vm3 = vcmask 523264   ;;  %s5516_s23 = scalar_lea.vmem %s5607_s9, %s3750_s18  ;;  %vm3506_vm4 = vcmask 257024  }
   0xf   : > { %3876 = vmatprep.subr.bf16.mxu0 %v4227_v1  ;;  %4151 = vmatprep.subr.bf16.mxu1 %v4227_v1  ;;  %v411_v2 = vld [vmem:[%s4534_s21] sm:$0xff]   ;;  %v413_v3 = vld [vmem:[%s4534_s21 + $0x8] sm:$0xff]   ;;  %v415_v6 = vld [vmem:[%s4534_s21 + $0x10] sm:$0xff]   ;;  %2833 = vst.msk [vmem:[#allocation3 + $0x20] sm:$0xff] %vm490_vm0, %v4444_v10 }
  0x10   : > { %v419_v4 = vld [vmem:[%s4534_s21 + $0x20] sm:$0xff]   ;;  %v421_v5 = vld [vmem:[%s4534_s21 + $0x28] sm:$0xff]   ;;  %v423_v7 = vld [vmem:[%s4534_s21 + $0x30] sm:$0xff]   ;;  %3878 = vmatprep.mubr.msk.bf16.mxu0 %vm490_vm0, %v411_v2  ;;  %2834 = vst.msk [vmem:[#allocation3 + $0x28] sm:$0xff] %vm490_vm0, %v4444_v10 }
  0x11   : > { %3886 = vmatprep.mubr.msk.bf16.mxu1 %vm490_vm0, %v419_v4  ;;  %v417_v8 = vld [vmem:[%s4534_s21 + $0x18] sm:$0xff]   ;;  %2835 = vst.msk [vmem:[#allocation3 + $0x30] sm:$0xff] %vm490_vm0, %v4444_v10  ;;  %2836 = vst.msk [vmem:[#allocation3 + $0x38] sm:$0xff] %vm490_vm0, %v4444_v10 }
  0x12   : > { %3877 = vmatpush3.bf16.msra.mxu0 %v4227_v1  ;;  %4153 = vmatpush3.bf16.msra.mxu1 %v4227_v1  ;;  %v425_v9 = vld [vmem:[%s4534_s21 + $0x38] sm:$0xff]   ;;  %2837 = vst.msk [vmem:[#allocation3 + $0x40] sm:$0xff] %vm490_vm0, %v4444_v10  ;;  %2838 = vst.msk [vmem:[#allocation3 + $0x48] sm:$0xff] %vm490_vm0, %v4444_v10 }
  0x13   : > { %3894 = vmatprep.subr.bf16.mxu1 %v4444_v10  ;;  %2839 = vst.msk [vmem:[#allocation3 + $0x50] sm:$0xff] %vm490_vm0, %v4444_v10  ;;  %2840 = vst.msk [vmem:[#allocation3 + $0x58] sm:$0xff] %vm490_vm0, %v4444_v10  ;;  %3918 = vmatprep.subr.bf16.mxu0 %v4444_v10 }
  0x14   : > { %2841 = vst.msk [vmem:[#allocation3 + $0x60] sm:$0xff] %vm490_vm0, %v4444_v10  ;;  %2842 = vst.msk [vmem:[#allocation3 + $0x68] sm:$0xff] %vm490_vm0, %v4444_v10 }
  0x15   : > { %3879 = vmatmul.mubr.msk.bf16.vlgmr.msra.gmra.mxu0 %vm490_vm0, %v413_v3  ;;  %3887 = vmatmul.mubr.msk.bf16.vlgmr.msra.gmra.mxu1 %vm490_vm0, %v421_v5  ;;  %2843 = vst.msk [vmem:[#allocation3 + $0x70] sm:$0xff] %vm490_vm0, %v4444_v10  ;;  %2844 = vst.msk [vmem:[#allocation3 + $0x78] sm:$0xff] %vm490_vm0, %v4444_v10 }
  0x16   : > { %3882 = vmatprep.mubr.msk.bf16.mxu0 %vm490_vm0, %v415_v6  ;;  %3890 = vmatprep.mubr.msk.bf16.mxu1 %vm490_vm0, %v423_v7 }
  0x1d   : > { %3883 = vmatmul.mubr.msk.bf16.gmra.mxu0 %vm490_vm0, %v417_v8  ;;  %3891 = vmatmul.mubr.msk.bf16.gmra.mxu1 %vm490_vm0, %v425_v9 }
  0x1e   : > { %3896 = vmatprep.mubr.msk.bf16.mxu1 %vm4445_vm1, %v4444_v10  ;;  %3920 = vmatprep.mubr.msk.bf16.mxu0 %vm4445_vm1, %v4444_v10 }
  0xd5   : > { %v3880_v11 = vpop.f32.mrf.mxu0  ;;  %v3888_v12 = vpop.f32.mrf.mxu1 }
  0xd6   : > { %v558_v27 = vadd.f32 %v3880_v11, %v3646_v17  ;;  %v590_v45 = vadd.f32 %v3888_v12, %v3646_v17 }
  0xd7   : > { %v549_v13 = vpop.f32.mrf.mxu0  ;;  %v581_v14 = vpop.f32.mrf.mxu1 }
  0xd8   : > { %v550_v19 = vadd.f32 %v3646_v17, %v549_v13  ;;  %v582_v31 = vadd.f32 %v3646_v17, %v581_v14 }
  0xd9   : > { %v3881_v15 = vpop.f32.mrf.mxu0  ;;  %v3889_v16 = vpop.f32.mrf.mxu1 }
  0xda   : > { %v561_v23 = vadd.f32 %v3881_v15, %v3646_v17  ;;  %v593_v46 = vadd.f32 %v3889_v16, %v3646_v17 }
  0xdb   : > { %v552_v18 = vpop.f32.mrf.mxu0  ;;  %v584_v21 = vpop.f32.mrf.mxu1 }
  0xdc   : > { %v553_v20 = vadd.f32 %v3646_v17, %v552_v18  ;;  %v4597_v30 = vpack.c.bf16 %v561_v23, %v558_v27  ;;  %v585_v32 = vadd.f32 %v3646_v17, %v584_v21  ;;  %v4617_v48 = vpack.c.bf16 %v593_v46, %v590_v45 }
  0xdd   : > { %v3884_v22 = vpop.f32.mrf.mxu0  ;;  %v3892_v25 = vpop.f32.mrf.mxu1 }
  0xde   : > { %v4593_v24 = vpack.c.bf16 %v553_v20, %v550_v19  ;;  %v574_v40 = vadd.f32 %v3884_v22, %v3646_v17  ;;  %v4601_v41 = vpack.c.bf16 %v585_v32, %v582_v31  ;;  %v606_v49 = vadd.f32 %v3892_v25, %v3646_v17 }
  0xdf   : > { %v565_v26 = vpop.f32.mrf.mxu0  ;;  %v597_v28 = vpop.f32.mrf.mxu1 }
  0xe0   : > { %621 = vrot.lane.b32.xlu0 %v4593_v24, %s4446_s24  ;;  %v566_v33 = vadd.f32 %v3646_v17, %v565_v26  ;;  %v598_v37 = vadd.f32 %v3646_v17, %v597_v28 }
  0xe1   : > { %v3885_v29 = vpop.f32.mrf.mxu0  ;;  %v3893_v34 = vpop.f32.mrf.mxu1 }
  0xe2   : > { %v577_v42 = vadd.f32 %v3885_v29, %v3646_v17  ;;  %v609_v50 = vadd.f32 %v3893_v34, %v3646_v17 }
  0xe3   : > { %v568_v35 = vpop.f32.mrf.mxu0  ;;  %v600_v38 = vpop.f32.mrf.mxu1 }
  0xe4   : > { %v569_v36 = vadd.f32 %v3646_v17, %v568_v35  ;;  %672 = vrot.lane.b32.xlu0 %v4597_v30, %s4446_s24  ;;  %v601_v39 = vadd.f32 %v3646_v17, %v600_v38  ;;  %v4611_v47 = vpack.c.bf16 %v577_v42, %v574_v40  ;;  %v4623_v51 = vpack.c.bf16 %v609_v50, %v606_v49 }
  0xe6   : > { %v4603_v43 = vpack.c.bf16 %v569_v36, %v566_v33  ;;  %v4605_v44 = vpack.c.bf16 %v601_v39, %v598_v37 }
  0xe8   : > { %722 = vrot.lane.b32.xlu1 %v4603_v43, %s4446_s24  ;;  %822 = vrot.lane.b32.xlu0 %v4601_v41, %s4446_s24 }
  0xec   : > { %772 = vrot.lane.b32.xlu1 %v4611_v47, %s4446_s24  ;;  %922 = vrot.lane.b32.xlu0 %v4605_v44, %s4446_s24 }
  0xf0   : > { %872 = vrot.lane.b32.xlu1 %v4617_v48, %s4446_s24  ;;  %1252 = vrot.lane.b32.xlu0 %v4597_v30, %s4447_s25 }
  0xf4   : > { %972 = vrot.lane.b32.xlu1 %v4623_v51, %s4446_s24 }
  0xf8   : > { %1205 = vrot.lane.b32.xlu1 %v4593_v24, %s4447_s25 }
  0xfc   : > { %1346 = vrot.lane.b32.xlu1 %v4611_v47, %s4447_s25 }
 0x100   : > { %1299 = vrot.lane.b32.xlu1 %v4603_v43, %s4447_s25 }
 0x152   : > { %v622_v52 = vpop.permute.xlu0 %621 }
 0x153   : > { %v628_v53 = vsel %vm623_vm2, %v622_v52, 0 }
 0x154   : > { %3895 = vmatpush3.bf16.xpose.msra.mxu1 %v628_v53 }
 0x155   : > { %3900 = vmatprep.subr.bf16.mxu1 %v4444_v10 }
 0x156   : > { %v673_v54 = vpop.permute.xlu0 %672 }
 0x157   : > { %v678_v57 = vsel %vm623_vm2, %v673_v54, 0 }
 0x15a   : > { %v723_v55 = vpop.permute.xlu1 %722  ;;  %v823_v56 = vpop.permute.xlu0 %822 }
 0x15b   : > { %v828_v58 = vsel %vm623_vm2, %v823_v56, 0  ;;  %3897 = vmatmul.mubr.msk.bf16.vlgmr.msra.gmra.mxu1 %vm623_vm2, %v4593_v24  ;;  %v728_v62 = vsel %vm623_vm2, %v723_v55, 0 }
 0x15c   : > { %3901 = vmatpush3.bf16.xpose.msra.mxu1 %v678_v57  ;;  %3919 = vmatpush3.bf16.xpose.msra.mxu0 %v828_v58 }
 0x15d   : > { %3902 = vmatprep.mubr.msk.bf16.mxu1 %vm4445_vm1, %v4444_v10  ;;  %3906 = vmatprep.subr.bf16.mxu1 %v4444_v10 }
 0x15e   : > { %v773_v59 = vpop.permute.xlu1 %772  ;;  %3930 = vmatprep.subr.bf16.mxu0 %v4444_v10  ;;  %v923_v60 = vpop.permute.xlu0 %922 }
 0x15f   : > { %v928_v63 = vsel %vm623_vm2, %v923_v60, 0  ;;  %v778_v2 = vsel %vm623_vm2, %v773_v59, 0 }
 0x162   : > { %v873_v61 = vpop.permute.xlu1 %872  ;;  %v1253_v5 = vpop.permute.xlu0 %1252 }
 0x163   : > { %3903 = vmatmul.mubr.msk.bf16.vlgmr.msra.gmra.mxu1 %vm623_vm2, %v4597_v30  ;;  %3921 = vmatmul.mubr.msk.bf16.vlgmr.msra.gmra.mxu0 %vm623_vm2, %v4601_v41  ;;  %v878_v3 = vsel %vm623_vm2, %v873_v61, 0 }
 0x164   : > { %3907 = vmatpush3.bf16.xpose.msra.mxu1 %v728_v62  ;;  %3931 = vmatpush3.bf16.xpose.msra.mxu0 %v928_v63 }
 0x165   : > { %3908 = vmatprep.mubr.msk.bf16.mxu1 %vm4445_vm1, %v4444_v10  ;;  %3932 = vmatprep.mubr.msk.bf16.mxu0 %vm4445_vm1, %v4444_v10 }
 0x166   : > { %v973_v0 = vpop.permute.xlu1 %972  ;;  %3912 = vmatprep.subr.bf16.mxu1 %v4444_v10  ;;  %3942 = vmatprep.subr.bf16.mxu0 %v4444_v10 }
 0x167   : > { %v978_v4 = vsel %vm623_vm2, %v973_v0, 0 }
 0x16a   : > { %v1206_v1 = vpop.permute.xlu1 %1205 }
 0x16b   : > { %3909 = vmatmul.mubr.msk.bf16.vlgmr.msra.gmra.mxu1 %vm623_vm2, %v4603_v43  ;;  %3933 = vmatmul.mubr.msk.bf16.vlgmr.msra.gmra.mxu0 %vm623_vm2, %v4605_v44 }
 0x16c   : > { %3913 = vmatpush3.bf16.xpose.msra.mxu1 %v778_v2  ;;  %3943 = vmatpush3.bf16.msra.mxu0 %v1206_v1 }
 0x16d   : > { %3914 = vmatprep.mubr.msk.bf16.mxu1 %vm4445_vm1, %v4444_v10  ;;  %3924 = vmatprep.subr.bf16.mxu1 %v4444_v10 }
 0x16e   : > { %3944 = vmatprep.mubr.msk.bf16.mxu0 %vm4445_vm1, %v4444_v10  ;;  %3954 = vmatprep.subr.bf16.mxu0 %v4444_v10  ;;  %v4751_v63 = vpop.permute.xlu1 %1346 }
 0x173   : > { %3915 = vmatmul.mubr.msk.bf16.vlgmr.msra.gmra.mxu1 %vm623_vm2, %v4611_v47 }
 0x174   : > { %3925 = vmatpush3.bf16.xpose.msra.mxu1 %v878_v3  ;;  %3926 = vmatprep.mubr.msk.bf16.mxu1 %vm4445_vm1, %v4444_v10  ;;  %v4754_v3 = vpop.permute.xlu1 %1299 }
 0x175   : > { %3936 = vmatprep.subr.bf16.mxu1 %v4444_v10 }
 0x17b   : > { %3927 = vmatmul.mubr.msk.bf16.vlgmr.msra.gmra.mxu1 %vm623_vm2, %v4617_v48 }
 0x17c   : > { %3937 = vmatpush3.bf16.xpose.msra.mxu1 %v978_v4  ;;  %3938 = vmatprep.mubr.msk.bf16.mxu1 %vm4445_vm1, %v4444_v10 }
 0x17d   : > { %3948 = vmatprep.subr.bf16.mxu1 %v4444_v10 }
 0x183   : > { %3939 = vmatmul.mubr.msk.bf16.vlgmr.msra.gmra.mxu1 %vm623_vm2, %v4623_v51 }
 0x184   : > { %3949 = vmatpush3.bf16.msra.mxu1 %v1253_v5  ;;  %3950 = vmatprep.mubr.msk.bf16.mxu1 %vm4445_vm1, %v4444_v10 }
 0x185   : > { %3960 = vmatprep.subr.bf16.mxu1 %v4444_v10 }
 0x21b   : > { %v4683_v6 = vpop.f32.mrf.mxu1 }
 0x21c   : > { %v1021_v7 = vsel %vm623_vm2, %v4683_v6, -inf }
 0x21d   : > { %1022 = vmax.xlane.f32.xlu0 %v1021_v7  ;;  %v3898_v8 = vpop.f32.mrf.mxu1 }
 0x21f   : > { %v4687_v9 = vpop.f32.mrf.mxu1 }
 0x220   : > { %v1024_v19 = vsel %vm623_vm2, %v4687_v9, -inf }
 0x221   : > { %v3899_v11 = vpop.f32.mrf.mxu1 }
 0x223   : > { %v4689_v12 = vpop.f32.mrf.mxu1  ;;  %v4691_v13 = vpop.f32.mrf.mxu0 }
 0x224   : > { %v1045_v14 = vsel %vm623_vm2, %v4691_v13, -inf  ;;  %v1027_v26 = vsel %vm623_vm2, %v4689_v12, -inf }
 0x225   : > { %v3904_v15 = vpop.f32.mrf.mxu1  ;;  %1046 = vmax.xlane.f32.xlu1 %v1045_v14  ;;  %v3922_v16 = vpop.f32.mrf.mxu0 }
 0x227   : > { %v4695_v17 = vpop.f32.mrf.mxu1  ;;  %v4697_v18 = vpop.f32.mrf.mxu0 }
 0x228   : > { %v1048_v20 = vsel %vm623_vm2, %v4697_v18, -inf  ;;  %v1030_v33 = vsel %vm623_vm2, %v4695_v17, -inf }
 0x229   : > { %v3905_v21 = vpop.f32.mrf.mxu1  ;;  %1025 = vmax.xlane.f32.xlu1 %v1024_v19  ;;  %1049 = vmax.xlane.f32.xlu0 %v1048_v20  ;;  %v3923_v22 = vpop.f32.mrf.mxu0 }
 0x22b   : > { %v4703_v23 = vpop.f32.mrf.mxu1  ;;  %v4705_v25 = vpop.f32.mrf.mxu0 }
 0x22c   : > { %v1057_v27 = vsel %vm623_vm2, %v4705_v25, -inf  ;;  %v1033_v34 = vsel %vm623_vm2, %v4703_v23, -inf }
 0x22d   : > { %v3910_v28 = vpop.f32.mrf.mxu1  ;;  %1028 = vmax.xlane.f32.xlu0 %v1027_v26  ;;  %1058 = vmax.xlane.f32.xlu1 %v1057_v27  ;;  %v3934_v29 = vpop.f32.mrf.mxu0 }
 0x22f   : > { %v4711_v31 = vpop.f32.mrf.mxu1  ;;  %v4713_v32 = vpop.f32.mrf.mxu0 }
 0x230   : > { %v1060_v39 = vsel %vm623_vm2, %v4713_v32, -inf  ;;  %v1036_v45 = vsel %vm623_vm2, %v4711_v31, -inf }
 0x231   : > { %v3911_v35 = vpop.f32.mrf.mxu1  ;;  %1031 = vmax.xlane.f32.xlu0 %v1030_v33  ;;  %1034 = vmax.xlane.f32.xlu1 %v1033_v34  ;;  %v3935_v36 = vpop.f32.mrf.mxu0 }
 0x233   : > { %v4719_v37 = vpop.f32.mrf.mxu1 }
 0x234   : > { %v1039_v38 = vsel %vm623_vm2, %v4719_v37, -inf }
 0x235   : > { %v3916_v40 = vpop.f32.mrf.mxu1  ;;  %1040 = vmax.xlane.f32.xlu1 %v1039_v38  ;;  %1061 = vmax.xlane.f32.xlu0 %v1060_v39 }
 0x237   : > { %v4725_v42 = vpop.f32.mrf.mxu1 }
 0x238   : > { %v1042_v52 = vsel %vm623_vm2, %v4725_v42, -inf }
 0x239   : > { %v3917_v46 = vpop.f32.mrf.mxu1  ;;  %1037 = vmax.xlane.f32.xlu0 %v1036_v45 }
 0x23b   : > { %v4729_v49 = vpop.f32.mrf.mxu1 }
 0x23c   : > { %v1051_v50 = vsel %vm623_vm2, %v4729_v49, -inf }
 0x23d   : > { %v3928_v53 = vpop.f32.mrf.mxu1  ;;  %1052 = vmax.xlane.f32.xlu1 %v1051_v50  ;;  %1043 = vmax.xlane.f32.xlu0 %v1042_v52 }
 0x23f   : > { %v4735_v54 = vpop.f32.mrf.mxu1 }
 0x240   : > { %v1054_v55 = vsel %vm623_vm2, %v4735_v54, -inf }
 0x241   : > { %v3929_v56 = vpop.f32.mrf.mxu1  ;;  %1055 = vmax.xlane.f32.xlu0 %v1054_v55 }
 0x243   : > { %v4739_v57 = vpop.f32.mrf.mxu1 }
 0x244   : > { %v1063_v58 = vsel %vm623_vm2, %v4739_v57, -inf }
 0x245   : > { %v3940_v59 = vpop.f32.mrf.mxu1  ;;  %1064 = vmax.xlane.f32.xlu1 %v1063_v58 }
 0x247   : > { %v4743_v60 = vpop.f32.mrf.mxu1 }
 0x248   : > { %v1066_v61 = vsel %vm623_vm2, %v4743_v60, -inf }
 0x249   : > { %v3941_v62 = vpop.f32.mrf.mxu1  ;;  %1067 = vmax.xlane.f32.xlu0 %v1066_v61 }
 0x256   : > { %1440 = vrot.lane.b32.xlu1 %v4617_v48, %s4447_s25 }
 0x25f   : > { %1393 = vrot.lane.b32.xlu0 %v4601_v41, %s4447_s25 }
 0x2a6   : > { %v1023_v0 = vpop.xlane.xlu0 %1022 }
 0x2a7   : > { %v1069_v1 = vsub.f32 %v4683_v6, %v1023_v0 }
 0x2a9   : > { %v1085_v2 = vmul.f32 1.442695, %v1069_v1 }
 0x2ab   : > { %4252 = vpow2.f32 %v1085_v2 }
 0x2ae   : > { %v1047_v4 = vpop.xlane.xlu1 %1046 }
 0x2af   : > { %v1077_v5 = vsub.f32 %v4691_v13, %v1047_v4 }
 0x2b1   : > { %v1101_v7 = vmul.f32 1.442695, %v1077_v5 }
 0x2b2   : > { %v1026_v8 = vpop.xlane.xlu1 %1025  ;;  %v1050_v11 = vpop.xlane.xlu0 %1049 }
 0x2b3   : > { %4254 = vpow2.f32 %v1101_v7  ;;  %v1070_v14 = vsub.f32 %v4687_v9, %v1026_v8  ;;  %v1078_v15 = vsub.f32 %v4697_v18, %v1050_v11 }
 0x2b5   : > { %v1087_v16 = vmul.f32 1.442695, %v1070_v14  ;;  %v1103_v19 = vmul.f32 1.442695, %v1078_v15 }
 0x2b6   : > { %v1059_v20 = vpop.xlane.xlu1 %1058  ;;  %v1029_v21 = vpop.xlane.xlu0 %1028 }
 0x2b7   : > { %4256 = vpow2.f32 %v1087_v16  ;;  %v1081_v6 = vsub.f32 %v4705_v25, %v1059_v20  ;;  %v1071_v22 = vsub.f32 %v4689_v12, %v1029_v21 }
 0x2b8   : > { %v4761_v26 = vpop.eup %4252  ;;  %4258 = vpow2.f32 %v1103_v19 }
 0x2b9   : > { %v1089_v13 = vmul.f32 1.442695, %v1071_v22  ;;  %v1117_v27 = vsel %vm623_vm2, %v4761_v26, 0.0  ;;  %v1109_v28 = vmul.f32 1.442695, %v1081_v6 }
 0x2ba   : > { %v1035_v9 = vpop.xlane.xlu1 %1034  ;;  %1118 = vadd.xlane.f32.xlu1 %v1117_v27  ;;  %v1032_v18 = vpop.xlane.xlu0 %1031 }
 0x2bb   : > { %v1073_v29 = vsub.f32 %v4703_v23, %v1035_v9  ;;  %v1072_v33 = vsub.f32 %v4695_v17, %v1032_v18  ;;  %4260 = vpow2.f32 %v1089_v13 }
 0x2bc   : > { %4262 = vpow2.f32 %v1109_v28 }
 0x2bd   : > { %v1091_v34 = vmul.f32 1.442695, %v1072_v33  ;;  %v1093_v25 = vmul.f32 1.442695, %v1073_v29 }
 0x2be   : > { %v1041_v12 = vpop.xlane.xlu1 %1040  ;;  %v1062_v35 = vpop.xlane.xlu0 %1061 }
 0x2bf   : > { %v1075_v36 = vsub.f32 %v4719_v37, %v1041_v12  ;;  %v1082_v38 = vsub.f32 %v4713_v32, %v1062_v35  ;;  %4264 = vpow2.f32 %v1091_v34 }
 0x2c0   : > { %v4769_v39 = vpop.eup %4254  ;;  %4266 = vpow2.f32 %v1093_v25 }
 0x2c1   : > { %v1111_v40 = vmul.f32 1.442695, %v1082_v38  ;;  %v1141_v45 = vsel %vm623_vm2, %v4769_v39, 0.0  ;;  %v1097_v23 = vmul.f32 1.442695, %v1075_v36 }
 0x2c2   : > { %1142 = vadd.xlane.f32.xlu1 %v1141_v45  ;;  %v1038_v17 = vpop.xlane.xlu0 %1037 }
 0x2c3   : > { %v1074_v46 = vsub.f32 %v4711_v31, %v1038_v17  ;;  %4268 = vpow2.f32 %v1111_v40 }
 0x2c4   : > { %v4774_v50 = vpop.eup %4256  ;;  %4270 = vpow2.f32 %v1097_v23 }
 0x2c5   : > { %v1095_v52 = vmul.f32 1.442695, %v1074_v46  ;;  %v1120_v32 = vsel %vm623_vm2, %v4774_v50, 0.0  ;;  %v4778_v37 = vpop.eup %4258 }
 0x2c6   : > { %v1053_v53 = vpop.xlane.xlu1 %1052  ;;  %1121 = vadd.xlane.f32.xlu0 %v1120_v32  ;;  %v1044_v55 = vpop.xlane.xlu0 %1043  ;;  %v1144_v62 = vsel %vm623_vm2, %v4778_v37, 0.0 }
 0x2c7   : > { %4272 = vpow2.f32 %v1095_v52  ;;  %v1079_v56 = vsub.f32 %v4729_v49, %v1053_v53  ;;  %v1076_v58 = vsub.f32 %v4725_v42, %v1044_v55 }
 0x2c8   : > { %v4782_v59 = vpop.eup %4260 }
 0x2c9   : > { %v1105_v31 = vmul.f32 1.442695, %v1079_v56  ;;  %v1099_v61 = vmul.f32 1.442695, %v1076_v58  ;;  %v1123_v0 = vsel %vm623_vm2, %v4782_v59, 0.0  ;;  %v4788_v2 = vpop.eup %4262 }
 0x2ca   : > { %1145 = vadd.xlane.f32.xlu0 %v1144_v62  ;;  %v1056_v1 = vpop.xlane.xlu0 %1055  ;;  %1124 = vadd.xlane.f32.xlu1 %v1123_v0  ;;  %v1153_v5 = vsel %vm623_vm2, %v4788_v2, 0.0 }
 0x2cb   : > { %4274 = vpow2.f32 %v1105_v31  ;;  %v1080_v49 = vsub.f32 %v4735_v54, %v1056_v1 }
 0x2cc   : > { %4276 = vpow2.f32 %v1099_v61  ;;  %v4791_v42 = vpop.eup %4264 }
 0x2cd   : > { %v1107_v4 = vmul.f32 1.442695, %v1080_v49  ;;  %v1126_v7 = vsel %vm623_vm2, %v4791_v42, 0.0  ;;  %v4797_v8 = vpop.eup %4266 }
 0x2ce   : > { %1154 = vadd.xlane.f32.xlu1 %v1153_v5  ;;  %1127 = vadd.xlane.f32.xlu0 %v1126_v7  ;;  %v1129_v54 = vsel %vm623_vm2, %v4797_v8, 0.0  ;;  %v1065_v9 = vpop.xlane.xlu1 %1064 }
 0x2cf   : > { %4278 = vpow2.f32 %v1107_v4  ;;  %v1083_v18 = vsub.f32 %v4739_v57, %v1065_v9 }
 0x2d0   : > { %v4799_v11 = vpop.eup %4268 }
 0x2d1   : > { %v1156_v14 = vsel %vm623_vm2, %v4799_v11, 0.0  ;;  %v4805_v15 = vpop.eup %4270  ;;  %v1113_v33 = vmul.f32 1.442695, %v1083_v18 }
 0x2d2   : > { %1130 = vadd.xlane.f32.xlu1 %v1129_v54  ;;  %1157 = vadd.xlane.f32.xlu0 %v1156_v14  ;;  %v1135_v20 = vsel %vm623_vm2, %v4805_v15, 0.0  ;;  %v1068_v29 = vpop.xlane.xlu0 %1067  ;;  %v4857_v57 = vpop.permute.xlu1 %1440 }
 0x2d3   : > { %v1084_v34 = vsub.f32 %v4743_v60, %v1068_v29  ;;  %4280 = vpow2.f32 %v1113_v33 }
 0x2d4   : > { %v4807_v16 = vpop.eup %4272 }
 0x2d5   : > { %v1132_v19 = vsel %vm623_vm2, %v4807_v16, 0.0  ;;  %v1115_v25 = vmul.f32 1.442695, %v1084_v34 }
 0x2d6   : > { %1136 = vadd.xlane.f32.xlu1 %v1135_v20  ;;  %1133 = vadd.xlane.f32.xlu0 %v1132_v19  ;;  %v1394_v60 = vpop.permute.xlu0 %1393 }
 0x2d7   : > { %4282 = vpow2.f32 %v1115_v25 }
 0x2d8   : > { %v4813_v21 = vpop.eup %4274 }
 0x2d9   : > { %v4815_v6 = vpop.eup %4276  ;;  %v1147_v22 = vsel %vm623_vm2, %v4813_v21, 0.0 }
 0x2da   : > { %v1138_v13 = vsel %vm623_vm2, %v4815_v6, 0.0  ;;  %1148 = vadd.xlane.f32.xlu1 %v1147_v22 }
 0x2db   : > { %1139 = vadd.xlane.f32.xlu0 %v1138_v13 }
 0x2dc   : > { %v4821_v27 = vpop.eup %4278 }
 0x2dd   : > { %v1150_v28 = vsel %vm623_vm2, %v4821_v27, 0.0 }
 0x2df   : > { %1151 = vadd.xlane.f32.xlu0 %v1150_v28 }
 0x2e0   : > { %v4831_v12 = vpop.eup %4280 }
 0x2e1   : > { %v1159_v35 = vsel %vm623_vm2, %v4831_v12, 0.0 }
 0x2e4   : > { %v4835_v36 = vpop.eup %4282 }
 0x2e5   : > { %v1162_v38 = vsel %vm623_vm2, %v4835_v36, 0.0 }
 0x2eb   : > { %1534 = vrot.lane.b32.xlu1 %v4623_v51, %s4447_s25 }
 0x2f5   : > { %1487 = vrot.lane.b32.xlu0 %v4605_v44, %s4447_s25 }
 0x30f   : > { %1160 = vadd.xlane.f32.xlu1 %v1159_v35 }
 0x314   : > { %1163 = vadd.xlane.f32.xlu0 %v1162_v38 }
 0x320   : > { %1634 = vrot.lane.b32.xlu1 %v4597_v30, %s4448_s26 }
 0x324   : > { %1685 = vrot.lane.b32.xlu1 %v4603_v43, %s4448_s26 }
 0x328   : > { %1736 = vrot.lane.b32.xlu1 %v4611_v47, %s4448_s26 }
 0x32a   : > { %1583 = vrot.lane.b32.xlu0 %v4593_v24, %s4448_s26 }
 0x32c   : > { %1787 = vrot.lane.b32.xlu1 %v4601_v41, %s4448_s26 }
 0x32e   : > { %1581 = vrot.lane.b32.xlu0 %v4593_v24, %s4449_s27 }
 0x330   : > { %1838 = vrot.lane.b32.xlu1 %v4617_v48, %s4448_s26 }
 0x332   : > { %1632 = vrot.lane.b32.xlu0 %v4597_v30, %s4449_s27 }
 0x334   : > { %1889 = vrot.lane.b32.xlu1 %v4605_v44, %s4448_s26 }
 0x336   : > { %1683 = vrot.lane.b32.xlu0 %v4603_v43, %s4449_s27 }
 0x338   : > { %1940 = vrot.lane.b32.xlu1 %v4623_v51, %s4448_s26 }
 0x33a   : > { %1734 = vrot.lane.b32.xlu0 %v4611_v47, %s4449_s27 }
 0x33c   : > { %1938 = vrot.lane.b32.xlu1 %v4623_v51, %s4449_s27 }
 0x33e   : > { %1785 = vrot.lane.b32.xlu0 %v4601_v41, %s4449_s27 }
 0x340   : > { %2173 = vrot.lane.b32.xlu1 %v4593_v24, %s4450_s28 }
 0x342   : > { %1836 = vrot.lane.b32.xlu0 %v4617_v48, %s4449_s27 }
 0x343   : > { %v1119_v40 = vpop.xlane.xlu1 %1118 }
 0x344   : > { %4284 = vrcp.f32 %v1119_v40 }
 0x346   : > { %1887 = vrot.lane.b32.xlu0 %v4605_v44, %s4449_s27 }
 0x34b   : > { %v1143_v23 = vpop.xlane.xlu1 %1142 }
 0x34f   : > { %v1122_v45 = vpop.xlane.xlu0 %1121 }
 0x350   : > { %4286 = vrcp.f32 %v1122_v45 }
 0x351   : > { %v4285_v53 = vpop.eup %4284 }
 0x352   : > { %v1181_v58 = vmul.f32 %v4285_v53, %v4761_v26 }
 0x353   : > { %v1146_v17 = vpop.xlane.xlu0 %1145  ;;  %v1125_v46 = vpop.xlane.xlu1 %1124 }
 0x354   : > { %4288 = vrcp.f32 %v1125_v46 }
 0x357   : > { %v1155_v52 = vpop.xlane.xlu1 %1154  ;;  %v1128_v32 = vpop.xlane.xlu0 %1127 }
 0x358   : > { %4290 = vrcp.f32 %v1128_v32 }
 0x35b   : > { %v1131_v24 = vpop.xlane.xlu1 %1130  ;;  %v1158_v55 = vpop.xlane.xlu0 %1157 }
 0x35c   : > { %4292 = vrcp.f32 %v1131_v24 }
 0x35d   : > { %v4287_v56 = vpop.eup %4286 }
 0x35e   : > { %v1182_v31 = vmul.f32 %v4287_v56, %v4774_v50 }
 0x35f   : > { %v1134_v61 = vpop.xlane.xlu0 %1133  ;;  %v1137_v0 = vpop.xlane.xlu1 %1136 }
 0x360   : > { %v1197_v62 = vpack.c.bf16 %v1182_v31, %v1181_v58  ;;  %4294 = vrcp.f32 %v1134_v61 }
 0x361   : > { %4296 = vrcp.f32 %v1137_v0  ;;  %v4289_v49 = vpop.eup %4288 }
 0x362   : > { %3945 = vmatmul.mubr.msk.bf16.vlgmr.msra.gmra.mxu0 %vm623_vm2, %v1197_v62  ;;  %4298 = vrcp.f32 %v1146_v17  ;;  %v1183_v4 = vmul.f32 %v4289_v49, %v4782_v59 }
 0x363   : > { %3955 = vmatpush3.bf16.msra.mxu0 %v4754_v3  ;;  %3956 = vmatprep.mubr.msk.bf16.mxu0 %vm4445_vm1, %v4444_v10  ;;  %v1149_v7 = vpop.xlane.xlu1 %1148 }
 0x364   : > { %v1140_v1 = vpop.xlane.xlu0 %1139  ;;  %3966 = vmatprep.subr.bf16.mxu0 %v4444_v10 }
 0x365   : > { %4300 = vrcp.f32 %v1140_v1  ;;  %v4291_v26 = vpop.eup %4290 }
 0x366   : > { %4302 = vrcp.f32 %v1143_v23  ;;  %v1184_v5 = vmul.f32 %v4291_v26, %v4791_v42 }
 0x368   : > { %v1152_v50 = vpop.xlane.xlu0 %1151  ;;  %v1198_v3 = vpack.c.bf16 %v1184_v5, %v1183_v4 }
 0x369   : > { %4304 = vrcp.f32 %v1152_v50  ;;  %v4293_v54 = vpop.eup %4292 }
 0x36a   : > { %4306 = vrcp.f32 %v1149_v7  ;;  %3951 = vmatmul.mubr.msk.bf16.vlgmr.msra.gmra.mxu1 %vm623_vm2, %v1198_v3  ;;  %v1185_v59 = vmul.f32 %v4293_v54, %v4797_v8 }
 0x36b   : > { %3961 = vmatpush3.bf16.msra.mxu1 %v4751_v63  ;;  %3962 = vmatprep.mubr.msk.bf16.mxu1 %vm4445_vm1, %v4444_v10  ;;  %4308 = vrcp.f32 %v1158_v55 }
 0x36c   : > { %3972 = vmatprep.subr.bf16.mxu1 %v4444_v10  ;;  %4310 = vrcp.f32 %v1155_v52  ;;  %v1488_v25 = vpop.permute.xlu0 %1487 }
 0x36d   : > { %v4295_v14 = vpop.eup %4294 }
 0x36e   : > { %v1186_v42 = vmul.f32 %v4295_v14, %v4807_v16  ;;  %v4297_v19 = vpop.eup %4296 }
 0x36f   : > { %v4299_v20 = vpop.eup %4298  ;;  %v1187_v63 = vmul.f32 %v4297_v19, %v4805_v15 }
 0x370   : > { %v1199_v22 = vpack.c.bf16 %v1186_v42, %v1185_v59  ;;  %v1190_v8 = vmul.f32 %v4299_v20, %v4778_v37 }
 0x372   : > { %v4301_v13 = vpop.eup %4300  ;;  %3957 = vmatmul.mubr.msk.bf16.vlgmr.msra.gmra.mxu0 %vm623_vm2, %v1199_v22 }
 0x373   : > { %v1188_v28 = vmul.f32 %v4301_v13, %v4815_v6  ;;  %v4303_v9 = vpop.eup %4302  ;;  %3967 = vmatpush3.bf16.msra.mxu0 %v1394_v60  ;;  %3968 = vmatprep.mubr.msk.bf16.mxu0 %vm4445_vm1, %v4444_v10 }
 0x374   : > { %3978 = vmatprep.subr.bf16.mxu0 %v4444_v10  ;;  %v1189_v29 = vmul.f32 %v4303_v9, %v4769_v39 }
 0x375   : > { %v1200_v18 = vpack.c.bf16 %v1188_v28, %v1187_v63 }
 0x376   : > { %v4305_v16 = vpop.eup %4304  ;;  %v1201_v15 = vpack.c.bf16 %v1190_v8, %v1189_v29 }
 0x377   : > { %3963 = vmatmul.mubr.msk.bf16.vlgmr.msra.gmra.mxu1 %vm623_vm2, %v1200_v18  ;;  %v4307_v33 = vpop.eup %4306  ;;  %v1192_v6 = vmul.f32 %v4305_v16, %v4821_v27 }
 0x378   : > { %3973 = vmatpush3.bf16.msra.mxu1 %v4857_v57  ;;  %3974 = vmatprep.mubr.msk.bf16.mxu1 %vm4445_vm1, %v4444_v10  ;;  %v4309_v34 = vpop.eup %4308  ;;  %v1191_v37 = vmul.f32 %v4307_v33, %v4813_v21  ;;  %v1535_v57 = vpop.permute.xlu1 %1534 }
 0x379   : > { %3984 = vmatprep.subr.bf16.mxu1 %v4444_v10  ;;  %v4311_v35 = vpop.eup %4310  ;;  %v1194_v38 = vmul.f32 %v4309_v34, %v4799_v11 }
 0x37a   : > { %3969 = vmatmul.mubr.msk.bf16.vlgmr.msra.gmra.mxu0 %vm623_vm2, %v1201_v15  ;;  %v1202_v39 = vpack.c.bf16 %v1192_v6, %v1191_v37  ;;  %v1193_v27 = vmul.f32 %v4311_v35, %v4788_v2 }
 0x37b   : > { %3979 = vmatpush3.bf16.msra.mxu0 %v1488_v25  ;;  %3980 = vmatprep.mubr.msk.bf16.mxu0 %vm4445_vm1, %v4444_v10 }
 0x37c   : > { %3990 = vmatprep.subr.bf16.mxu0 %v4444_v10  ;;  %v1203_v21 = vpack.c.bf16 %v1194_v38, %v1193_v27 }
 0x37f   : > { %3975 = vmatmul.mubr.msk.bf16.vlgmr.msra.gmra.mxu1 %vm623_vm2, %v1202_v39 }
 0x380   : > { %3985 = vmatpush3.bf16.msra.mxu1 %v1535_v57  ;;  %3986 = vmatprep.mubr.msk.bf16.mxu1 %vm4445_vm1, %v4444_v10 }
 0x381   : > { %3996 = vmatprep.subr.bf16.mxu1 %v4444_v10 }
 0x382   : > { %3981 = vmatmul.mubr.msk.bf16.vlgmr.msra.gmra.mxu0 %vm623_vm2, %v1203_v21 }
 0x383   : > { %3992 = vmatprep.mubr.msk.bf16.mxu0 %vm4445_vm1, %v4444_v10 }
 0x398   : > { %v1161_v11 = vpop.xlane.xlu1 %1160 }
 0x399   : > { %4312 = vrcp.f32 %v1161_v11 }
 0x39c   : > { %v1635_v60 = vpop.permute.xlu1 %1634 }
 0x39d   : > { %v1164_v40 = vpop.xlane.xlu0 %1163  ;;  %v1640_v0 = vsel %vm623_vm2, %v1635_v60, 0 }
 0x39e   : > { %4314 = vrcp.f32 %v1164_v40 }
 0x3a0   : > { %v1686_v45 = vpop.permute.xlu1 %1685 }
 0x3a1   : > { %v1584_v23 = vpop.permute.xlu0 %1583  ;;  %v1691_v24 = vsel %vm623_vm2, %v1686_v45, 0 }
 0x3a2   : > { %v1589_v2 = vsel %vm623_vm2, %v1584_v23, 0 }
 0x3a3   : > { %3991 = vmatpush3.bf16.xpose.msra.mxu0 %v1589_v2 }
 0x3a4   : > { %4002 = vmatprep.subr.bf16.mxu0 %v4444_v10  ;;  %v1737_v17 = vpop.permute.xlu1 %1736 }
 0x3a5   : > { %v1582_v46 = vpop.permute.xlu0 %1581  ;;  %v1742_v50 = vsel %vm623_vm2, %v1737_v17, 0 }
 0x3a6   : > { %v4313_v52 = vpop.eup %4312 }
 0x3a7   : > { %v1195_v56 = vmul.f32 %v4313_v52, %v4831_v12 }
 0x3a8   : > { %v1788_v32 = vpop.permute.xlu1 %1787 }
 0x3a9   : > { %v1633_v53 = vpop.permute.xlu0 %1632  ;;  %v1793_v26 = vsel %vm623_vm2, %v1788_v32, 0 }
 0x3aa   : > { %3993 = vmatmul.mubr.msk.bf16.vlgmr.msra.gmra.mxu0 %vm623_vm2, %v1582_v46 }
 0x3ab   : > { %v4315_v55 = vpop.eup %4314  ;;  %4003 = vmatpush3.bf16.xpose.msra.mxu0 %v1691_v24  ;;  %4004 = vmatprep.mubr.msk.bf16.mxu0 %vm4445_vm1, %v4444_v10 }
 0x3ac   : > { %v1196_v58 = vmul.f32 %v4315_v55, %v4835_v36  ;;  %4014 = vmatprep.subr.bf16.mxu0 %v4444_v10  ;;  %v1839_v31 = vpop.permute.xlu1 %1838 }
 0x3ad   : > { %v1684_v61 = vpop.permute.xlu0 %1683  ;;  %v1844_v3 = vsel %vm623_vm2, %v1839_v31, 0 }
 0x3ae   : > { %v1204_v62 = vpack.c.bf16 %v1196_v58, %v1195_v56 }
 0x3b0   : > { %3987 = vmatmul.mubr.msk.bf16.vlgmr.msra.gmra.mxu1 %vm623_vm2, %v1204_v62  ;;  %v1890_v1 = vpop.permute.xlu1 %1889 }
 0x3b1   : > { %3997 = vmatpush3.bf16.xpose.msra.mxu1 %v1640_v0  ;;  %v1735_v49 = vpop.permute.xlu0 %1734  ;;  %3998 = vmatprep.mubr.msk.bf16.mxu1 %vm4445_vm1, %v4444_v10  ;;  %v1895_v4 = vsel %vm623_vm2, %v1890_v1, 0 }
 0x3b2   : > { %4005 = vmatmul.mubr.msk.bf16.vlgmr.msra.gmra.mxu0 %vm623_vm2, %v1684_v61  ;;  %4008 = vmatprep.subr.bf16.mxu1 %v4444_v10 }
 0x3b3   : > { %4015 = vmatpush3.bf16.xpose.msra.mxu0 %v1793_v26  ;;  %4016 = vmatprep.mubr.msk.bf16.mxu0 %vm4445_vm1, %v4444_v10 }
 0x3b4   : > { %4026 = vmatprep.subr.bf16.mxu0 %v4444_v10  ;;  %v1941_v36 = vpop.permute.xlu1 %1940 }
 0x3b5   : > { %v1786_v12 = vpop.permute.xlu0 %1785  ;;  %v1946_v59 = vsel %vm623_vm2, %v1941_v36, 0 }
 0x3b8   : > { %3999 = vmatmul.mubr.msk.bf16.vlgmr.msra.gmra.mxu1 %vm623_vm2, %v1633_v53  ;;  %v1939_v7 = vpop.permute.xlu1 %1938 }
 0x3b9   : > { %4009 = vmatpush3.bf16.xpose.msra.mxu1 %v1742_v50  ;;  %4010 = vmatprep.mubr.msk.bf16.mxu1 %vm4445_vm1, %v4444_v10  ;;  %v1837_v5 = vpop.permute.xlu0 %1836 }
 0x3ba   : > { %4017 = vmatmul.mubr.msk.bf16.vlgmr.msra.gmra.mxu0 %vm623_vm2, %v1786_v12  ;;  %4020 = vmatprep.subr.bf16.mxu1 %v4444_v10 }
 0x3bb   : > { %4027 = vmatpush3.bf16.xpose.msra.mxu0 %v1895_v4  ;;  %4028 = vmatprep.mubr.msk.bf16.mxu0 %vm4445_vm1, %v4444_v10 }
 0x3bc   : > { %4038 = vmatprep.subr.bf16.mxu0 %v4444_v10  ;;  %v2174_v14 = vpop.permute.xlu1 %2173 }
 0x3bd   : > { %v1888_v54 = vpop.permute.xlu0 %1887 }
 0x3c0   : > { %4011 = vmatmul.mubr.msk.bf16.vlgmr.msra.gmra.mxu1 %vm623_vm2, %v1735_v49 }
 0x3c1   : > { %4021 = vmatpush3.bf16.xpose.msra.mxu1 %v1844_v3  ;;  %4022 = vmatprep.mubr.msk.bf16.mxu1 %vm4445_vm1, %v4444_v10 }
 0x3c2   : > { %4029 = vmatmul.mubr.msk.bf16.vlgmr.msra.gmra.mxu0 %vm623_vm2, %v1888_v54  ;;  %4032 = vmatprep.subr.bf16.mxu1 %v4444_v10 }
 0x3c3   : > { %4039 = vmatpush3.bf16.msra.mxu0 %v2174_v14  ;;  %4040 = vmatprep.mubr.msk.bf16.mxu0 %vm4445_vm1, %v4444_v10 }
 0x3c4   : > { %4050 = vmatprep.subr.bf16.mxu0 %v4444_v10 }
 0x3c8   : > { %4023 = vmatmul.mubr.msk.bf16.vlgmr.msra.gmra.mxu1 %vm623_vm2, %v1837_v5 }
 0x3c9   : > { %4033 = vmatpush3.bf16.xpose.msra.mxu1 %v1946_v59  ;;  %4034 = vmatprep.mubr.msk.bf16.mxu1 %vm4445_vm1, %v4444_v10 }
 0x3ca   : > { %4044 = vmatprep.subr.bf16.mxu1 %v4444_v10 }
 0x3d0   : > { %4035 = vmatmul.mubr.msk.bf16.vlgmr.msra.gmra.mxu1 %vm623_vm2, %v1939_v7 }
 0x3d1   : > { %4046 = vmatprep.mubr.msk.bf16.mxu1 %vm4445_vm1, %v4444_v10 }
 0x422   : > { %v4949_v42 = vpop.f32.mrf.mxu0 }
 0x424   : > { %v3946_v19 = vpop.f32.mrf.mxu0 }
 0x426   : > { %v4951_v20 = vpop.f32.mrf.mxu0 }
 0x428   : > { %v3947_v22 = vpop.f32.mrf.mxu0 }
 0x42a   : > { %v4953_v13 = vpop.f32.mrf.mxu1 }
 0x42c   : > { %v3952_v63 = vpop.f32.mrf.mxu1 }
 0x42e   : > { %v4955_v28 = vpop.f32.mrf.mxu1 }
 0x430   : > { %v3953_v9 = vpop.f32.mrf.mxu1 }
 0x432   : > { %v4957_v18 = vpop.f32.mrf.mxu0 }
 0x434   : > { %v3958_v8 = vpop.f32.mrf.mxu0 }
 0x436   : > { %v4959_v16 = vpop.f32.mrf.mxu0 }
 0x437   : > { %v4961_v29 = vpop.f32.mrf.mxu1 }
 0x438   : > { %v3959_v33 = vpop.f32.mrf.mxu0 }
 0x439   : > { %v3964_v15 = vpop.f32.mrf.mxu1 }
 0x43a   : > { %v4965_v34 = vpop.f32.mrf.mxu0 }
 0x43b   : > { %v4963_v6 = vpop.f32.mrf.mxu1 }
 0x43c   : > { %v3970_v37 = vpop.f32.mrf.mxu0 }
 0x43d   : > { %v3965_v25 = vpop.f32.mrf.mxu1 }
 0x43e   : > { %v4967_v35 = vpop.f32.mrf.mxu0 }
 0x43f   : > { %v4969_v39 = vpop.f32.mrf.mxu1 }
 0x440   : > { %v3971_v38 = vpop.f32.mrf.mxu0 }
 0x441   : > { %v3976_v57 = vpop.f32.mrf.mxu1 }
 0x442   : > { %v4973_v21 = vpop.f32.mrf.mxu0 }
 0x443   : > { %v4971_v27 = vpop.f32.mrf.mxu1 }
 0x444   : > { %v3982_v60 = vpop.f32.mrf.mxu0 }
 0x445   : > { %v3977_v11 = vpop.f32.mrf.mxu1 }
 0x446   : > { %v4975_v40 = vpop.f32.mrf.mxu0 }
 0x448   : > { %v3983_v45 = vpop.f32.mrf.mxu0 }
 0x46a   : > { %v4977_v23 = vpop.f32.mrf.mxu0 }
 0x46b   : > { %v1989_v2 = vsel %vm623_vm2, %v4977_v23, -inf }
 0x46c   : > { %1990 = vmax.xlane.f32.xlu0 %v1989_v2  ;;  %v3994_v17 = vpop.f32.mrf.mxu0 }
 0x46e   : > { %v4981_v46 = vpop.f32.mrf.mxu0 }
 0x46f   : > { %v1992_v52 = vsel %vm623_vm2, %v4981_v46, -inf }
 0x470   : > { %v4985_v32 = vpop.f32.mrf.mxu1  ;;  %1993 = vmax.xlane.f32.xlu1 %v1992_v52  ;;  %v3995_v53 = vpop.f32.mrf.mxu0 }
 0x472   : > { %v3988_v24 = vpop.f32.mrf.mxu1  ;;  %v4987_v55 = vpop.f32.mrf.mxu0 }
 0x473   : > { %v2001_v56 = vsel %vm623_vm2, %v4987_v55, -inf }
 0x474   : > { %v4991_v58 = vpop.f32.mrf.mxu1  ;;  %2002 = vmax.xlane.f32.xlu1 %v2001_v56  ;;  %v4006_v31 = vpop.f32.mrf.mxu0 }
 0x476   : > { %v3989_v61 = vpop.f32.mrf.mxu1  ;;  %v4993_v62 = vpop.f32.mrf.mxu0 }
 0x477   : > { %v2004_v14 = vsel %vm623_vm2, %v4993_v62, -inf }
 0x478   : > { %v4995_v0 = vpop.f32.mrf.mxu1  ;;  %v4007_v1 = vpop.f32.mrf.mxu0 }
 0x479   : > { %v1995_v49 = vsel %vm623_vm2, %v4995_v0, -inf }
 0x47a   : > { %1996 = vmax.xlane.f32.xlu0 %v1995_v49  ;;  %v4000_v26 = vpop.f32.mrf.mxu1  ;;  %v4999_v12 = vpop.f32.mrf.mxu0 }
 0x47b   : > { %v2013_v33 = vsel %vm623_vm2, %v4999_v12, -inf }
 0x47c   : > { %v5001_v36 = vpop.f32.mrf.mxu1  ;;  %v4018_v50 = vpop.f32.mrf.mxu0 }
 0x47d   : > { %v1998_v4 = vsel %vm623_vm2, %v5001_v36, -inf }
 0x47e   : > { %1999 = vmax.xlane.f32.xlu0 %v1998_v4  ;;  %v4001_v5 = vpop.f32.mrf.mxu1  ;;  %v5005_v7 = vpop.f32.mrf.mxu0 }
 0x47f   : > { %v2016_v57 = vsel %vm623_vm2, %v5005_v7, -inf }
 0x480   : > { %v5007_v3 = vpop.f32.mrf.mxu1  ;;  %v4019_v54 = vpop.f32.mrf.mxu0 }
 0x481   : > { %v2007_v59 = vsel %vm623_vm2, %v5007_v3, -inf }
 0x482   : > { %2005 = vmax.xlane.f32.xlu0 %v2004_v14  ;;  %2008 = vmax.xlane.f32.xlu1 %v2007_v59  ;;  %v4012_v19 = vpop.f32.mrf.mxu1  ;;  %v5013_v22 = vpop.f32.mrf.mxu0 }
 0x483   : > { %v2025_v17 = vsel %vm623_vm2, %v5013_v22, -inf }
 0x484   : > { %v5015_v63 = vpop.f32.mrf.mxu1  ;;  %v4030_v9 = vpop.f32.mrf.mxu0 }
 0x485   : > { %v2010_v8 = vsel %vm623_vm2, %v5015_v63, -inf }
 0x486   : > { %2011 = vmax.xlane.f32.xlu0 %v2010_v8  ;;  %v4013_v15 = vpop.f32.mrf.mxu1  ;;  %2014 = vmax.xlane.f32.xlu1 %v2013_v33  ;;  %v5021_v25 = vpop.f32.mrf.mxu0 }
 0x487   : > { %v2028_v56 = vsel %vm623_vm2, %v5021_v25, -inf }
 0x488   : > { %v5023_v37 = vpop.f32.mrf.mxu1  ;;  %v4031_v38 = vpop.f32.mrf.mxu0 }
 0x489   : > { %v2019_v11 = vsel %vm623_vm2, %v5023_v37, -inf }
 0x48a   : > { %2017 = vmax.xlane.f32.xlu0 %v2016_v57  ;;  %2020 = vmax.xlane.f32.xlu1 %v2019_v11  ;;  %v4024_v60 = vpop.f32.mrf.mxu1 }
 0x48c   : > { %v5029_v45 = vpop.f32.mrf.mxu1 }
 0x48d   : > { %v2022_v2 = vsel %vm623_vm2, %v5029_v45, -inf }
 0x48e   : > { %2023 = vmax.xlane.f32.xlu0 %v2022_v2  ;;  %v4025_v52 = vpop.f32.mrf.mxu1  ;;  %2026 = vmax.xlane.f32.xlu1 %v2025_v17 }
 0x490   : > { %v5035_v53 = vpop.f32.mrf.mxu1 }
 0x491   : > { %v2031_v24 = vsel %vm623_vm2, %v5035_v53, -inf }
 0x492   : > { %v4036_v31 = vpop.f32.mrf.mxu1  ;;  %2032 = vmax.xlane.f32.xlu1 %v2031_v24  ;;  %2029 = vmax.xlane.f32.xlu0 %v2028_v56 }
 0x494   : > { %v5041_v61 = vpop.f32.mrf.mxu1 }
 0x495   : > { %v2034_v1 = vsel %vm623_vm2, %v5041_v61, -inf }
 0x496   : > { %v4037_v49 = vpop.f32.mrf.mxu1  ;;  %2035 = vmax.xlane.f32.xlu0 %v2034_v1 }
 0x4a3   : > { %2267 = vrot.lane.b32.xlu1 %v4603_v43, %s4450_s28 }
 0x4a7   : > { %2314 = vrot.lane.b32.xlu1 %v4611_v47, %s4450_s28 }
 0x4ab   : > { %2408 = vrot.lane.b32.xlu1 %v4617_v48, %s4450_s28 }
 0x4ac   : > { %2220 = vrot.lane.b32.xlu0 %v4597_v30, %s4450_s28 }
 0x4b0   : > { %2361 = vrot.lane.b32.xlu0 %v4601_v41, %s4450_s28 }
 0x4f5   : > { %v1991_v26 = vpop.xlane.xlu0 %1990 }
 0x4f6   : > { %v2037_v50 = vsub.f32 %v4977_v23, %v1991_v26 }
 0x4f8   : > { %v2053_v4 = vmul.f32 1.442695, %v2037_v50 }
 0x4f9   : > { %v1994_v5 = vpop.xlane.xlu1 %1993 }
 0x4fa   : > { %4316 = vpow2.f32 %v2053_v4  ;;  %v2038_v43 = vsub.f32 %v4981_v46, %v1994_v5 }
 0x4fc   : > { %v2055_v54 = vmul.f32 1.442695, %v2038_v43 }
 0x4fd   : > { %v2003_v47 = vpop.xlane.xlu1 %2002 }
 0x4fe   : > { %4318 = vpow2.f32 %v2055_v54  ;;  %v2041_v14 = vsub.f32 %v4987_v55, %v2003_v47 }
 0x500   : > { %v2061_v30 = vmul.f32 1.442695, %v2041_v14 }
 0x503   : > { %v1997_v48 = vpop.xlane.xlu0 %1996 }
 0x504   : > { %v2039_v59 = vsub.f32 %v4995_v0, %v1997_v48 }
 0x506   : > { %v2057_v19 = vmul.f32 1.442695, %v2039_v59 }
 0x507   : > { %v5059_v9 = vpop.eup %4316  ;;  %v2000_v41 = vpop.xlane.xlu0 %1999 }
 0x508   : > { %4320 = vpow2.f32 %v2057_v19  ;;  %v2040_v23 = vsub.f32 %v5001_v36, %v2000_v41  ;;  %v2085_v8 = vsel %vm623_vm2, %v5059_v9, 0.0 }
 0x509   : > { %2086 = vadd.xlane.f32.xlu1 %v2085_v8  ;;  %4322 = vpow2.f32 %v2061_v30 }
 0x50a   : > { %v2059_v46 = vmul.f32 1.442695, %v2040_v23 }
 0x50b   : > { %v5064_v33 = vpop.eup %4318  ;;  %v2009_v55 = vpop.xlane.xlu1 %2008 }
 0x50c   : > { %v2006_v15 = vpop.xlane.xlu0 %2005  ;;  %4324 = vpow2.f32 %v2059_v46  ;;  %v2043_v0 = vsub.f32 %v5007_v3, %v2009_v55  ;;  %v2088_v57 = vsel %vm623_vm2, %v5064_v33, 0.0 }
 0x50d   : > { %v2042_v38 = vsub.f32 %v4993_v62, %v2006_v15  ;;  %2089 = vadd.xlane.f32.xlu0 %v2088_v57 }
 0x50e   : > { %v2065_v36 = vmul.f32 1.442695, %v2043_v0 }
 0x50f   : > { %v2063_v11 = vmul.f32 1.442695, %v2042_v38  ;;  %v2015_v60 = vpop.xlane.xlu1 %2014 }
 0x510   : > { %v2012_v2 = vpop.xlane.xlu0 %2011  ;;  %4326 = vpow2.f32 %v2065_v36  ;;  %v2045_v17 = vsub.f32 %v4999_v12, %v2015_v60 }
 0x511   : > { %v2044_v52 = vsub.f32 %v5015_v63, %v2012_v2  ;;  %4328 = vpow2.f32 %v2063_v11 }
 0x512   : > { %v2069_v24 = vmul.f32 1.442695, %v2045_v17 }
 0x513   : > { %v2067_v56 = vmul.f32 1.442695, %v2044_v52  ;;  %v2021_v31 = vpop.xlane.xlu1 %2020 }
 0x514   : > { %v2018_v3 = vpop.xlane.xlu0 %2017  ;;  %4330 = vpow2.f32 %v2069_v24  ;;  %v2047_v62 = vsub.f32 %v5023_v37, %v2021_v31 }
 0x515   : > { %v2046_v1 = vsub.f32 %v5005_v7, %v2018_v3  ;;  %v5074_v49 = vpop.eup %4320  ;;  %4332 = vpow2.f32 %v2067_v56 }
 0x516   : > { %v2073_v26 = vmul.f32 1.442695, %v2047_v62  ;;  %v2091_v12 = vsel %vm623_vm2, %v5074_v49, 0.0  ;;  %v5078_v4 = vpop.eup %4322 }
 0x517   : > { %v2071_v50 = vmul.f32 1.442695, %v2046_v1  ;;  %v2027_v63 = vpop.xlane.xlu1 %2026  ;;  %2092 = vadd.xlane.f32.xlu1 %v2091_v12  ;;  %v2097_v14 = vsel %vm623_vm2, %v5078_v4, 0.0 }
 0x518   : > { %v2024_v5 = vpop.xlane.xlu0 %2023  ;;  %4334 = vpow2.f32 %v2073_v26  ;;  %v2049_v43 = vsub.f32 %v5013_v22, %v2027_v63 }
 0x519   : > { %v2048_v37 = vsub.f32 %v5029_v45, %v2024_v5  ;;  %v5082_v54 = vpop.eup %4324  ;;  %4336 = vpow2.f32 %v2071_v50 }
 0x51a   : > { %v2077_v7 = vmul.f32 1.442695, %v2049_v43  ;;  %v2094_v48 = vsel %vm623_vm2, %v5082_v54, 0.0 }
 0x51b   : > { %v2075_v47 = vmul.f32 1.442695, %v2048_v37  ;;  %v2033_v59 = vpop.xlane.xlu1 %2032  ;;  %2098 = vadd.xlane.f32.xlu1 %v2097_v14  ;;  %2095 = vadd.xlane.f32.xlu0 %v2094_v48 }
 0x51c   : > { %v2030_v30 = vpop.xlane.xlu0 %2029  ;;  %4338 = vpow2.f32 %v2077_v7  ;;  %v2051_v22 = vsub.f32 %v5035_v53, %v2033_v59 }
 0x51d   : > { %v2050_v45 = vsub.f32 %v5021_v25, %v2030_v30  ;;  %v5090_v19 = vpop.eup %4326  ;;  %4340 = vpow2.f32 %v2075_v47 }
 0x51e   : > { %v5092_v41 = vpop.eup %4328  ;;  %v2081_v23 = vmul.f32 1.442695, %v2051_v22  ;;  %v2103_v46 = vsel %vm623_vm2, %v5090_v19, 0.0 }
 0x51f   : > { %v2079_v8 = vmul.f32 1.442695, %v2050_v45  ;;  %2104 = vadd.xlane.f32.xlu1 %v2103_v46  ;;  %v2100_v55 = vsel %vm623_vm2, %v5092_v41, 0.0  ;;  %v2268_v63 = vpop.permute.xlu1 %2267 }
 0x520   : > { %v2036_v15 = vpop.xlane.xlu0 %2035  ;;  %4342 = vpow2.f32 %v2081_v23  ;;  %2101 = vadd.xlane.f32.xlu0 %v2100_v55 }
 0x521   : > { %v2052_v53 = vsub.f32 %v5041_v61, %v2036_v15  ;;  %v5099_v25 = vpop.eup %4330  ;;  %4344 = vpow2.f32 %v2079_v8 }
 0x522   : > { %v5101_v0 = vpop.eup %4332  ;;  %v2109_v57 = vsel %vm623_vm2, %v5099_v25, 0.0 }
 0x523   : > { %v2083_v38 = vmul.f32 1.442695, %v2052_v53  ;;  %2110 = vadd.xlane.f32.xlu1 %v2109_v57  ;;  %v2106_v36 = vsel %vm623_vm2, %v5101_v0, 0.0  ;;  %v2315_v5 = vpop.permute.xlu1 %2314 }
 0x524   : > { %v2221_v11 = vpop.permute.xlu0 %2220  ;;  %2107 = vadd.xlane.f32.xlu0 %v2106_v36 }
 0x525   : > { %4346 = vpow2.f32 %v2083_v38  ;;  %4045 = vmatpush3.bf16.msra.mxu1 %v2221_v11  ;;  %v5107_v60 = vpop.eup %4334 }
 0x526   : > { %4056 = vmatprep.subr.bf16.mxu1 %v4444_v10  ;;  %v5110_v61 = vpop.eup %4336  ;;  %v2115_v2 = vsel %vm623_vm2, %v5107_v60, 0.0 }
 0x527   : > { %2116 = vadd.xlane.f32.xlu1 %v2115_v2  ;;  %v2112_v17 = vsel %vm623_vm2, %v5110_v61, 0.0  ;;  %v5140_v43 = vpop.permute.xlu1 %2408 }
 0x528   : > { %2113 = vadd.xlane.f32.xlu0 %v2112_v17  ;;  %v2362_v37 = vpop.permute.xlu0 %2361 }
 0x529   : > { %v5116_v52 = vpop.eup %4338 }
 0x52a   : > { %v5118_v24 = vpop.eup %4340  ;;  %v2121_v56 = vsel %vm623_vm2, %v5116_v52, 0.0 }
 0x52b   : > { %2122 = vadd.xlane.f32.xlu1 %v2121_v56  ;;  %v2118_v31 = vsel %vm623_vm2, %v5118_v24, 0.0 }
 0x52c   : > { %2119 = vadd.xlane.f32.xlu0 %v2118_v31 }
 0x52d   : > { %v5124_v3 = vpop.eup %4342 }
 0x52e   : > { %v5126_v62 = vpop.eup %4344  ;;  %v2127_v1 = vsel %vm623_vm2, %v5124_v3, 0.0 }
 0x52f   : > { %2128 = vadd.xlane.f32.xlu1 %v2127_v1  ;;  %v2124_v26 = vsel %vm623_vm2, %v5126_v62, 0.0 }
 0x530   : > { %2125 = vadd.xlane.f32.xlu0 %v2124_v26 }
 0x532   : > { %v5132_v50 = vpop.eup %4346 }
 0x533   : > { %v2130_v12 = vsel %vm623_vm2, %v5132_v50, 0.0 }
 0x534   : > { %2131 = vadd.xlane.f32.xlu0 %v2130_v12 }
 0x540   : > { %2502 = vrot.lane.b32.xlu1 %v4623_v51, %s4450_s28 }
 0x54a   : > { %2455 = vrot.lane.b32.xlu0 %v4605_v44, %s4450_s28 }
 0x592   : > { %v2087_v7 = vpop.xlane.xlu1 %2086 }
 0x593   : > { %4348 = vrcp.f32 %v2087_v7 }
 0x596   : > { %v2090_v47 = vpop.xlane.xlu0 %2089 }
 0x597   : > { %4350 = vrcp.f32 %v2090_v47 }
 0x5a0   : > { %v2093_v14 = vpop.xlane.xlu1 %2092  ;;  %v4349_v48 = vpop.eup %4348 }
 0x5a1   : > { %4352 = vrcp.f32 %v2093_v14  ;;  %v2149_v51 = vmul.f32 %v4349_v48, %v5059_v9 }
 0x5a4   : > { %v4351_v59 = vpop.eup %4350  ;;  %v2099_v30 = vpop.xlane.xlu1 %2098 }
 0x5a5   : > { %v2096_v22 = vpop.xlane.xlu0 %2095  ;;  %v2150_v45 = vmul.f32 %v4351_v59, %v5064_v33 }
 0x5a6   : > { %4354 = vrcp.f32 %v2096_v22 }
 0x5a7   : > { %v2165_v44 = vpack.c.bf16 %v2150_v45, %v2149_v51  ;;  %4356 = vrcp.f32 %v2099_v30 }
 0x5a8   : > { %v2105_v23 = vpop.xlane.xlu1 %2104 }
 0x5a9   : > { %v2102_v8 = vpop.xlane.xlu0 %2101  ;;  %4041 = vmatmul.mubr.msk.bf16.vlgmr.msra.gmra.mxu0 %vm623_vm2, %v2165_v44 }
 0x5aa   : > { %4358 = vrcp.f32 %v2102_v8  ;;  %4051 = vmatpush3.bf16.msra.mxu0 %v2268_v63  ;;  %4052 = vmatprep.mubr.msk.bf16.mxu0 %vm4445_vm1, %v4444_v10 }
 0x5ab   : > { %4062 = vmatprep.subr.bf16.mxu0 %v4444_v10  ;;  %4360 = vrcp.f32 %v2105_v23 }
 0x5ac   : > { %v2111_v46 = vpop.xlane.xlu1 %2110 }
 0x5ad   : > { %v2108_v55 = vpop.xlane.xlu0 %2107 }
 0x5ae   : > { %4362 = vrcp.f32 %v2108_v55  ;;  %v4353_v33 = vpop.eup %4352 }
 0x5af   : > { %4364 = vrcp.f32 %v2111_v46  ;;  %v2151_v57 = vmul.f32 %v4353_v33, %v5074_v49 }
 0x5b0   : > { %v2117_v9 = vpop.xlane.xlu1 %2116 }
 0x5b1   : > { %v2114_v15 = vpop.xlane.xlu0 %2113 }
 0x5b2   : > { %4366 = vrcp.f32 %v2114_v15 }
 0x5b3   : > { %v4355_v53 = vpop.eup %4354  ;;  %4368 = vrcp.f32 %v2117_v9 }
 0x5b4   : > { %v2123_v38 = vpop.xlane.xlu1 %2122  ;;  %v2152_v36 = vmul.f32 %v4355_v53, %v5082_v54  ;;  %v4357_v11 = vpop.eup %4356 }
 0x5b5   : > { %v2120_v2 = vpop.xlane.xlu0 %2119  ;;  %v2153_v31 = vmul.f32 %v4357_v11, %v5078_v4 }
 0x5b6   : > { %4370 = vrcp.f32 %v2120_v2  ;;  %v2166_v17 = vpack.c.bf16 %v2152_v36, %v2151_v57 }
 0x5b7   : > { %v4359_v56 = vpop.eup %4358  ;;  %4372 = vrcp.f32 %v2123_v38 }
 0x5b8   : > { %4047 = vmatmul.mubr.msk.bf16.vlgmr.msra.gmra.mxu1 %vm623_vm2, %v2166_v17  ;;  %v2154_v1 = vmul.f32 %v4359_v56, %v5092_v41  ;;  %v4361_v26 = vpop.eup %4360  ;;  %v2129_v12 = vpop.xlane.xlu1 %2128 }
 0x5b9   : > { %4057 = vmatpush3.bf16.msra.mxu1 %v2315_v5  ;;  %v2126_v63 = vpop.xlane.xlu0 %2125  ;;  %4058 = vmatprep.mubr.msk.bf16.mxu1 %vm4445_vm1, %v4444_v10  ;;  %v2155_v7 = vmul.f32 %v4361_v26, %v5090_v19 }
 0x5ba   : > { %4374 = vrcp.f32 %v2126_v63  ;;  %v2167_v49 = vpack.c.bf16 %v2154_v1, %v2153_v31  ;;  %4068 = vmatprep.subr.bf16.mxu1 %v4444_v10 }
 0x5bb   : > { %v4363_v54 = vpop.eup %4362  ;;  %4376 = vrcp.f32 %v2129_v12 }
 0x5bc   : > { %4053 = vmatmul.mubr.msk.bf16.vlgmr.msra.gmra.mxu0 %vm623_vm2, %v2167_v49  ;;  %v2156_v4 = vmul.f32 %v4363_v54, %v5101_v0  ;;  %v4365_v41 = vpop.eup %4364  ;;  %v2503_v45 = vpop.permute.xlu1 %2502 }
 0x5bd   : > { %4063 = vmatpush3.bf16.msra.mxu0 %v2362_v37  ;;  %v2132_v5 = vpop.xlane.xlu0 %2131  ;;  %4064 = vmatprep.mubr.msk.bf16.mxu0 %vm4445_vm1, %v4444_v10  ;;  %v2157_v48 = vmul.f32 %v4365_v41, %v5099_v25 }
 0x5be   : > { %4378 = vrcp.f32 %v2132_v5  ;;  %v2168_v47 = vpack.c.bf16 %v2156_v4, %v2155_v7  ;;  %4074 = vmatprep.subr.bf16.mxu0 %v4444_v10 }
 0x5bf   : > { %v4367_v14 = vpop.eup %4366 }
 0x5c0   : > { %4059 = vmatmul.mubr.msk.bf16.vlgmr.msra.gmra.mxu1 %vm623_vm2, %v2168_v47  ;;  %v2158_v59 = vmul.f32 %v4367_v14, %v5110_v61  ;;  %v4369_v19 = vpop.eup %4368 }
 0x5c1   : > { %4069 = vmatpush3.bf16.msra.mxu1 %v5140_v43  ;;  %4070 = vmatprep.mubr.msk.bf16.mxu1 %vm4445_vm1, %v4444_v10  ;;  %v2456_v30 = vpop.permute.xlu0 %2455  ;;  %v2159_v22 = vmul.f32 %v4369_v19, %v5107_v60 }
 0x5c2   : > { %v2169_v0 = vpack.c.bf16 %v2158_v59, %v2157_v48  ;;  %4080 = vmatprep.subr.bf16.mxu1 %v4444_v10 }
 0x5c3   : > { %v4371_v37 = vpop.eup %4370 }
 0x5c4   : > { %4065 = vmatmul.mubr.msk.bf16.vlgmr.msra.gmra.mxu0 %vm623_vm2, %v2169_v0  ;;  %v2160_v51 = vmul.f32 %v4371_v37, %v5118_v24  ;;  %v4373_v25 = vpop.eup %4372 }
 0x5c5   : > { %4075 = vmatpush3.bf16.msra.mxu0 %v2456_v30  ;;  %4076 = vmatprep.mubr.msk.bf16.mxu0 %vm4445_vm1, %v4444_v10  ;;  %v2161_v44 = vmul.f32 %v4373_v25, %v5116_v52  ;;  %v4236_v52 = vld [vmem:[%s5601_s3 + $0x8] sm:$0xff]  }
 0x5c6   : > { %v2170_v61 = vpack.c.bf16 %v2160_v51, %v2159_v22  ;;  %4086 = vmatprep.subr.bf16.mxu0 %v4236_v52 }
 0x5c7   : > { %v4375_v43 = vpop.eup %4374 }
 0x5c8   : > { %4071 = vmatmul.mubr.msk.bf16.vlgmr.msra.gmra.mxu1 %vm623_vm2, %v2170_v61  ;;  %v2162_v23 = vmul.f32 %v4375_v43, %v5126_v62  ;;  %v4377_v8 = vpop.eup %4376 }
 0x5c9   : > { %4081 = vmatpush3.bf16.msra.mxu1 %v2503_v45  ;;  %4082 = vmatprep.mubr.msk.bf16.mxu1 %vm4445_vm1, %v4444_v10  ;;  %v2163_v46 = vmul.f32 %v4377_v8, %v5124_v3  ;;  %v4237_v3 = vld [vmem:[%s5601_s3] sm:$0xff]  }
 0x5ca   : > { %v2171_v60 = vpack.c.bf16 %v2162_v23, %v2161_v44 }
 0x5cb   : > { %v4379_v24 = vpop.eup %4378 }
 0x5cc   : > { %4077 = vmatmul.mubr.msk.bf16.vlgmr.msra.gmra.mxu0 %vm623_vm2, %v2171_v60  ;;  %v2164_v55 = vmul.f32 %v4379_v24, %v5132_v50 }
 0x5cd   : > { %4087 = vmatpush3.bf16.msra.mxu0 %v4236_v52 }
 0x5ce   : > { %v2172_v9 = vpack.c.bf16 %v2164_v55, %v2163_v46  ;;  %4088 = vmatprep.subr.bf16.mxu0 %v4237_v3 }
 0x5d0   : > { %4083 = vmatmul.mubr.msk.bf16.vlgmr.msra.gmra.mxu1 %vm623_vm2, %v2172_v9 }
 0x5d1   : > { %4089 = vmatpush3.bf16.msra.mxu0 %v4237_v3 }
 0x669   : > { %v2213_v62 = vpop.f32.mrf.mxu0 }
 0x66b   : > { %v4042_v33 = vpop.f32.mrf.mxu0 }
 0x66d   : > { %v2216_v10 = vpop.f32.mrf.mxu0 }
 0x66e   : > { %v4186_v15 = vpack.i.bf16 %v2216_v10, %v2213_v62 }
 0x66f   : > { %v4043_v53 = vpop.f32.mrf.mxu0 }
 0x670   : > { %4187 = vrot.lane.b32.xlu0 %v4186_v15, %s4451_s13 }
 0x678   : > { %v2260_v50 = vpop.f32.mrf.mxu1 }
 0x67a   : > { %v4048_v38 = vpop.f32.mrf.mxu1 }
 0x67c   : > { %v2263_v57 = vpop.f32.mrf.mxu1  ;;  %v2307_v36 = vpop.f32.mrf.mxu0 }
 0x67d   : > { %v4191_v11 = vpack.i.bf16 %v2263_v57, %v2260_v50 }
 0x67e   : > { %v4049_v2 = vpop.f32.mrf.mxu1  ;;  %v4054_v17 = vpop.f32.mrf.mxu0 }
 0x67f   : > { %4192 = vrot.lane.b32.xlu1 %v4191_v11, %s4451_s13 }
 0x680   : > { %v2310_v56 = vpop.f32.mrf.mxu0  ;;  %v2354_v31 = vpop.f32.mrf.mxu1 }
 0x681   : > { %v4196_v1 = vpack.i.bf16 %v2310_v56, %v2307_v36 }
 0x682   : > { %v4055_v26 = vpop.f32.mrf.mxu0  ;;  %v4060_v12 = vpop.f32.mrf.mxu1 }
 0x683   : > { %4197 = vrot.lane.b32.xlu0 %v4196_v1, %s4451_s13 }
 0x684   : > { %v2357_v63 = vpop.f32.mrf.mxu1  ;;  %v2401_v49 = vpop.f32.mrf.mxu0 }
 0x685   : > { %v4201_v54 = vpack.i.bf16 %v2357_v63, %v2354_v31 }
 0x686   : > { %v4061_v7 = vpop.f32.mrf.mxu1  ;;  %v4066_v4 = vpop.f32.mrf.mxu0 }
 0x687   : > { %4202 = vrot.lane.b32.xlu1 %v4201_v54, %s4451_s13 }
 0x688   : > { %v2404_v41 = vpop.f32.mrf.mxu0  ;;  %v2448_v5 = vpop.f32.mrf.mxu1 }
 0x689   : > { %v4206_v47 = vpack.i.bf16 %v2404_v41, %v2401_v49 }
 0x68a   : > { %v4067_v14 = vpop.f32.mrf.mxu0  ;;  %v4072_v48 = vpop.f32.mrf.mxu1 }
 0x68b   : > { %4207 = vrot.lane.b32.xlu0 %v4206_v47, %s4451_s13 }
 0x68c   : > { %v2451_v59 = vpop.f32.mrf.mxu1  ;;  %v2495_v19 = vpop.f32.mrf.mxu0 }
 0x68d   : > { %v4211_v0 = vpack.i.bf16 %v2451_v59, %v2448_v5 }
 0x68e   : > { %v4073_v37 = vpop.f32.mrf.mxu1  ;;  %v4078_v30 = vpop.f32.mrf.mxu0 }
 0x68f   : > { %4212 = vrot.lane.b32.xlu1 %v4211_v0, %s4451_s13  ;;  %v4413_v37 = vld [vmem:[%s4534_s21] sm:$0xff]  }
 0x690   : > { %v2498_v22 = vpop.f32.mrf.mxu0  ;;  %v2542_v51 = vpop.f32.mrf.mxu1  ;;  %v2781_v30 = vunpack.c.l.bf16 %v4413_v37 }
 0x691   : > { %v4216_v25 = vpack.i.bf16 %v2498_v22, %v2495_v19 }
 0x692   : > { %v4079_v61 = vpop.f32.mrf.mxu0  ;;  %v4084_v43 = vpop.f32.mrf.mxu1 }
 0x693   : > { %4217 = vrot.lane.b32.xlu0 %v4216_v25, %s4451_s13 }
 0x694   : > { %v2545_v45 = vpop.f32.mrf.mxu1 }
 0x695   : > { %v4221_v44 = vpack.i.bf16 %v2545_v45, %v2542_v51 }
 0x696   : > { %v4085_v23 = vpop.f32.mrf.mxu1 }
 0x697   : > { %4222 = vrot.lane.b32.xlu1 %v4221_v44, %s4451_s13  ;;  %v2782_v44 = vunpack.c.h.bf16 %v4413_v37 }
 0x6e2   : > { %v4188_v8 = vpop.permute.xlu0 %4187 }
 0x6e3   : > { %v4190_v60 = vunpack.i.h.bf16 %v4188_v8  ;;  %v4189_v24 = vunpack.i.l.bf16 %v4188_v8 }
 0x6e5   : > { %v2614_v46 = vsel %vm623_vm2, %v4951_v20, %v4190_v60  ;;  %v2613_v55 = vsel %vm623_vm2, %v4949_v42, %v4189_v24 }
 0x6e6   : > { %v2629_v9 = vpack.c.bf16 %v2614_v46, %v2613_v55  ;;  %v4414_v55 = vld [vmem:[%s4534_s21 + $0x18] sm:$0xff]  }
 0x6e8   : > { %4090 = vmatprep.mubr.msk.bf16.mxu0 %vm490_vm0, %v2629_v9  ;;  %v2787_v9 = vunpack.c.l.bf16 %v4414_v55 }
 0x6f1   : > { %v4193_v52 = vpop.permute.xlu1 %4192 }
 0x6f2   : > { %v4195_v62 = vunpack.i.h.bf16 %v4193_v52  ;;  %v4194_v33 = vunpack.i.l.bf16 %v4193_v52 }
 0x6f4   : > { %v2616_v10 = vsel %vm623_vm2, %v4955_v28, %v4195_v62  ;;  %v2615_v15 = vsel %vm623_vm2, %v4953_v13, %v4194_v33 }
 0x6f5   : > { %v2630_v53 = vpack.c.bf16 %v2616_v10, %v2615_v15  ;;  %v4198_v3 = vpop.permute.xlu0 %4197  ;;  %v4415_v10 = vld [vmem:[%s4534_s21 + $0x10] sm:$0xff]  }
 0x6f6   : > { %v4200_v50 = vunpack.i.h.bf16 %v4198_v3  ;;  %v4199_v38 = vunpack.i.l.bf16 %v4198_v3  ;;  %v2785_v15 = vunpack.c.l.bf16 %v4415_v10 }
 0x6f7   : > { %4091 = vmatmul.mubr.msk.bf16.vlgmr.msra.gmra.mxu0 %vm490_vm0, %v2630_v53 }
 0x6f8   : > { %v2618_v42 = vsel %vm623_vm2, %v4959_v16, %v4200_v50  ;;  %v2617_v20 = vsel %vm623_vm2, %v4957_v18, %v4199_v38  ;;  %v2788_v38 = vunpack.c.h.bf16 %v4414_v55 }
 0x6f9   : > { %v2631_v57 = vpack.c.bf16 %v2618_v42, %v2617_v20  ;;  %v4203_v36 = vpop.permute.xlu1 %4202 }
 0x6fa   : > { %v4205_v11 = vunpack.i.h.bf16 %v4203_v36  ;;  %v4204_v2 = vunpack.i.l.bf16 %v4203_v36  ;;  %v2786_v36 = vunpack.c.h.bf16 %v4415_v10 }
 0x6fb   : > { %4094 = vmatprep.mubr.msk.bf16.mxu0 %vm490_vm0, %v2631_v57 }
 0x6fc   : > { %v2620_v13 = vsel %vm623_vm2, %v4963_v6, %v4205_v11  ;;  %v2619_v28 = vsel %vm623_vm2, %v4961_v29, %v4204_v2 }
 0x6fd   : > { %v2632_v17 = vpack.c.bf16 %v2620_v13, %v2619_v28  ;;  %v4208_v56 = vpop.permute.xlu0 %4207  ;;  %v4416_v28 = vld [vmem:[%s4534_s21 + $0x28] sm:$0xff]  }
 0x6fe   : > { %v4210_v31 = vunpack.i.h.bf16 %v4208_v56  ;;  %v4209_v1 = vunpack.i.l.bf16 %v4208_v56 }
 0x6ff   : > { %4095 = vmatmul.mubr.msk.bf16.gmra.mxu0 %vm490_vm0, %v2632_v17  ;;  %v2791_v17 = vunpack.c.l.bf16 %v4416_v28 }
 0x700   : > { %v2622_v18 = vsel %vm623_vm2, %v4967_v35, %v4210_v31  ;;  %v2621_v16 = vsel %vm623_vm2, %v4965_v34, %v4209_v1  ;;  %v4417_v31 = vld [vmem:[%s4534_s21 + $0x20] sm:$0xff]  }
 0x701   : > { %v2633_v26 = vpack.c.bf16 %v2622_v18, %v2621_v16  ;;  %v4213_v12 = vpop.permute.xlu1 %4212  ;;  %v2789_v1 = vunpack.c.l.bf16 %v4417_v31 }
 0x702   : > { %v4215_v63 = vunpack.i.h.bf16 %v4213_v12  ;;  %v4214_v49 = vunpack.i.l.bf16 %v4213_v12 }
 0x703   : > { %4098 = vmatprep.mubr.msk.bf16.mxu0 %vm490_vm0, %v2633_v26 }
 0x704   : > { %v2624_v29 = vsel %vm623_vm2, %v4971_v27, %v4215_v63  ;;  %v2623_v6 = vsel %vm623_vm2, %v4969_v39, %v4214_v49 }
 0x705   : > { %v2634_v54 = vpack.c.bf16 %v2624_v29, %v2623_v6  ;;  %v4218_v7 = vpop.permute.xlu0 %4217 }
 0x706   : > { %v4220_v4 = vunpack.i.h.bf16 %v4218_v7  ;;  %v4219_v41 = vunpack.i.l.bf16 %v4218_v7  ;;  %v2792_v7 = vunpack.c.h.bf16 %v4416_v28  ;;  %v4243_v28 = vld [vmem:[%s5605_s7] sm:$0xff]  }
 0x707   : > { %4099 = vmatmul.mubr.msk.bf16.gmra.mxu0 %vm490_vm0, %v2634_v54 }
 0x708   : > { %v2626_v34 = vsel %vm623_vm2, %v4975_v40, %v4220_v4  ;;  %v2625_v35 = vsel %vm623_vm2, %v4973_v21, %v4219_v41  ;;  %v4238_v21 = vld [vmem:[%s5603_s5 + $0x8] sm:$0xff]   ;;  %v4239_v40 = vld [vmem:[%s5603_s5] sm:$0xff]  }
 0x709   : > { %v2635_v5 = vpack.c.bf16 %v2626_v34, %v2625_v35  ;;  %v4223_v47 = vpop.permute.xlu1 %4222  ;;  %4106 = vmatprep.subr.bf16.mxu1 %v4238_v21  ;;  %v2790_v35 = vunpack.c.h.bf16 %v4417_v31 }
 0x70a   : > { %v4225_v14 = vunpack.i.h.bf16 %v4223_v47  ;;  %v4224_v27 = vunpack.i.l.bf16 %v4223_v47  ;;  %4107 = vmatpush3.bf16.msra.mxu1 %v4238_v21 }
 0x70b   : > { %4102 = vmatprep.mubr.msk.bf16.mxu0 %vm490_vm0, %v2635_v5  ;;  %4108 = vmatprep.subr.bf16.mxu1 %v4239_v40 }
 0x70c   : > { %v2628_v39 = vsel %vm623_vm2, %v4991_v58, %v4225_v14  ;;  %v2627_v48 = vsel %vm623_vm2, %v4985_v32, %v4224_v27  ;;  %v5246_v58 = vld [vmem:[%s5602_s4] ss:$0 sm:$0xff]  ;;  %v4412_v32 = vld [vmem:[%s4534_s21 + $0x8] sm:$0xff]  }
 0x70d   : > { %v2636_v59 = vpack.c.bf16 %v2628_v39, %v2627_v48  ;;  %v2783_v19 = vunpack.c.l.bf16 %v4412_v32  ;;  %v2784_v43 = vunpack.c.h.bf16 %v4412_v32  ;;  %v4418_v48 = vld [vmem:[%s4534_s21 + $0x38] sm:$0xff]  }
 0x70e   : > { %4109 = vmatpush3.bf16.msra.mxu1 %v4239_v40 }
 0x70f   : > { %4103 = vmatmul.mubr.msk.bf16.gmra.mxu0 %vm490_vm0, %v2636_v59  ;;  %v2795_v59 = vunpack.c.l.bf16 %v4418_v48 }
 0x7b7   : > { %v4092_v0 = vpop.f32.mrf.mxu0 }
 0x7b8   : > { %v2727_v22 = vadd.f32 %v4092_v0, %v5246_v58  ;;  %v4419_v0 = vld [vmem:[%s4534_s21 + $0x30] sm:$0xff]  }
 0x7b9   : > { %v2718_v51 = vpop.f32.mrf.mxu0  ;;  %v2793_v37 = vunpack.c.l.bf16 %v4419_v0 }
 0x7ba   : > { %v2799_v25 = vadd.f32 %v2783_v19, %v2727_v22  ;;  %v2719_v61 = vadd.f32 %v5246_v58, %v2718_v51 }
 0x7bb   : > { %v4093_v45 = vpop.f32.mrf.mxu0 }
 0x7bc   : > { %2815 = vst.msk [vmem:[#allocation2 + $0x10] sm:$0xff] %vm490_vm0, %v2799_v25  ;;  %v2797_v23 = vadd.f32 %v2781_v30, %v2719_v61  ;;  %v2730_v8 = vadd.f32 %v4093_v45, %v5246_v58  ;;  %v2796_v45 = vunpack.c.h.bf16 %v4418_v48 }
 0x7bd   : > { %v2721_v60 = vpop.f32.mrf.mxu0 }
 0x7be   : > { %2813 = vst.msk [vmem:[#allocation2] sm:$0xff] %vm490_vm0, %v2797_v23  ;;  %v2800_v24 = vadd.f32 %v2784_v43, %v2730_v8  ;;  %v2722_v46 = vadd.f32 %v5246_v58, %v2721_v60 }
 0x7bf   : > { %v4096_v52 = vpop.f32.mrf.mxu0 }
 0x7c0   : > { %2816 = vst.msk [vmem:[#allocation2 + $0x18] sm:$0xff] %vm490_vm0, %v2800_v24  ;;  %v2798_v62 = vadd.f32 %v2782_v44, %v2722_v46  ;;  %v2743_v33 = vadd.f32 %v4096_v52, %v5246_v58  ;;  %v2794_v46 = vunpack.c.h.bf16 %v4419_v0 }
 0x7c1   : > { %v2734_v53 = vpop.f32.mrf.mxu0 }
 0x7c2   : > { %2814 = vst.msk [vmem:[#allocation2 + $0x8] sm:$0xff] %vm490_vm0, %v2798_v62  ;;  %v2803_v3 = vadd.f32 %v2787_v9, %v2743_v33  ;;  %v2735_v50 = vadd.f32 %v5246_v58, %v2734_v53 }
 0x7c3   : > { %v4097_v42 = vpop.f32.mrf.mxu0  ;;  %v5276_v29 = vld [vmem:[#allocation2 + $0x10] sm:$0xff] }
 0x7c4   : > { %2819 = vst.msk [vmem:[#allocation2 + $0x30] sm:$0xff] %vm490_vm0, %v2803_v3  ;;  %v2801_v20 = vadd.f32 %v2785_v15, %v2735_v50  ;;  %v2746_v57 = vadd.f32 %v4097_v42, %v5246_v58 }
 0x7c5   : > { %v2737_v11 = vpop.f32.mrf.mxu0  ;;  %v5272_v12 = vld [vmem:[#allocation2] sm:$0xff] }
 0x7c6   : > { %2817 = vst.msk [vmem:[#allocation2 + $0x20] sm:$0xff] %vm490_vm0, %v2801_v20  ;;  %v2804_v2 = vadd.f32 %v2788_v38, %v2746_v57  ;;  %v2738_v13 = vadd.f32 %v5246_v58, %v2737_v11  ;;  %v4240_v11 = vld [vmem:[%s5605_s7 + $0x18] sm:$0xff]  }
 0x7c7   : > { %v4100_v56 = vpop.f32.mrf.mxu0  ;;  %v5268_v18 = vld [vmem:[#allocation2 + $0x18] sm:$0xff]  ;;  %4126 = vmatprep.subr.bf16.mxu0 %v4240_v11 }
 0x7c8   : > { %2820 = vst.msk [vmem:[#allocation2 + $0x38] sm:$0xff] %vm490_vm0, %v2804_v2  ;;  %v2802_v16 = vadd.f32 %v2786_v36, %v2738_v13  ;;  %v2759_v26 = vadd.f32 %v4100_v56, %v5246_v58  ;;  %v2862_v34 = vpack.c.bf16 %v5268_v18, %v5276_v29  ;;  %4127 = vmatpush3.bf16.msra.mxu0 %v4240_v11  ;;  %v4241_v2 = vld [vmem:[%s5605_s7 + $0x10] sm:$0xff]   ;;  %v4242_v13 = vld [vmem:[%s5605_s7 + $0x8] sm:$0xff]  }
 0x7c9   : > { %v5274_v63 = vld [vmem:[#allocation2 + $0x8] sm:$0xff]  ;;  %v2750_v49 = vpop.f32.mrf.mxu0  ;;  %4128 = vmatprep.subr.bf16.mxu0 %v4241_v2 }
 0x7ca   : > { %2818 = vst.msk [vmem:[#allocation2 + $0x28] sm:$0xff] %vm490_vm0, %v2802_v16  ;;  %v2807_v6 = vadd.f32 %v2791_v17, %v2759_v26  ;;  %v2751_v54 = vadd.f32 %v5246_v58, %v2750_v49  ;;  %v2861_v4 = vpack.c.bf16 %v5274_v63, %v5272_v12  ;;  %v5359_v17 = vld [vmem:[%s5604_s6] ss:$0 sm:$0xff] }
 0x7cb   : > { %v4101_v41 = vpop.f32.mrf.mxu0  ;;  %v5300_v25 = vld [vmem:[#allocation2 + $0x30] sm:$0xff] }
 0x7cc   : > { %2823 = vst.msk [vmem:[#allocation2 + $0x50] sm:$0xff] %vm490_vm0, %v2807_v6  ;;  %v2805_v5 = vadd.f32 %v2789_v1, %v2751_v54  ;;  %v2762_v47 = vadd.f32 %v4101_v41, %v5246_v58  ;;  %4110 = vmatprep.mubr.msk.bf16.mxu1 %vm490_vm0, %v2861_v4  ;;  %4129 = vmatpush3.bf16.msra.mxu0 %v4241_v2 }
 0x7cd   : > { %v2753_v14 = vpop.f32.mrf.mxu0  ;;  %4111 = vmatmul.mubr.msk.bf16.vlgmr.msra.gmra.mxu1 %vm490_vm0, %v2862_v34  ;;  %v5296_v30 = vld [vmem:[#allocation2 + $0x20] sm:$0xff]  ;;  %4130 = vmatprep.subr.bf16.mxu0 %v4242_v13 }
 0x7ce   : > { %2821 = vst.msk [vmem:[#allocation2 + $0x40] sm:$0xff] %vm490_vm0, %v2805_v5  ;;  %v2808_v27 = vadd.f32 %v2792_v7, %v2762_v47  ;;  %v2754_v39 = vadd.f32 %v5246_v58, %v2753_v14 }
 0x7cf   : > { %v4104_v21 = vpop.f32.mrf.mxu0  ;;  %v5291_v40 = vld [vmem:[#allocation2 + $0x38] sm:$0xff] }
 0x7d0   : > { %2824 = vst.msk [vmem:[#allocation2 + $0x58] sm:$0xff] %vm490_vm0, %v2808_v27  ;;  %v2806_v32 = vadd.f32 %v2790_v35, %v2754_v39  ;;  %v2775_v19 = vadd.f32 %v4104_v21, %v5246_v58  ;;  %v2864_v8 = vpack.c.bf16 %v5291_v40, %v5300_v25  ;;  %4131 = vmatpush3.bf16.msra.mxu0 %v4242_v13 }
 0x7d1   : > { %v5298_v22 = vld [vmem:[#allocation2 + $0x28] sm:$0xff]  ;;  %v2766_v51 = vpop.f32.mrf.mxu0  ;;  %4132 = vmatprep.subr.bf16.mxu0 %v4243_v28 }
 0x7d2   : > { %2822 = vst.msk [vmem:[#allocation2 + $0x48] sm:$0xff] %vm490_vm0, %v2806_v32  ;;  %v2811_v61 = vadd.f32 %v2795_v59, %v2775_v19  ;;  %v2767_v43 = vadd.f32 %v5246_v58, %v2766_v51  ;;  %v2863_v44 = vpack.c.bf16 %v5298_v22, %v5296_v30 }
 0x7d3   : > { %v4105_v23 = vpop.f32.mrf.mxu0  ;;  %v5321_v53 = vld [vmem:[#allocation2 + $0x50] sm:$0xff] }
 0x7d4   : > { %2827 = vst.msk [vmem:[#allocation2 + $0x70] sm:$0xff] %vm490_vm0, %v2811_v61  ;;  %v2809_v60 = vadd.f32 %v2793_v37, %v2767_v43  ;;  %v2778_v24 = vadd.f32 %v4105_v23, %v5246_v58  ;;  %4114 = vmatprep.mubr.msk.bf16.mxu1 %vm490_vm0, %v2863_v44  ;;  %4133 = vmatpush3.bf16.msra.mxu0 %v4243_v28 }
 0x7d5   : > { %v2769_v55 = vpop.f32.mrf.mxu0  ;;  %4115 = vmatmul.mubr.msk.bf16.gmra.mxu1 %vm490_vm0, %v2864_v8  ;;  %v5317_v10 = vld [vmem:[#allocation2 + $0x40] sm:$0xff] }
 0x7d6   : > { %2825 = vst.msk [vmem:[#allocation2 + $0x60] sm:$0xff] %vm490_vm0, %v2809_v60  ;;  %v2812_v9 = vadd.f32 %v2796_v45, %v2778_v24  ;;  %v2770_v52 = vadd.f32 %v5246_v58, %v2769_v55 }
 0x7d7   : > { %v5314_v62 = vld [vmem:[#allocation2 + $0x58] sm:$0xff] }
 0x7d8   : > { %2828 = vst.msk [vmem:[#allocation2 + $0x78] sm:$0xff] %vm490_vm0, %v2812_v9  ;;  %v2810_v33 = vadd.f32 %v2794_v46, %v2770_v52  ;;  %v2866_v50 = vpack.c.bf16 %v5314_v62, %v5321_v53 }
 0x7d9   : > { %v5319_v15 = vld [vmem:[#allocation2 + $0x48] sm:$0xff] }
 0x7da   : > { %2826 = vst.msk [vmem:[#allocation2 + $0x68] sm:$0xff] %vm490_vm0, %v2810_v33  ;;  %v2865_v3 = vpack.c.bf16 %v5319_v15, %v5317_v10 }
 0x7db   : > { %v5336_v20 = vld [vmem:[#allocation2 + $0x70] sm:$0xff] }
 0x7dc   : > { %4118 = vmatprep.mubr.msk.bf16.mxu1 %vm490_vm0, %v2865_v3 }
 0x7dd   : > { %4119 = vmatmul.mubr.msk.bf16.gmra.mxu1 %vm490_vm0, %v2866_v50  ;;  %v5332_v38 = vld [vmem:[#allocation2 + $0x60] sm:$0xff] }
 0x7df   : > { %v5330_v58 = vld [vmem:[#allocation2 + $0x78] sm:$0xff] }
 0x7e0   : > { %v2868_v36 = vpack.c.bf16 %v5330_v58, %v5336_v20 }
 0x7e1   : > { %v5334_v42 = vld [vmem:[#allocation2 + $0x68] sm:$0xff] }
 0x7e2   : > { %v2867_v57 = vpack.c.bf16 %v5334_v42, %v5332_v38 }
 0x7e4   : > { %4122 = vmatprep.mubr.msk.bf16.mxu1 %vm490_vm0, %v2867_v57 }
 0x7e5   : > { %4123 = vmatmul.mubr.msk.bf16.gmra.mxu1 %vm490_vm0, %v2868_v36 }
 0x88d   : > { %v4112_v56 = vpop.f32.mrf.mxu1 }
 0x88e   : > { %v5362_v31 = vadd.f32 %v4112_v56, %v5359_v17 }
 0x88f   : > { %v2951_v1 = vpop.f32.mrf.mxu1 }
 0x890   : > { %v3016_v16 = vmul.f32 %v5362_v31, %v5362_v31  ;;  %v5367_v26 = vadd.f32 %v5359_v17, %v2951_v1 }
 0x891   : > { %v4113_v49 = vpop.f32.mrf.mxu1 }
 0x892   : > { %v3032_v6 = vmul.f32 %v3016_v16, %v5362_v31  ;;  %v3014_v54 = vmul.f32 %v5367_v26, %v5367_v26  ;;  %v5373_v7 = vadd.f32 %v4113_v49, %v5359_v17 }
 0x893   : > { %v2954_v4 = vpop.f32.mrf.mxu1 }
 0x894   : > { %v3048_v41 = vmul.f32 0.044715, %v3032_v6  ;;  %v3030_v34 = vmul.f32 %v3014_v54, %v5367_v26  ;;  %v3017_v35 = vmul.f32 %v5373_v7, %v5373_v7  ;;  %v5379_v5 = vadd.f32 %v5359_v17, %v2954_v4 }
 0x895   : > { %v4116_v47 = vpop.f32.mrf.mxu1 }
 0x896   : > { %v3064_v14 = vadd.f32 %v3048_v41, %v5362_v31  ;;  %v3046_v27 = vmul.f32 0.044715, %v3030_v34  ;;  %v3033_v39 = vmul.f32 %v3017_v35, %v5373_v7  ;;  %v3015_v48 = vmul.f32 %v5379_v5, %v5379_v5 }
 0x897   : > { %v5386_v59 = vadd.f32 %v4116_v47, %v5359_v17  ;;  %v2967_v21 = vpop.f32.mrf.mxu1 }
 0x898   : > { %v3080_v32 = vmul.f32 0.7978846, %v3064_v14  ;;  %v3062_v19 = vadd.f32 %v3046_v27, %v5367_v26  ;;  %v3049_v0 = vmul.f32 0.044715, %v3033_v39  ;;  %v3031_v37 = vmul.f32 %v3015_v48, %v5379_v5 }
 0x899   : > { %v3020_v51 = vmul.f32 %v5386_v59, %v5386_v59  ;;  %v5393_v61 = vadd.f32 %v5359_v17, %v2967_v21  ;;  %v4117_v43 = vpop.f32.mrf.mxu1 }
 0x89a   : > { %4380 = vtanh.f32 %v3080_v32  ;;  %v3078_v45 = vmul.f32 0.7978846, %v3062_v19  ;;  %v3065_v44 = vadd.f32 %v3049_v0, %v5373_v7  ;;  %v3047_v23 = vmul.f32 0.044715, %v3031_v37 }
 0x89b   : > { %v3036_v8 = vmul.f32 %v3020_v51, %v5386_v59  ;;  %v3018_v60 = vmul.f32 %v5393_v61, %v5393_v61  ;;  %v5400_v24 = vadd.f32 %v4117_v43, %v5359_v17  ;;  %v2970_v46 = vpop.f32.mrf.mxu1 }
 0x89c   : > { %4382 = vtanh.f32 %v3078_v45  ;;  %v3081_v55 = vmul.f32 0.7978846, %v3065_v44  ;;  %v3063_v9 = vadd.f32 %v3047_v23, %v5379_v5  ;;  %v5404_v52 = vadd.f32 %v5359_v17, %v2970_v46 }
 0x89d   : > { %v3052_v33 = vmul.f32 0.044715, %v3036_v8  ;;  %v3034_v3 = vmul.f32 %v3018_v60, %v5393_v61  ;;  %v3021_v50 = vmul.f32 %v5400_v24, %v5400_v24  ;;  %v4120_v57 = vpop.f32.mrf.mxu1 }
 0x89e   : > { %4384 = vtanh.f32 %v3081_v55  ;;  %v3079_v36 = vmul.f32 0.7978846, %v3063_v9  ;;  %v3019_v11 = vmul.f32 %v5404_v52, %v5404_v52  ;;  %v5412_v2 = vadd.f32 %v4120_v57, %v5359_v17 }
 0x89f   : > { %v3068_v13 = vadd.f32 %v3052_v33, %v5386_v59  ;;  %v3050_v28 = vmul.f32 0.044715, %v3034_v3  ;;  %v3037_v56 = vmul.f32 %v3021_v50, %v5400_v24  ;;  %v2983_v1 = vpop.f32.mrf.mxu1 }
 0x8a0   : > { %4386 = vtanh.f32 %v3079_v36  ;;  %v3035_v16 = vmul.f32 %v3019_v11, %v5404_v52  ;;  %v3024_v49 = vmul.f32 %v5412_v2, %v5412_v2  ;;  %v5420_v6 = vadd.f32 %v5359_v17, %v2983_v1 }
 0x8a1   : > { %v3084_v54 = vmul.f32 0.7978846, %v3068_v13  ;;  %v3066_v4 = vadd.f32 %v3050_v28, %v5393_v61  ;;  %v3053_v41 = vmul.f32 0.044715, %v3037_v56  ;;  %v4121_v34 = vpop.f32.mrf.mxu1 }
 0x8a2   : > { %v3051_v35 = vmul.f32 0.044715, %v3035_v16  ;;  %v3040_v47 = vmul.f32 %v3024_v49, %v5412_v2  ;;  %v3022_v14 = vmul.f32 %v5420_v6, %v5420_v6  ;;  %v5427_v27 = vadd.f32 %v4121_v34, %v5359_v17 }
 0x8a3   : > { %4388 = vtanh.f32 %v3084_v54  ;;  %v3082_v39 = vmul.f32 0.7978846, %v3066_v4  ;;  %v3069_v48 = vadd.f32 %v3053_v41, %v5400_v24  ;;  %v2986_v21 = vpop.f32.mrf.mxu1 }
 0x8a4   : > { %v3067_v32 = vadd.f32 %v3051_v35, %v5404_v52  ;;  %v3056_v19 = vmul.f32 0.044715, %v3040_v47  ;;  %v3038_v0 = vmul.f32 %v3022_v14, %v5420_v6  ;;  %v3025_v37 = vmul.f32 %v5427_v27, %v5427_v27 }
 0x8a5   : > { %4390 = vtanh.f32 %v3082_v39  ;;  %v3085_v51 = vmul.f32 0.7978846, %v3069_v48  ;;  %v5435_v43 = vadd.f32 %v5359_v17, %v2986_v21  ;;  %v4124_v45 = vpop.f32.mrf.mxu1 }
 0x8a6   : > { %v3083_v44 = vmul.f32 0.7978846, %v3067_v32  ;;  %v3072_v23 = vadd.f32 %v3056_v19, %v5412_v2  ;;  %v3054_v8 = vmul.f32 0.044715, %v3038_v0  ;;  %v3041_v60 = vmul.f32 %v3025_v37, %v5427_v27 }
 0x8a7   : > { %v4381_v46 = vpop.eup %4380  ;;  %4392 = vtanh.f32 %v3085_v51  ;;  %v3023_v55 = vmul.f32 %v5435_v43, %v5435_v43  ;;  %v5442_v9 = vadd.f32 %v4124_v45, %v5359_v17  ;;  %v2999_v33 = vpop.f32.mrf.mxu1 }
 0x8a8   : > { %4394 = vtanh.f32 %v3083_v44  ;;  %v3088_v3 = vmul.f32 0.7978846, %v3072_v23  ;;  %v3070_v50 = vadd.f32 %v3054_v8, %v5420_v6  ;;  %v3057_v36 = vmul.f32 0.044715, %v3041_v60 }
 0x8a9   : > { %v4383_v57 = vpop.eup %4382  ;;  %v3039_v11 = vmul.f32 %v3023_v55, %v5435_v43  ;;  %v3028_v13 = vmul.f32 %v5442_v9, %v5442_v9  ;;  %v5449_v28 = vadd.f32 %v5359_v17, %v2999_v33  ;;  %v4125_v56 = vpop.f32.mrf.mxu1  ;;  %v3112_v1 = vadd.f32 1.0, %v4381_v46 }
 0x8aa   : > { %v3110_v16 = vadd.f32 1.0, %v4383_v57  ;;  %4396 = vtanh.f32 %v3088_v3  ;;  %v3086_v49 = vmul.f32 0.7978846, %v3070_v50  ;;  %v3073_v4 = vadd.f32 %v3057_v36, %v5427_v27 }
 0x8ab   : > { %v4385_v54 = vpop.eup %4384  ;;  %v3055_v41 = vmul.f32 0.044715, %v3039_v11  ;;  %v3044_v34 = vmul.f32 %v3028_v13, %v5442_v9  ;;  %v3026_v35 = vmul.f32 %v5449_v28, %v5449_v28  ;;  %v3002_v19 = vpop.f32.mrf.mxu1  ;;  %v5458_v45 = vadd.f32 %v4125_v56, %v5359_v17 }
 0x8ac   : > { %v3113_v47 = vadd.f32 1.0, %v4385_v54  ;;  %4398 = vtanh.f32 %v3086_v49  ;;  %v3089_v39 = vmul.f32 0.7978846, %v3073_v4  ;;  %v3126_v0 = vmul.f32 0.5, %v3110_v16 }
 0x8ad   : > { %v4387_v14 = vpop.eup %4386  ;;  %v3071_v48 = vadd.f32 %v3055_v41, %v5435_v43  ;;  %v3060_v21 = vmul.f32 0.044715, %v3044_v34  ;;  %v3042_v32 = vmul.f32 %v3026_v35, %v5449_v28  ;;  %v3128_v44 = vmul.f32 0.5, %v3112_v1 }
 0x8ae   : > { %v3129_v37 = vmul.f32 0.5, %v3113_v47  ;;  %v3111_v51 = vadd.f32 1.0, %v4387_v14  ;;  %4400 = vtanh.f32 %v3089_v39  ;;  %v3029_v33 = vmul.f32 %v5458_v45, %v5458_v45 }
 0x8af   : > { %v3087_v23 = vmul.f32 0.7978846, %v3071_v48  ;;  %v3058_v8 = vmul.f32 0.044715, %v3042_v32  ;;  %v3076_v55 = vadd.f32 %v3060_v21, %v5442_v9  ;;  %v5464_v3 = vadd.f32 %v5359_v17, %v3002_v19 }
 0x8b0   : > { %v4389_v60 = vpop.eup %4388  ;;  %v3127_v46 = vmul.f32 0.5, %v3111_v51  ;;  %v3145_v50 = vmul.f32 %v3129_v37, %v5373_v7  ;;  %v3142_v11 = vmul.f32 %v3126_v0, %v5367_v26  ;;  %v3045_v56 = vmul.f32 %v3029_v33, %v5458_v45 }
 0x8b1   : > { %4402 = vtanh.f32 %v3087_v23  ;;  %v3074_v57 = vadd.f32 %v3058_v8, %v5449_v28  ;;  %v3027_v1 = vmul.f32 %v5464_v3, %v5464_v3  ;;  %v3144_v16 = vmul.f32 %v3128_v44, %v5362_v31 }
 0x8b2   : > { %v4391_v36 = vpop.eup %4390  ;;  %v3143_v13 = vmul.f32 %v3127_v46, %v5379_v5  ;;  %v3116_v17 = vadd.f32 1.0, %v4389_v60  ;;  %v3092_v4 = vmul.f32 0.7978846, %v3076_v55  ;;  %v3061_v41 = vmul.f32 0.044715, %v3045_v56 }
 0x8b3   : > { %v3114_v49 = vadd.f32 1.0, %v4391_v36  ;;  %v3090_v54 = vmul.f32 0.7978846, %v3074_v57  ;;  %v3043_v34 = vmul.f32 %v3027_v1, %v5464_v3  ;;  %v3175_v26 = vpack.c.bf16 %v3145_v50, %v3144_v16 }
 0x8b4   : > { %v4393_v7 = vpop.eup %4392  ;;  %v3174_v35 = vpack.c.bf16 %v3143_v13, %v3142_v11  ;;  %v3077_v48 = vadd.f32 %v3061_v41, %v5458_v45  ;;  %v3132_v32 = vmul.f32 0.5, %v3116_v17 }
 0x8b5   : > { %v4395_v47 = vpop.eup %4394  ;;  %v3117_v14 = vadd.f32 1.0, %v4393_v7  ;;  %v3130_v5 = vmul.f32 0.5, %v3114_v49  ;;  %v3059_v21 = vmul.f32 0.044715, %v3043_v34  ;;  %4404 = vtanh.f32 %v3090_v54 }
 0x8b6   : > { %v3115_v39 = vadd.f32 1.0, %v4395_v47  ;;  %4134 = vmatprep.mubr.msk.bf16.mxu0 %vm3214_vm3, %v3174_v35  ;;  %4406 = vtanh.f32 %v3092_v4  ;;  %v3093_v37 = vmul.f32 0.7978846, %v3077_v48  ;;  %v3148_v46 = vmul.f32 %v3132_v32, %v5386_v59 }
 0x8b7   : > { %v4397_v31 = vpop.eup %4396  ;;  %v3133_v19 = vmul.f32 0.5, %v3117_v14  ;;  %4135 = vmatmul.mubr.msk.bf16.vlgmr.msra.gmra.mxu0 %vm3214_vm3, %v3175_v26  ;;  %v3075_v51 = vadd.f32 %v3059_v21, %v5464_v3  ;;  %v3146_v8 = vmul.f32 %v3130_v5, %v5393_v61 }
 0x8b8   : > { %v3131_v0 = vmul.f32 0.5, %v3115_v39  ;;  %4408 = vtanh.f32 %v3093_v37  ;;  %v3120_v57 = vadd.f32 1.0, %v4397_v31  ;;  %v3160_v37 = vld [vmem:[#allocation3 + $0x10] sm:$0xff] }
 0x8b9   : > { %v4399_v44 = vpop.eup %4398  ;;  %v3149_v23 = vmul.f32 %v3133_v19, %v5400_v24  ;;  %v3091_v33 = vmul.f32 0.7978846, %v3075_v51 }
 0x8ba   : > { %v3147_v60 = vmul.f32 %v3131_v0, %v5404_v52  ;;  %v3118_v55 = vadd.f32 1.0, %v4399_v44  ;;  %v3136_v61 = vmul.f32 0.5, %v3120_v57  ;;  %v3158_v44 = vld [vmem:[#allocation3] sm:$0xff] }
 0x8bb   : > { %v4401_v50 = vpop.eup %4400  ;;  %4410 = vtanh.f32 %v3091_v33  ;;  %v3177_v13 = vpack.c.bf16 %v3149_v23, %v3148_v46  ;;  %v3159_v46 = vld [vmem:[#allocation3 + $0x8] sm:$0xff]  ;;  %v3162_v57 = vld [vmem:[#allocation3 + $0x20] sm:$0xff] }
 0x8bc   : > { %v3176_v36 = vpack.c.bf16 %v3147_v60, %v3146_v8  ;;  %v3121_v11 = vadd.f32 1.0, %v4401_v50  ;;  %v3134_v1 = vmul.f32 0.5, %v3118_v55  ;;  %v3152_v7 = vmul.f32 %v3136_v61, %v5412_v2  ;;  %v3161_v60 = vld [vmem:[#allocation3 + $0x18] sm:$0xff]  ;;  %v3164_v55 = vld [vmem:[#allocation3 + $0x30] sm:$0xff] }
 0x8be   : > { %v4403_v56 = vpop.eup %4402  ;;  %4138 = vmatprep.mubr.msk.bf16.mxu0 %vm3214_vm3, %v3176_v36  ;;  %v3137_v24 = vmul.f32 0.5, %v3121_v11  ;;  %v3150_v17 = vmul.f32 %v3134_v1, %v5420_v6  ;;  %v3165_v1 = vld [vmem:[#allocation3 + $0x38] sm:$0xff] }
 0x8bf   : > { %v3119_v16 = vadd.f32 1.0, %v4403_v56  ;;  %4139 = vmatmul.mubr.msk.bf16.gmra.mxu0 %vm3214_vm3, %v3177_v13  ;;  %v5504_v13 = vld [vmem:[%s5606_s8] ss:$0 sm:$0xff] }
 0x8c0   : > { %v3153_v59 = vmul.f32 %v3137_v24, %v5427_v27 }
 0x8c1   : > { %v3135_v52 = vmul.f32 0.5, %v3119_v16 }
 0x8c2   : > { %v4405_v54 = vpop.eup %4404  ;;  %v3179_v34 = vpack.c.bf16 %v3153_v59, %v3152_v7  ;;  %v3163_v59 = vld [vmem:[#allocation3 + $0x28] sm:$0xff] }
 0x8c3   : > { %v3151_v49 = vmul.f32 %v3135_v52, %v5435_v43  ;;  %v4407_v4 = vpop.eup %4406  ;;  %v3122_v47 = vadd.f32 1.0, %v4405_v54 }
 0x8c4   : > { %v3124_v26 = vadd.f32 1.0, %v4407_v4 }
 0x8c5   : > { %v3178_v41 = vpack.c.bf16 %v3151_v49, %v3150_v17  ;;  %v4409_v35 = vpop.eup %4408  ;;  %v3138_v39 = vmul.f32 0.5, %v3122_v47 }
 0x8c6   : > { %v3125_v14 = vadd.f32 1.0, %v4409_v35  ;;  %v3140_v48 = vmul.f32 0.5, %v3124_v26  ;;  %v3168_v35 = vld [vmem:[#allocation3 + $0x50] sm:$0xff] }
 0x8c7   : > { %4142 = vmatprep.mubr.msk.bf16.mxu0 %vm3214_vm3, %v3178_v41  ;;  %v3154_v2 = vmul.f32 %v3138_v39, %v5449_v28  ;;  %v3166_v39 = vld [vmem:[#allocation3 + $0x40] sm:$0xff] }
 0x8c8   : > { %4143 = vmatmul.mubr.msk.bf16.gmra.mxu0 %vm3214_vm3, %v3179_v34  ;;  %v4411_v5 = vpop.eup %4410  ;;  %v3141_v27 = vmul.f32 0.5, %v3125_v14  ;;  %v3156_v32 = vmul.f32 %v3140_v48, %v5442_v9 }
 0x8c9   : > { %v3123_v6 = vadd.f32 1.0, %v4411_v5 }
 0x8ca   : > { %v3157_v21 = vmul.f32 %v3141_v27, %v5458_v45 }
 0x8cb   : > { %v3139_v43 = vmul.f32 0.5, %v3123_v6 }
 0x8cc   : > { %v3181_v0 = vpack.c.bf16 %v3157_v21, %v3156_v32 }
 0x8cd   : > { %v3155_v31 = vmul.f32 %v3139_v43, %v5464_v3 }
 0x8cf   : > { %v3180_v19 = vpack.c.bf16 %v3155_v31, %v3154_v2  ;;  %v3169_v31 = vld [vmem:[#allocation3 + $0x58] sm:$0xff] }
 0x8d1   : > { %4146 = vmatprep.mubr.msk.bf16.mxu0 %vm3214_vm3, %v3180_v19 }
 0x8d2   : > { %4147 = vmatmul.mubr.msk.bf16.gmra.mxu0 %vm3214_vm3, %v3181_v0 }
 0x977   : > { %v4136_v51 = vpop.f32.mrf.mxu0 }
 0x978   : > { %v3338_v23 = vadd.f32 %v4136_v51, %v3160_v37 }
 0x979   : > { %v3273_v8 = vpop.f32.mrf.mxu0 }
 0x97a   : > { %3354 = vst.msk [vmem:[#allocation3 + $0x10] sm:$0xff] %vm490_vm0, %v3338_v23  ;;  %v3336_v45 = vadd.f32 %v3273_v8, %v3158_v44  ;;  %v3167_v44 = vld [vmem:[#allocation3 + $0x48] sm:$0xff] }
 0x97b   : > { %v4137_v28 = vpop.f32.mrf.mxu0 }
 0x97c   : > { %3352 = vst.msk [vmem:[#allocation3] sm:$0xff] %vm490_vm0, %v3336_v45  ;;  %v3339_v9 = vadd.f32 %v4137_v28, %v3161_v60 }
 0x97d   : > { %v3276_v3 = vpop.f32.mrf.mxu0 }
 0x97e   : > { %3355 = vst.msk [vmem:[#allocation3 + $0x18] sm:$0xff] %vm490_vm0, %v3339_v9  ;;  %v3337_v33 = vadd.f32 %v3276_v3, %v3159_v46 }
 0x97f   : > { %v4140_v50 = vpop.f32.mrf.mxu0 }
 0x980   : > { %3353 = vst.msk [vmem:[#allocation3 + $0x8] sm:$0xff] %vm490_vm0, %v3337_v33  ;;  %v3342_v36 = vadd.f32 %v4140_v50, %v3164_v55 }
 0x981   : > { %v3389_v11 = vld [vmem:[#allocation3 + $0x10] sm:$0xff]  ;;  %v3289_v56 = vpop.f32.mrf.mxu0 }
 0x982   : > { %v3405_v24 = vadd.f32 %v3389_v11, %v5276_v29  ;;  %3358 = vst.msk [vmem:[#allocation3 + $0x30] sm:$0xff] %vm490_vm0, %v3342_v36  ;;  %v3340_v16 = vadd.f32 %v3289_v56, %v3162_v57  ;;  %v3172_v57 = vld [vmem:[#allocation3 + $0x70] sm:$0xff] }
 0x983   : > { %v3387_v61 = vld [vmem:[#allocation3] sm:$0xff]  ;;  %v4141_v52 = vpop.f32.mrf.mxu0 }
 0x984   : > { %v3428_v17 = vadd.f32 %v5504_v13, %v3405_v24  ;;  %v3403_v49 = vadd.f32 %v3387_v61, %v5272_v12  ;;  %3356 = vst.msk [vmem:[#allocation3 + $0x20] sm:$0xff] %vm490_vm0, %v3340_v16  ;;  %v3343_v54 = vadd.f32 %v4141_v52, %v3165_v1  ;;  %v3170_v24 = vld [vmem:[#allocation3 + $0x60] sm:$0xff] }
 0x985   : > { %v3390_v29 = vld [vmem:[#allocation3 + $0x18] sm:$0xff]  ;;  %v3292_v7 = vpop.f32.mrf.mxu0 }
 0x986   : > { %v3754_v4 = vpack.c.bf16 %v3428_v17, %v3428_v17  ;;  %v3426_v41 = vadd.f32 %v5504_v13, %v3403_v49  ;;  %v3406_v34 = vadd.f32 %v3390_v29, %v5268_v18  ;;  %3359 = vst.msk [vmem:[#allocation3 + $0x38] sm:$0xff] %vm490_vm0, %v3343_v54  ;;  %v3341_v12 = vadd.f32 %v3292_v7, %v3163_v59  ;;  %v3173_v17 = vld [vmem:[#allocation3 + $0x78] sm:$0xff] }
 0x987   : > { %v3388_v47 = vld [vmem:[#allocation3 + $0x8] sm:$0xff] }
 0x988   : > { %3509 = vst.msk [vmem:[%s5516_s23 + $0x8] sm:$0xf] %vm3506_vm4, %v3754_v4  ;;  %v3752_v26 = vpack.c.bf16 %v3426_v41, %v3426_v41  ;;  %v3429_v14 = vadd.f32 %v5504_v13, %v3406_v34  ;;  %v3404_v5 = vadd.f32 %v3388_v47, %v5274_v63  ;;  %v4144_v27 = vpop.f32.mrf.mxu0  ;;  %v3171_v41 = vld [vmem:[#allocation3 + $0x68] sm:$0xff] }
 0x989   : > { %3357 = vst.msk [vmem:[#allocation3 + $0x28] sm:$0xff] %vm490_vm0, %v3341_v12  ;;  %v3393_v6 = vld [vmem:[#allocation3 + $0x30] sm:$0xff]  ;;  %v3346_v48 = vadd.f32 %v4144_v27, %v3168_v35 }
 0x98a   : > { %3507 = vst.msk [vmem:[%s5516_s23] sm:$0xf] %vm3506_vm4, %v3752_v26  ;;  %v3755_v18 = vpack.c.bf16 %v3429_v14, %v3429_v14  ;;  %v3427_v43 = vadd.f32 %v5504_v13, %v3404_v5  ;;  %v3409_v21 = vadd.f32 %v3393_v6, %v5300_v25  ;;  %v3305_v2 = vpop.f32.mrf.mxu0 }
 0x98b   : > { %v3391_v32 = vld [vmem:[#allocation3 + $0x20] sm:$0xff]  ;;  %3362 = vst.msk [vmem:[#allocation3 + $0x50] sm:$0xff] %vm490_vm0, %v3346_v48  ;;  %v3344_v63 = vadd.f32 %v3305_v2, %v3166_v39 }
 0x98c   : > { %3510 = vst.msk [vmem:[%s5516_s23 + $0xc] sm:$0xf] %vm3506_vm4, %v3755_v18  ;;  %v3753_v19 = vpack.c.bf16 %v3427_v43, %v3427_v43  ;;  %v3432_v0 = vadd.f32 %v5504_v13, %v3409_v21  ;;  %v3407_v37 = vadd.f32 %v3391_v32, %v5296_v30  ;;  %v4145_v51 = vpop.f32.mrf.mxu0 }
 0x98d   : > { %v3394_v23 = vld [vmem:[#allocation3 + $0x38] sm:$0xff]  ;;  %3360 = vst.msk [vmem:[#allocation3 + $0x40] sm:$0xff] %vm490_vm0, %v3344_v63  ;;  %v3347_v25 = vadd.f32 %v4145_v51, %v3169_v31 }
 0x98e   : > { %3508 = vst.msk [vmem:[%s5516_s23 + $0x4] sm:$0xf] %vm3506_vm4, %v3753_v19  ;;  %v3758_v8 = vpack.c.bf16 %v3432_v0, %v3432_v0  ;;  %v3430_v60 = vadd.f32 %v5504_v13, %v3407_v37  ;;  %v3410_v45 = vadd.f32 %v3394_v23, %v5291_v40  ;;  %v3308_v28 = vpop.f32.mrf.mxu0 }
 0x98f   : > { %3363 = vst.msk [vmem:[#allocation3 + $0x58] sm:$0xff] %vm490_vm0, %v3347_v25  ;;  %v3345_v30 = vadd.f32 %v3308_v28, %v3167_v44 }
 0x990   : > { %v3392_v46 = vld [vmem:[#allocation3 + $0x28] sm:$0xff]  ;;  %3513 = vst.msk [vmem:[%s5516_s23 + $0x18] sm:$0xf] %vm3506_vm4, %v3758_v8  ;;  %v3756_v9 = vpack.c.bf16 %v3430_v60, %v3430_v60  ;;  %v3433_v3 = vadd.f32 %v5504_v13, %v3410_v45 }
 0x991   : > { %v3408_v55 = vadd.f32 %v3392_v46, %v5298_v22  ;;  %3361 = vst.msk [vmem:[#allocation3 + $0x48] sm:$0xff] %vm490_vm0, %v3345_v30 }
 0x992   : > { %3511 = vst.msk [vmem:[%s5516_s23 + $0x10] sm:$0xf] %vm3506_vm4, %v3756_v9  ;;  %v3759_v33 = vpack.c.bf16 %v3433_v3, %v3433_v3  ;;  %v3397_v50 = vld [vmem:[#allocation3 + $0x50] sm:$0xff]  ;;  %v4148_v1 = vpop.f32.mrf.mxu0 }
 0x993   : > { %v3431_v40 = vadd.f32 %v5504_v13, %v3408_v55  ;;  %v3413_v36 = vadd.f32 %v3397_v50, %v5321_v53  ;;  %v3350_v61 = vadd.f32 %v4148_v1, %v3172_v57 }
 0x994   : > { %3514 = vst.msk [vmem:[%s5516_s23 + $0x1c] sm:$0xf] %vm3506_vm4, %v3759_v33  ;;  %v3395_v56 = vld [vmem:[#allocation3 + $0x40] sm:$0xff]  ;;  %v3321_v59 = vpop.f32.mrf.mxu0 }
 0x995   : > { %v3757_v11 = vpack.c.bf16 %v3431_v40, %v3431_v40  ;;  %v3436_v22 = vadd.f32 %v5504_v13, %v3413_v36  ;;  %v3411_v16 = vadd.f32 %v3395_v56, %v5317_v10  ;;  %3366 = vst.msk [vmem:[#allocation3 + $0x70] sm:$0xff] %vm490_vm0, %v3350_v61  ;;  %v3348_v29 = vadd.f32 %v3321_v59, %v3170_v24 }
 0x996   : > { %v3398_v52 = vld [vmem:[#allocation3 + $0x58] sm:$0xff]  ;;  %v4149_v4 = vpop.f32.mrf.mxu0 }
 0x997   : > { %3512 = vst.msk [vmem:[%s5516_s23 + $0x14] sm:$0xf] %vm3506_vm4, %v3757_v11  ;;  %v3762_v49 = vpack.c.bf16 %v3436_v22, %v3436_v22  ;;  %v3434_v53 = vadd.f32 %v5504_v13, %v3411_v16  ;;  %v3414_v54 = vadd.f32 %v3398_v52, %v5314_v62  ;;  %v3351_v35 = vadd.f32 %v4149_v4, %v3173_v17 }
 0x998   : > { %v3396_v7 = vld [vmem:[#allocation3 + $0x48] sm:$0xff]  ;;  %3364 = vst.msk [vmem:[#allocation3 + $0x60] sm:$0xff] %vm490_vm0, %v3348_v29  ;;  %v3324_v47 = vpop.f32.mrf.mxu0 }
 0x999   : > { %3517 = vst.msk [vmem:[%s5516_s23 + $0x28] sm:$0xf] %vm3506_vm4, %v3762_v49  ;;  %v3760_v10 = vpack.c.bf16 %v3434_v53, %v3434_v53  ;;  %v3437_v34 = vadd.f32 %v5504_v13, %v3414_v54  ;;  %v3412_v12 = vadd.f32 %v3396_v7, %v5319_v15  ;;  %v3349_v14 = vadd.f32 %v3324_v47, %v3171_v41 }
 0x99a   : > { %3367 = vst.msk [vmem:[#allocation3 + $0x78] sm:$0xff] %vm490_vm0, %v3351_v35 }
 0x99b   : > { %3515 = vst.msk [vmem:[%s5516_s23 + $0x20] sm:$0xf] %vm3506_vm4, %v3760_v10  ;;  %v3763_v62 = vpack.c.bf16 %v3437_v34, %v3437_v34  ;;  %v3435_v26 = vadd.f32 %v5504_v13, %v3412_v12 }
 0x99c   : > { %3365 = vst.msk [vmem:[#allocation3 + $0x68] sm:$0xff] %vm490_vm0, %v3349_v14  ;;  %v3401_v15 = vld [vmem:[#allocation3 + $0x70] sm:$0xff] }
 0x99d   : > { %3518 = vst.msk [vmem:[%s5516_s23 + $0x2c] sm:$0xf] %vm3506_vm4, %v3763_v62  ;;  %v3761_v5 = vpack.c.bf16 %v3435_v26, %v3435_v26  ;;  %v3417_v27 = vadd.f32 %v3401_v15, %v5336_v20 }
 0x99f   : > { %3516 = vst.msk [vmem:[%s5516_s23 + $0x24] sm:$0xf] %vm3506_vm4, %v3761_v5  ;;  %v3399_v39 = vld [vmem:[#allocation3 + $0x60] sm:$0xff]  ;;  %v3440_v6 = vadd.f32 %v5504_v13, %v3417_v27 }
 0x9a0   : > { %v3415_v48 = vadd.f32 %v3399_v39, %v5332_v38 }
 0x9a1   : > { %v3402_v18 = vld [vmem:[#allocation3 + $0x78] sm:$0xff]  ;;  %v3766_v43 = vpack.c.bf16 %v3440_v6, %v3440_v6 }
 0x9a2   : > { %v3438_v21 = vadd.f32 %v5504_v13, %v3415_v48  ;;  %v3418_v2 = vadd.f32 %v3402_v18, %v5330_v58 }
 0x9a3   : > { %v3400_v31 = vld [vmem:[#allocation3 + $0x68] sm:$0xff]  ;;  %3521 = vst.msk [vmem:[%s5516_s23 + $0x38] sm:$0xf] %vm3506_vm4, %v3766_v43 }
 0x9a4   : > { %v3764_v32 = vpack.c.bf16 %v3438_v21, %v3438_v21  ;;  %v3441_v63 = vadd.f32 %v5504_v13, %v3418_v2  ;;  %v3416_v20 = vadd.f32 %v3400_v31, %v5334_v42 }
 0x9a6   : > { %3519 = vst.msk [vmem:[%s5516_s23 + $0x30] sm:$0xf] %vm3506_vm4, %v3764_v32  ;;  %v3767_v19 = vpack.c.bf16 %v3441_v63, %v3441_v63  ;;  %v3439_v0 = vadd.f32 %v5504_v13, %v3416_v20 }
 0x9a8   : > { %3522 = vst.msk [vmem:[%s5516_s23 + $0x3c] sm:$0xf] %vm3506_vm4, %v3767_v19  ;;  %v3765_v38 = vpack.c.bf16 %v3439_v0, %v3439_v0 }
 0x9aa   : > { %3520 = vst.msk [vmem:[%s5516_s23 + $0x34] sm:$0xf] %vm3506_vm4, %v3765_v38 }
 0x9ab PF: > { %s19_s11 = sadd.s32 1, %s4442_s11   ;;  %s5608_s30 = smov %s4438_s10 }
 0x9ac   : > { %p16_p5 = scmp.ge.s32.totalorder %s19_s11, 6   ;;  %s5609_s10 = smov %s5611_s12 }
 0x9ae   :  { %18 = sbr.rel (!%p16_p5) target bundleno = 2 (0x2), region = 103 }

</bundles_post_ra>
